<compile_context>
chip_gen: v6e
topology: v6e:2x2x1
jax: 0.10.0
libtpu: 0.0.40
codegen_flags: <defaults>
</compile_context>

<pallas_src>
import functools

import numpy as np

import jax
import jax.numpy as jnp
from jax import lax
from jax.experimental import pallas as pl
from jax.experimental.pallas import tpu as pltpu

EPS = 1e-5  # nn.InstanceNorm2d default (affine=False, track_running_stats=False)


def upsample_kernel(x_ref, skip_ref, w_ref, mask_ref, p_ref, out_ref, *, W, pad):
    """One grid step = one batch sample.

    x_ref:    (1, Cin_p, HW)        input, channels zero-padded to a multiple of 8
    skip_ref: (1, Cout, 4*HW)       skip connection, final spatial layout (flat)
    w_ref:    (4*Cout, 9*Cin_p)     fused sub-pixel ConvTranspose2d weights
    mask_ref: (2, HW + 2*pad)       [0]: src col != W-1 (dx=-1), [1]: src col != 0 (dx=+1)
    p_ref:    (4, HW, 4*HW)         one-hot scatter: lane i*W+j -> (2i+py)*2W + 2j + px
    out_ref:  (1, 2*Cout, 4*HW)     final buffer: [0:Cout] upsampled, [Cout:] skip
    """
    cin_p = x_ref.shape[1]
    cout = skip_ref.shape[1]
    hw = x_ref.shape[2]
    hw4 = out_ref.shape[2]

    # Zero-padded input built with 128-aligned lane concats (no host-side pad,
    # no extra DMA'd zero lanes beyond the pad itself).
    zpad = jnp.zeros((cin_p, pad), jnp.float32)
    xv = jnp.concatenate([zpad, x_ref[0], zpad], axis=1)        # (Cin_p, HW + 2*pad)

    # Pre-masked copies, one per dx (source-column masking == output-column masking).
    xm = xv * mask_ref[0:1, :]   # zero where source col == W-1  (used by dx = -1)
    xp = xv * mask_ref[1:2, :]   # zero where source col == 0    (used by dx = +1)

    # 9 tap slabs (dy, dx) as static lane slices of the padded value; row
    # out-of-range reads land in the flat zero padding.
    slabs = []
    for dy in (-1, 0, 1):
        for dx in (-1, 0, 1):
            base = xm if dx == -1 else (xp if dx == 1 else xv)
            delta = dy * W + dx
            slabs.append(base[:, pad + delta:pad + delta + hw])  # (Cin_p, HW)
    xs = jnp.concatenate(slabs, axis=0)                          # (9*Cin_p, HW)

    # Fused conv-transpose: all 4 sub-pixel parities in one MXU call.
    # (9*Cin_p <= 128 here; for larger Cin split per parity to skip zero taps.)
    y = jnp.dot(w_ref[...], xs, preferred_element_type=jnp.float32)  # (4*Cout, HW)

    # Sub-pixel scatter into the final row-major (2H, 2W) lane order, on the MXU.
    # p_ref[p] is a one-hot permutation block, so the result is exact in f32.
    z = jnp.dot(y[0:cout], p_ref[0], preferred_element_type=jnp.float32)
    for p in range(1, 4):
        z = z + jnp.dot(y[p * cout:(p + 1) * cout], p_ref[p],
                        preferred_element_type=jnp.float32)          # (Cout, 4*HW)

    # InstanceNorm2d (biased variance, eps inside rsqrt) + ReLU, one-pass stats.
    inv_n = 1.0 / hw4
    mean = jnp.sum(z, axis=1, keepdims=True) * inv_n
    var = jnp.sum(z * z, axis=1, keepdims=True) * inv_n - mean * mean
    out_ref[0, :cout, :] = jnp.maximum(
        (z - mean) * lax.rsqrt(var + EPS), 0.0).astype(out_ref.dtype)

    # Fused channel concat: torch.cat((x, skip_input), dim=1).
    out_ref[0, cout:, :] = skip_ref[0].astype(out_ref.dtype)


def _fuse_weights(w, cin_pad):
    """ConvTranspose2d(k=4, s=2, p=1) weights (Cin, Cout, 4, 4) -> (4*Cout, 9*cin_pad).

    Row block p = py*2 + px (output sub-pixel parity); column block over (dy, dx)
    in row-major {-1,0,1}^2 (input tap).  out[2i+py, 2j+px] uses kernel index
    kh = py - 2*dy + 1 (and likewise kw); taps a parity does not use, and the
    zero-padded input channels, are zero columns.
    """
    cin, cout = w.shape[0], w.shape[1]
    taps = {0: {-1: 3, 0: 1}, 1: {0: 2, 1: 0}}   # parity -> {d: kernel index}
    blocks = []
    for py in range(2):
        for px in range(2):
            row = []
            for dy in (-1, 0, 1):
                for dx in (-1, 0, 1):
                    blk = jnp.zeros((cout, cin_pad), w.dtype)
                    if dy in taps[py] and dx in taps[px]:
                        blk = blk.at[:, :cin].set(
                            w[:, :, taps[py][dy], taps[px][dx]].T)
                    row.append(blk)
            blocks.append(jnp.concatenate(row, axis=1))
    return jnp.concatenate(blocks, axis=0)        # (4*Cout, 9*cin_pad)


def _subpixel_scatter(H, W):
    """One-hot P[p, i*W+j, (2i+py)*2W + 2j + px] = 1 with p = 2*py + px."""
    hw = H * W
    P = np.zeros((4, hw, 4 * hw), np.float32)
    i = np.arange(hw) // W
    j = np.arange(hw) % W
    for py in range(2):
        for px in range(2):
            P[2 * py + px, np.arange(hw), (2 * i + py) * (2 * W) + 2 * j + px] = 1.0
    return P


def _dx_masks(W, hw, pad):
    """(2, hw+2*pad) f32 masks over the padded flat axis (pad region irrelevant)."""
    col = (np.arange(hw + 2 * pad) - pad) % W
    return np.stack([(col != W - 1), (col != 0)]).astype(np.float32)


def upsample_forward(x, skip, w):
    """x: (N, Cin, H, W), skip: (N, Cout, 2H, 2W), w: (Cin, Cout, 4, 4) torch layout."""
    N, Cin, H, W = x.shape
    Cout = w.shape[1]
    HW = H * W
    HW4 = 4 * HW

    cin_p = ((Cin + 7) // 8) * 8                       # sublane-align the tap slabs
    pad = max(128, ((W + 1 + 127) // 128) * 128)       # >= W+1 and lane-aligned
    hwp = HW + 2 * pad

    xf = x.reshape(N, Cin, HW)                         # free bitcast reshape
    if cin_p != Cin:
        xf = jnp.pad(xf, ((0, 0), (0, cin_p - Cin), (0, 0)))
    skipf = skip.reshape(N, Cout, HW4)                 # free bitcast reshape
    wf = _fuse_weights(w, cin_p)                       # (4*Cout, 9*cin_p)
    masks = jnp.asarray(_dx_masks(W, HW, pad))         # (2, hwp)
    pmat = jnp.asarray(_subpixel_scatter(H, W))        # (4, HW, 4*HW)

    # Explicit VMEM budget: double-buffered blocks + slack for in-kernel temps.
    def _bytes(*shapes):
        return sum(int(np.prod(s)) * 4 for s in shapes)
    vmem_bytes = 2 * _bytes((cin_p, HW), (Cout, HW4), (4 * Cout, 9 * cin_p),
                            (8, hwp), (4, HW, HW4), (2 * Cout, HW4))
    vmem_bytes += _bytes((9 * cin_p, HW), (3 * cin_p, hwp),
                         (4 * Cout, HW), (3 * Cout, HW4)) + (4 << 20)

    kernel = functools.partial(upsample_kernel, W=W, pad=pad)
    out = pl.pallas_call(
        kernel,
        out_shape=jax.ShapeDtypeStruct((N, 2 * Cout, HW4), jnp.float32),
        grid_spec=pltpu.PrefetchScalarGridSpec(
            num_scalar_prefetch=0,
            grid=(N,),
            in_specs=[
                pl.BlockSpec((1, cin_p, HW), lambda n: (n, 0, 0)),
                pl.BlockSpec((1, Cout, HW4), lambda n: (n, 0, 0)),
                pl.BlockSpec((4 * Cout, 9 * cin_p), lambda n: (0, 0)),
                pl.BlockSpec((2, hwp), lambda n: (0, 0)),
                pl.BlockSpec((4, HW, HW4), lambda n: (0, 0, 0)),
            ],
            out_specs=pl.BlockSpec((1, 2 * Cout, HW4), lambda n: (n, 0, 0)),
        ),
        compiler_params=pltpu.CompilerParams(
            dimension_semantics=("parallel",),          # N=2 -> both v7x TCs busy
            vmem_limit_bytes=int(vmem_bytes),
        ),
    )(xf, skipf, wf, masks, pmat)

    # Free row-major bitcast to NCHW; no XLA transpose/concat epilogue remains.
    return out.reshape(N, 2 * Cout, 2 * H, 2 * W)


def reference_forward(x, skip, w):
    """Pure-JAX reference matching the PyTorch module (for verification)."""
    w_t = jnp.transpose(w[:, :, ::-1, ::-1], (1, 0, 2, 3))  # (Cout, Cin, 4, 4)
    y = lax.conv_general_dilated(
        x, w_t, window_strides=(1, 1), padding=((2, 2), (2, 2)),
        lhs_dilation=(2, 2), dimension_numbers=("NCHW", "OIHW", "NCHW"))
    mean = jnp.mean(y, axis=(2, 3), keepdims=True)
    var = jnp.mean((y - mean) ** 2, axis=(2, 3), keepdims=True)
    y = jnp.maximum((y - mean) / jnp.sqrt(var + EPS), 0.0)
    return jnp.concatenate([y, skip], axis=1)


if __name__ == "__main__":
    N, Cin, Cout, H, W = 2, 4, 8, 16, 16

    key = jax.random.PRNGKey(0)
    kx, ks, kw = jax.random.split(key, 3)
    x = jax.random.normal(kx, (N, Cin, H, W), dtype=jnp.float32)
    skip = jax.random.normal(ks, (N, Cout, 2 * H, 2 * W), dtype=jnp.float32)
    # ConvTranspose2d weight shape: (in_channels, out_channels, kH, kW)
    w = 0.1 * jax.random.normal(kw, (Cin, Cout, 4, 4), dtype=jnp.float32)

    out = jax.block_until_ready(upsample_forward(x, skip, w))
    ref = jax.block_until_ready(reference_forward(x, skip, w))

    assert out.shape == (N, 2 * Cout, 2 * H, 2 * W), out.shape
    assert jnp.allclose(out, ref, rtol=1e-3, atol=1e-3), "mismatch vs reference"
    print("KERNEL_OK")
</pallas_src>

<mosaic_0001>
module attributes {stable_mosaic.version = 11 : i64} {
  func.func @upsample_kernel(%arg0: i32, %arg1: memref<1x8x256xf32, #tpu.memory_space<vmem>>, %arg2: memref<1x8x1024xf32, #tpu.memory_space<vmem>>, %arg3: memref<32x72xf32, #tpu.memory_space<vmem>>, %arg4: memref<2x512xf32, #tpu.memory_space<vmem>>, %arg5: memref<4x256x1024xf32, #tpu.memory_space<vmem>>, %arg6: memref<1x16x1024xf32, #tpu.memory_space<vmem>>) attributes {dimension_semantics = [#tpu.dimension_semantics<parallel>], iteration_bounds = array<i64: 2>, scalar_prefetch = 0 : i64, scratch_operands = 0 : i64, tpu.core_type = #tpu.core_type<tc>, window_params = [{transform_indices = @transform_0, window_bounds = array<i64: 1, 8, 256>}, {transform_indices = @transform_1, window_bounds = array<i64: 1, 8, 1024>}, {pipeline_mode = #tpu.pipeline_mode<synchronous>, transform_indices = @transform_2, window_bounds = array<i64: 32, 72>}, {pipeline_mode = #tpu.pipeline_mode<synchronous>, transform_indices = @transform_3, window_bounds = array<i64: 2, 512>}, {pipeline_mode = #tpu.pipeline_mode<synchronous>, transform_indices = @transform_4, window_bounds = array<i64: 4, 256, 1024>}, {transform_indices = @transform_5, window_bounds = array<i64: 1, 16, 1024>}]} {
    %cst = arith.constant 0.000000e+00 : f32
    %0 = vector.broadcast %cst : f32 to vector<8x128xf32>
    %c0 = arith.constant 0 : index
    %c0_0 = arith.constant 0 : index
    %c0_1 = arith.constant 0 : index
    %1 = vector.load %arg1[%c0, %c0_0, %c0_1] : memref<1x8x256xf32, #tpu.memory_space<vmem>>, vector<1x8x256xf32>
    %2 = vector.shape_cast %1 : vector<1x8x256xf32> to vector<8x256xf32>
    %3 = tpu.concatenate %0, %2, %0 in 1 : vector<8x128xf32>, vector<8x256xf32>, vector<8x128xf32> -> vector<8x512xf32>
    %c0_2 = arith.constant 0 : index
    %c0_3 = arith.constant 0 : index
    %4 = vector.load %arg4[%c0_2, %c0_3] : memref<2x512xf32, #tpu.memory_space<vmem>>, vector<1x512xf32>
    %5 = vector.broadcast %4 : vector<1x512xf32> to vector<8x512xf32>
    %6 = arith.mulf %3, %5 : vector<8x512xf32>
    %c1 = arith.constant 1 : index
    %c0_4 = arith.constant 0 : index
    %7 = vector.load %arg4[%c1, %c0_4] : memref<2x512xf32, #tpu.memory_space<vmem>>, vector<1x512xf32>
    %8 = vector.broadcast %7 : vector<1x512xf32> to vector<8x512xf32>
    %9 = arith.mulf %3, %8 : vector<8x512xf32>
    %10 = vector.extract_strided_slice %6 {offsets = [0, 111], sizes = [8, 256], strides = [1, 1]} : vector<8x512xf32> to vector<8x256xf32>
    %11 = vector.extract_strided_slice %3 {offsets = [0, 112], sizes = [8, 256], strides = [1, 1]} : vector<8x512xf32> to vector<8x256xf32>
    %12 = vector.extract_strided_slice %9 {offsets = [0, 113], sizes = [8, 256], strides = [1, 1]} : vector<8x512xf32> to vector<8x256xf32>
    %13 = vector.extract_strided_slice %6 {offsets = [0, 127], sizes = [8, 256], strides = [1, 1]} : vector<8x512xf32> to vector<8x256xf32>
    %14 = vector.extract_strided_slice %3 {offsets = [0, 128], sizes = [8, 256], strides = [1, 1]} : vector<8x512xf32> to vector<8x256xf32>
    %15 = vector.extract_strided_slice %9 {offsets = [0, 129], sizes = [8, 256], strides = [1, 1]} : vector<8x512xf32> to vector<8x256xf32>
    %16 = vector.extract_strided_slice %6 {offsets = [0, 143], sizes = [8, 256], strides = [1, 1]} : vector<8x512xf32> to vector<8x256xf32>
    %17 = vector.extract_strided_slice %3 {offsets = [0, 144], sizes = [8, 256], strides = [1, 1]} : vector<8x512xf32> to vector<8x256xf32>
    %18 = vector.extract_strided_slice %9 {offsets = [0, 145], sizes = [8, 256], strides = [1, 1]} : vector<8x512xf32> to vector<8x256xf32>
    %19 = tpu.concatenate %10, %11, %12, %13, %14, %15, %16, %17, %18 in 0 : vector<8x256xf32>, vector<8x256xf32>, vector<8x256xf32>, vector<8x256xf32>, vector<8x256xf32>, vector<8x256xf32>, vector<8x256xf32>, vector<8x256xf32>, vector<8x256xf32> -> vector<72x256xf32>
    %c0_5 = arith.constant 0 : index
    %c0_6 = arith.constant 0 : index
    %20 = vector.load %arg3[%c0_5, %c0_6] : memref<32x72xf32, #tpu.memory_space<vmem>>, vector<32x72xf32>
    %cst_7 = arith.constant dense<0.000000e+00> : vector<32x256xf32>
    %21 = tpu.matmul %20, %19, %cst_7 {dimension_numbers = #tpu.dot_dimension_numbers<[1], [0], [0], [1], [0, 0, 1, 1], [], []>} : vector<32x72xf32>, vector<72x256xf32>, vector<32x256xf32> -> vector<32x256xf32>
    %22 = vector.extract_strided_slice %21 {offsets = [0, 0], sizes = [8, 256], strides = [1, 1]} : vector<32x256xf32> to vector<8x256xf32>
    %c0_8 = arith.constant 0 : index
    %c0_9 = arith.constant 0 : index
    %c0_10 = arith.constant 0 : index
    %23 = vector.load %arg5[%c0_8, %c0_9, %c0_10] : memref<4x256x1024xf32, #tpu.memory_space<vmem>>, vector<1x256x1024xf32>
    %24 = vector.shape_cast %23 : vector<1x256x1024xf32> to vector<256x1024xf32>
    %cst_11 = arith.constant dense<0.000000e+00> : vector<8x1024xf32>
    %25 = tpu.matmul %22, %24, %cst_11 {dimension_numbers = #tpu.dot_dimension_numbers<[1], [0], [0], [1], [0, 0, 1, 1], [], []>} : vector<8x256xf32>, vector<256x1024xf32>, vector<8x1024xf32> -> vector<8x1024xf32>
    %26 = vector.extract_strided_slice %21 {offsets = [8, 0], sizes = [8, 256], strides = [1, 1]} : vector<32x256xf32> to vector<8x256xf32>
    %c1_12 = arith.constant 1 : index
    %c0_13 = arith.constant 0 : index
    %c0_14 = arith.constant 0 : index
    %27 = vector.load %arg5[%c1_12, %c0_13, %c0_14] : memref<4x256x1024xf32, #tpu.memory_space<vmem>>, vector<1x256x1024xf32>
    %28 = vector.shape_cast %27 : vector<1x256x1024xf32> to vector<256x1024xf32>
    %cst_15 = arith.constant dense<0.000000e+00> : vector<8x1024xf32>
    %29 = tpu.matmul %26, %28, %cst_15 {dimension_numbers = #tpu.dot_dimension_numbers<[1], [0], [0], [1], [0, 0, 1, 1], [], []>} : vector<8x256xf32>, vector<256x1024xf32>, vector<8x1024xf32> -> vector<8x1024xf32>
    %30 = arith.addf %25, %29 : vector<8x1024xf32>
    %31 = vector.extract_strided_slice %21 {offsets = [16, 0], sizes = [8, 256], strides = [1, 1]} : vector<32x256xf32> to vector<8x256xf32>
    %c2 = arith.constant 2 : index
    %c0_16 = arith.constant 0 : index
    %c0_17 = arith.constant 0 : index
    %32 = vector.load %arg5[%c2, %c0_16, %c0_17] : memref<4x256x1024xf32, #tpu.memory_space<vmem>>, vector<1x256x1024xf32>
    %33 = vector.shape_cast %32 : vector<1x256x1024xf32> to vector<256x1024xf32>
    %cst_18 = arith.constant dense<0.000000e+00> : vector<8x1024xf32>
    %34 = tpu.matmul %31, %33, %cst_18 {dimension_numbers = #tpu.dot_dimension_numbers<[1], [0], [0], [1], [0, 0, 1, 1], [], []>} : vector<8x256xf32>, vector<256x1024xf32>, vector<8x1024xf32> -> vector<8x1024xf32>
    %35 = arith.addf %30, %34 : vector<8x1024xf32>
    %36 = vector.extract_strided_slice %21 {offsets = [24, 0], sizes = [8, 256], strides = [1, 1]} : vector<32x256xf32> to vector<8x256xf32>
    %c3 = arith.constant 3 : index
    %c0_19 = arith.constant 0 : index
    %c0_20 = arith.constant 0 : index
    %37 = vector.load %arg5[%c3, %c0_19, %c0_20] : memref<4x256x1024xf32, #tpu.memory_space<vmem>>, vector<1x256x1024xf32>
    %38 = vector.shape_cast %37 : vector<1x256x1024xf32> to vector<256x1024xf32>
    %cst_21 = arith.constant dense<0.000000e+00> : vector<8x1024xf32>
    %39 = tpu.matmul %36, %38, %cst_21 {dimension_numbers = #tpu.dot_dimension_numbers<[1], [0], [0], [1], [0, 0, 1, 1], [], []>} : vector<8x256xf32>, vector<256x1024xf32>, vector<8x1024xf32> -> vector<8x1024xf32>
    %40 = arith.addf %35, %39 : vector<8x1024xf32>
    %cst_22 = arith.constant dense<0.000000e+00> : vector<8xf32>
    %41 = vector.multi_reduction <add>, %40, %cst_22 [1] : vector<8x1024xf32> to vector<8xf32>
    %42 = vector.shape_cast %41 : vector<8xf32> to vector<8x1xf32>
    %cst_23 = arith.constant 9.765625E-4 : f32
    %43 = vector.broadcast %cst_23 : f32 to vector<8x1xf32>
    %44 = arith.mulf %42, %43 : vector<8x1xf32>
    %45 = arith.mulf %40, %40 : vector<8x1024xf32>
    %cst_24 = arith.constant dense<0.000000e+00> : vector<8xf32>
    %46 = vector.multi_reduction <add>, %45, %cst_24 [1] : vector<8x1024xf32> to vector<8xf32>
    %47 = vector.shape_cast %46 : vector<8xf32> to vector<8x1xf32>
    %cst_25 = arith.constant 9.765625E-4 : f32
    %48 = vector.broadcast %cst_25 : f32 to vector<8x1xf32>
    %49 = arith.mulf %47, %48 : vector<8x1xf32>
    %50 = arith.mulf %44, %44 : vector<8x1xf32>
    %51 = arith.subf %49, %50 : vector<8x1xf32>
    %52 = vector.broadcast %44 : vector<8x1xf32> to vector<8x1024xf32>
    %53 = arith.subf %40, %52 : vector<8x1024xf32>
    %cst_26 = arith.constant 9.99999974E-6 : f32
    %54 = vector.broadcast %cst_26 : f32 to vector<8x1xf32>
    %55 = arith.addf %51, %54 : vector<8x1xf32>
    %56 = math.rsqrt %55 : vector<8x1xf32>
    %57 = vector.broadcast %56 : vector<8x1xf32> to vector<8x1024xf32>
    %58 = arith.mulf %53, %57 : vector<8x1024xf32>
    %cst_27 = arith.constant 0.000000e+00 : f32
    %59 = vector.broadcast %cst_27 : f32 to vector<8x1024xf32>
    %60 = arith.maximumf %58, %59 : vector<8x1024xf32>
    %c0_28 = arith.constant 0 : index
    %c0_29 = arith.constant 0 : index
    %c0_30 = arith.constant 0 : index
    %61 = vector.load %arg6[%c0_28, %c0_29, %c0_30] : memref<1x16x1024xf32, #tpu.memory_space<vmem>>, vector<1x8x1024xf32>
    %62 = vector.shape_cast %61 : vector<1x8x1024xf32> to vector<8x1024xf32>
    %63 = vector.shape_cast %60 : vector<8x1024xf32> to vector<1x8x1024xf32>
    tpu.vector_store %arg6[%c0_28, %c0_29, %c0_30], %63 {strides = array<i32>} : memref<1x16x1024xf32, #tpu.memory_space<vmem>>, vector<1x8x1024xf32>,
    %c0_31 = arith.constant 0 : index
    %c0_32 = arith.constant 0 : index
    %c0_33 = arith.constant 0 : index
    %64 = vector.load %arg2[%c0_31, %c0_32, %c0_33] : memref<1x8x1024xf32, #tpu.memory_space<vmem>>, vector<1x8x1024xf32>
    %65 = vector.shape_cast %64 : vector<1x8x1024xf32> to vector<8x1024xf32>
    %c0_34 = arith.constant 0 : index
    %c8 = arith.constant 8 : index
    %c0_35 = arith.constant 0 : index
    %66 = vector.load %arg6[%c0_34, %c8, %c0_35] : memref<1x16x1024xf32, #tpu.memory_space<vmem>>, vector<1x8x1024xf32>
    %67 = vector.shape_cast %66 : vector<1x8x1024xf32> to vector<8x1024xf32>
    %68 = vector.shape_cast %65 : vector<8x1024xf32> to vector<1x8x1024xf32>
    tpu.vector_store %arg6[%c0_34, %c8, %c0_35], %68 {strides = array<i32>} : memref<1x16x1024xf32, #tpu.memory_space<vmem>>, vector<1x8x1024xf32>,
    return
  }
  func.func @transform_0(%arg0: i32) -> (i32, i32, i32) {
    %c0_i32 = arith.constant 0 : i32
    %c0_i32_0 = arith.constant 0 : i32
    %c0_i32_1 = arith.constant 0 : i32
    return %arg0, %c0_i32, %c0_i32_0 : i32, i32, i32
  }
  func.func @transform_1(%arg0: i32) -> (i32, i32, i32) {
    %c0_i32 = arith.constant 0 : i32
    %c0_i32_0 = arith.constant 0 : i32
    %c0_i32_1 = arith.constant 0 : i32
    return %arg0, %c0_i32, %c0_i32_0 : i32, i32, i32
  }
  func.func @transform_2(%arg0: i32) -> (i32, i32) {
    %c0_i32 = arith.constant 0 : i32
    %c0_i32_0 = arith.constant 0 : i32
    %c0_i32_1 = arith.constant 0 : i32
    return %c0_i32, %c0_i32_0 : i32, i32
  }
  func.func @transform_3(%arg0: i32) -> (i32, i32) {
    %c0_i32 = arith.constant 0 : i32
    %c0_i32_0 = arith.constant 0 : i32
    %c0_i32_1 = arith.constant 0 : i32
    return %c0_i32, %c0_i32_0 : i32, i32
  }
  func.func @transform_4(%arg0: i32) -> (i32, i32, i32) {
    %c0_i32 = arith.constant 0 : i32
    %c0_i32_0 = arith.constant 0 : i32
    %c0_i32_1 = arith.constant 0 : i32
    %c0_i32_2 = arith.constant 0 : i32
    return %c0_i32, %c0_i32_0, %c0_i32_1 : i32, i32, i32
  }
  func.func @transform_5(%arg0: i32) -> (i32, i32, i32) {
    %c0_i32 = arith.constant 0 : i32
    %c0_i32_0 = arith.constant 0 : i32
    %c0_i32_1 = arith.constant 0 : i32
    return %arg0, %c0_i32, %c0_i32_0 : i32, i32, i32
  }
}

</mosaic_0001>

<bundles_post_ra>
// kernel: tpu_custom_call.1
= control target key start
LH: loop header
LB: loop body
LE: loop exit
PB: predicated region body
PF: predicated region fallthrough
CT: control target
= control target key end

     0   :  { %s3852_s0 = inlined_call_operand.hbm [shape: f32[2,8,256], index: 0, kind: input, shape index: {}]   ;;  %s3853_s1 = inlined_call_operand.hbm [shape: f32[2,8,1024], index: 1, kind: input, shape index: {}]   ;;  %s3854_s2 = inlined_call_operand.hbm [shape: f32[32,72], index: 2, kind: input, shape index: {}]   ;;  %s3855_s3 = inlined_call_operand.hbm [shape: f32[2,512], index: 3, kind: input, shape index: {}]   ;;  %s3856_s4 = inlined_call_operand.hbm [shape: f32[4,256,1024], index: 4, kind: input, shape index: {}]   ;;  %s3857_s5 = inlined_call_operand.hbm [shape: f32[2,16,1024], index: 5, kind: output, shape index: {}]  }
   0x1   :  { %3862 = sst [smem:[#allocation17_spill]] %s3852_s0 }
   0x2   :  { %10 = vsyncpa [#allocation3], 0 }
   0x3   :  { %12 = vsyncpa [#allocation3 + $0x1], 0 }
   0x4   :  { %13 = vsyncpa [#allocation6], 0 }
   0x5   :  { %15 = vsyncpa [#allocation6 + $0x1], 0 }
   0x6   :  { %16 = vsyncpa [#allocation9], 0 }
   0x7   :  { %17 = vsyncpa [#allocation4], 0 }
   0x8   :  { %19 = vsyncpa [#allocation4 + $0x1], 0  ;;  %s3444_s18 = smov 0   ;;  %s3446_s19 = smov 0  }
   0x9   :  { %s3448_s20 = smov 0   ;;  %s3450_s21 = smov 0  }
   0xa LB: > { %s3465_s22 = sadd.s32 4294967295, %s3390_s21   ;;  %s3049_s23 = sadd.s32 4294967294, %s3390_s21   ;;  %s3390_s21 = sphi %s3450_s21, %s3884_s21   ;;  %s3386_s20 = sphi %s3448_s20, %s3883_s20   ;;  %s3382_s19 = sphi %s3446_s19, %s3882_s19   ;;  %s3378_s18 = sphi %s3444_s18, %s3881_s18  }
   0xb   : > { %p45_p0 = scmp.ne.s32.totalorder %s3382_s19, %s3378_s18  ;;  %p3858_p1 = scmp.eq.s32.totalorder %s3465_s22, 0 }
   0xc   : > { %p164_p3 = scmp.eq.s32.totalorder %s3049_s23, 1  ;;  %p3050_p5 = scmp.ge.s32.totalorder %s3390_s21, 1 }
   0xd   : > { %p3474_p4 = por %p3858_p1, %p45_p0  ;;  %p171_p7 = scmp.lt.s32.totalorder %s3390_s21, 3 }
   0xe   : > { %p3479_p6 = por %p164_p3, %p45_p0  ;;  %s3392_s27 = smov [#allocation7]  }
   0xf   : > { %s3863_s24 = scalar_select %p3474_p4, 1, 0 }
  0x10   : > { %s3864_s25 = scalar_select %p3479_p6, 1, 0 }
  0x11   : > { %p3484_p8 = pnand %p3050_p5, %p171_p7  ;;  %s183_s28 = sshll.u32 %s3392_s27, 4  ;;  %s184_s28 = int_to_ptr.vmem [resolvable:$true] %s183_s28 }
  0x12   : > { %s3393_s30 = smov [#allocation8]   ;;  %s3394_s7 = smov [#allocation10]  }
  0x13   : > { %s3865_s26 = scalar_select %p3484_p8, 1, 0 }
  0x14   : > { %p3098_p9 = pneg %p3484_p8  ;;  %s197_s6 = sshll.u32 %s3393_s30, 4  ;;  %s198_s6 = int_to_ptr.vmem [resolvable:$true] %s197_s6 }
  0x15   : > { %s207_s8 = sshll.u32 %s3394_s7, 4  ;;  %s3191_s9 = scalar_lea.vmem %s184_s28, 512  ;;  %s208_s8 = int_to_ptr.vmem [resolvable:$true] %s207_s8 }
  0x16   : > { %p3493_p11 = pnand %p3098_p9, %p3858_p1  ;;  %p3192_p13 = scmp.ne.s32.totalorder %s184_s28, %s3191_s9 }
  0x17   : > { %p3199_p5 = scmp.lt.s32.totalorder %s184_s28, %s184_s28  ;;  %p3200_p7 = scmp.lt.s32.totalorder %s3191_s9, %s3191_s9 }
  0x18   : > { %p3182_p12 = pneg %p3493_p11 }
  0x19   : > { %p3201_p9 = por %p3200_p7, %p3199_p5 }
  0x1a   : > { %p3194_p0 = pnand %p3192_p13, %p3182_p12 }
  0x1c   : > { %p3195_p3 = pneg %p3194_p0 }
  0x1e   : > { %p3202_p10 = pnand %p3201_p9, %p3195_p3 }
  0x20   : > { %3205 = shalt.err (!%p3202_p10)
}
  0x21   : > { %s3395_s10 = smov 128   ;;  %s3396_s11 = smov 8  }
  0x22   : > { %3101 = dma.hbm_to_vmem [thread:$0]  (!%p3493_p11), %s3854_s2, 512, %s184_s28, [#allocation6], %s3395_s10, %s3395_s10, %s3396_s11  }
  0x23   : > { %s3217_s14 = scalar_lea.vmem %s198_s6, 128  ;;  %p3225_p2 = scmp.lt.s32.totalorder %s198_s6, %s198_s6 }
  0x24   : > { %p3218_p1 = scmp.ne.s32.totalorder %s198_s6, %s3217_s14  ;;  %p3226_p6 = scmp.lt.s32.totalorder %s3217_s14, %s3217_s14 }
  0x26   : > { %p3220_p13 = pnand %p3218_p1, %p3182_p12  ;;  %p3227_p5 = por %p3226_p6, %p3225_p2 }
  0x28   : > { %p3221_p0 = pneg %p3220_p13 }
  0x2a   : > { %p3228_p3 = pnand %p3227_p5, %p3221_p0 }
  0x2c   : > { %3231 = shalt.err (!%p3228_p3)
}
  0x2d   : > { %3104 = dma.hbm_to_vmem [thread:$0]  (!%p3493_p11), %s3855_s3, 128, %s198_s6, [#allocation9]  }
  0x2e   : > { %s3243_s17 = scalar_lea.vmem %s208_s8, 131072  ;;  %p3251_p9 = scmp.lt.s32.totalorder %s208_s8, %s208_s8 }
  0x2f   : > { %p3244_p10 = scmp.ne.s32.totalorder %s208_s8, %s3243_s17  ;;  %p3252_p13 = scmp.lt.s32.totalorder %s3243_s17, %s3243_s17 }
  0x31   : > { %p3246_p7 = pnand %p3244_p10, %p3182_p12  ;;  %p3253_p4 = por %p3252_p13, %p3251_p9 }
  0x33   : > { %p3247_p1 = pneg %p3246_p7 }
  0x35   : > { %p3254_p2 = pnand %p3253_p4, %p3247_p1 }
  0x37   : > { %3257 = shalt.err (!%p3254_p2)
}
  0x38   : > { %s3397_s23 = smov 1024   ;;  %s3398_s27 = smov 64  }
  0x39   : > { %3107 = dma.hbm_to_vmem [thread:$0]  (!%p3493_p11), %s3856_s4, 131072, %s208_s8, [#allocation9], %s3397_s23, %s3397_s23, %s3398_s27  }
  0x3a   : > { %s3524_s6 = sadd.s32 1, %s3390_s21   ;;  %s32_s9 = sadd.s32 1, %s3386_s20 }
  0x3b   : > { %s29_s7 = ssub.s32 %s3390_s21, %s3524_s6  ;;  %p39_p6 = scmp.ne.s32.totalorder %s3386_s20, %s3382_s19 }
  0x3c   : > { %p30_p4 = scmp.eq.s32.totalorder %s29_s7, 0  ;;  %p40_p12 = scmp.eq.s32.totalorder %s3390_s21, 0 }
  0x3d   : > { %p3122_p0 = scmp.lt.s32.totalorder %s3390_s21, 2  ;;  %p3867_p3 = scmp.eq.s32.totalorder %s3465_s22, 1 }
  0x3e   : > { %s3534_s10 = scalar_select %p30_p4, %s3386_s20, %s32_s9  }
  0x3f   : > { %p41_p5 = por %p40_p12, %p39_p6  ;;  %p3538_p10 = por %p3867_p3, %p39_p6 }
  0x40   : > { %s3543_s11 = sand.u32 1, %s3386_s20   ;;  %s3077_s8 = sshll.u32 %s3390_s21, 8 }
  0x41   : > { %s3868_s29 = scalar_select %p3538_p10, 1, 0 }
  0x42   : > { %s3055_s12 = sshll.u32 %s3543_s11, 4  ;;  %s3869_s0 = sld [smem:[#allocation17_spill]] }
  0x43   : > { %s225_s16 = scalar_lea.vmem [#allocation2], %s3055_s12  ;;  %p3552_p11 = pnand %p3122_p0, %p41_p5 }
  0x44   : > { %s233_s17 = sshll.u32 %s225_s16, 4  ;;  %s222_s28 = scalar_lea.sflag [#allocation3], %s3543_s11  ;;  %s234_s17 = int_to_ptr.vmem [resolvable:$true] %s233_s17 }
  0x45   : > { %p3260_p1 = pneg %p3552_p11 }
  0x48   : > { %s3550_s15 = scalar_lea.hbm %s3869_s0, %s3077_s8  ;;  %s3263_s8 = scalar_lea.hbm %s3869_s0, 512 }
  0x49   : > { %s3258_s30 = scalar_lea.hbm %s3550_s15, 256  ;;  %p3264_p2 = scmp.lt.s32.totalorder %s3550_s15, %s3869_s0 }
  0x4a   : > { %p3259_p7 = scmp.ne.s32.totalorder %s3550_s15, %s3258_s30  ;;  %p3265_p4 = scmp.lt.s32.totalorder %s3263_s8, %s3258_s30 }
  0x4c   : > { %p3261_p9 = pnand %p3260_p1, %p3259_p7  ;;  %p3266_p6 = por %p3265_p4, %p3264_p2 }
  0x4e   : > { %p3262_p13 = pneg %p3261_p9 }
  0x50   : > { %p3267_p12 = pnand %p3266_p6, %p3262_p13 }
  0x52   : > { %3270 = shalt.err (!%p3267_p12)
}
  0x53   : > { %s3271_s14 = scalar_lea.vmem %s234_s17, 256  ;;  %s3399_s16 = smov [#allocation2]  }
  0x54   : > { %p3272_p0 = scmp.ne.s32.totalorder %s234_s17, %s3271_s14  ;;  %s3276_s27 = sshll.u32 %s3399_s16, 4  ;;  %s3277_s27 = int_to_ptr.vmem [resolvable:$false] %s3276_s27 }
  0x55   : > { %s3278_s7 = scalar_lea.vmem %s3277_s27, 512  ;;  %p3279_p7 = scmp.lt.s32.totalorder %s234_s17, %s3277_s27 }
  0x56   : > { %p3274_p5 = pnand %p3272_p0, %p3260_p1  ;;  %p3280_p9 = scmp.lt.s32.totalorder %s3278_s7, %s3271_s14 }
  0x58   : > { %p3275_p3 = pneg %p3274_p5  ;;  %p3281_p10 = por %p3280_p9, %p3279_p7 }
  0x5a   : > { %p3282_p8 = pnand %p3281_p10, %p3275_p3 }
  0x5c   : > { %3285 = shalt.err (!%p3282_p8)
}
  0x5d   : > { %3111 = dma.hbm_to_vmem [thread:$0]  (!%p3552_p11), %s3550_s15, 256, %s234_s17, %s222_s28  }
  0x5e   : > { %s3058_s30 = sshll.u32 %s3543_s11, 6  ;;  %s3078_s9 = sshll.u32 %s3390_s21, 10 }
  0x5f   : > { %s3583_s13 = scalar_lea.hbm %s3853_s1, %s3078_s9  ;;  %s244_s27 = scalar_lea.vmem [#allocation5], %s3058_s30 }
  0x60   : > { %s252_s14 = sshll.u32 %s244_s27, 4  ;;  %s3871_s16 = sand.u32 1, %s3390_s21   ;;  %s253_s14 = int_to_ptr.vmem [resolvable:$true] %s252_s14 }
  0x61   : > { %s241_s7 = scalar_lea.sflag [#allocation6], %s3871_s16  ;;  %s3286_s0 = scalar_lea.hbm %s3583_s13, 1024 }
  0x62   : > { %p3287_p8 = scmp.ne.s32.totalorder %s3583_s13, %s3286_s0  ;;  %s3291_s17 = scalar_lea.hbm %s3853_s1, 2048 }
  0x63   : > { %p3292_p2 = scmp.lt.s32.totalorder %s3583_s13, %s3853_s1  ;;  %p3293_p4 = scmp.lt.s32.totalorder %s3291_s17, %s3286_s0 }
  0x64   : > { %p3289_p10 = pnand %p3287_p8, %p3260_p1 }
  0x65   : > { %p3294_p6 = por %p3293_p4, %p3292_p2 }
  0x66   : > { %p3290_p13 = pneg %p3289_p10 }
  0x68   : > { %p3295_p12 = pnand %p3294_p6, %p3290_p13 }
  0x6a   : > { %3298 = shalt.err (!%p3295_p12)
}
  0x6b   : > { %s3299_s30 = scalar_lea.vmem %s253_s14, 1024  ;;  %s3400_s8 = smov [#allocation5]  }
  0x6c   : > { %p3300_p0 = scmp.ne.s32.totalorder %s253_s14, %s3299_s30  ;;  %s3304_s12 = sshll.u32 %s3400_s8, 4  ;;  %s3305_s12 = int_to_ptr.vmem [resolvable:$false] %s3304_s12 }
  0x6d   : > { %s3306_s27 = scalar_lea.vmem %s3305_s12, 2048  ;;  %p3307_p7 = scmp.lt.s32.totalorder %s253_s14, %s3305_s12 }
  0x6e   : > { %p3302_p5 = pnand %p3300_p0, %p3260_p1  ;;  %p3308_p9 = scmp.lt.s32.totalorder %s3306_s27, %s3299_s30 }
  0x70   : > { %p3303_p3 = pneg %p3302_p5  ;;  %p3309_p8 = por %p3308_p9, %p3307_p7 }
  0x72   : > { %p3310_p10 = pnand %p3309_p8, %p3303_p3 }
  0x74   : > { %3313 = shalt.err (!%p3310_p10)
}
  0x75   : > { %3114 = dma.hbm_to_vmem [thread:$0]  (!%p3552_p11), %s3583_s13, 1024, %s253_s14, %s241_s7  }
  0x76   : > { %p3872_p13 = scmp.ne.s32.totalorder %s3865_s26, 0 }
  0x77   : > { %s3608_s0 = sand.u32 (!%p3872_p13), 1, %s3382_s19   ;;  %p3873_p1 = scmp.ne.s32.totalorder (!%p3872_p13), %s3863_s24, 0 }
  0x78   : > { %261 = sbr.rel (%p3872_p13) target bundleno = 1503 (0x5df), region = 40  ;;  %s3062_s16 = sshll.u32 (!%p3872_p13), %s3608_s0, 4 }
  0x79   : > { %s264_s11 = scalar_lea.sflag (!%p3872_p13), [#allocation3], %s3608_s0  ;;  %s267_s15 = scalar_lea.vmem (!%p3872_p13), [#allocation2], %s3062_s16 }
  0x7d   : > { %3357 = dma.done.wait (%p3873_p1), %s264_s11, 256  }
  0x7e   : > { %3359 = vsyncadd (%p3873_p1), %s264_s11, 4294967040  ;;  %s272_s23 = sand.u32 1, %s3465_s22   ;;  %s3063_s26 = sshll.u32 %s3608_s0, 6 }
  0x7f   : > { %s273_s13 = scalar_lea.sflag [#allocation6], %s272_s23  ;;  %s3618_s14 = scalar_lea.vmem [#allocation5], %s3063_s26 }
  0x80   : > { %3361 = dma.done.wait (%p3873_p1), %s273_s13, 1024  }
  0x81   : > { %3363 = vsyncadd (%p3873_p1), %s273_s13, 4294966272  ;;  %p3874_p11 = scmp.eq.s32.totalorder %s3465_s22, 0 }
  0x83   : > { %3365 = dma.done.wait (%p3874_p11), [#allocation6], 512   ;;  %p3875_p2 = pmov %p3874_p11 }
  0x85   : > { %3367 = vsyncadd (%p3875_p2), [#allocation6], 4294966784  ;;  %p3876_p4 = pmov %p3875_p2 }
  0x86   : > { %p3877_p6 = pmov %p3875_p2 }
  0x87   : > { %3369 = dma.done.wait (%p3876_p4), [#allocation9], 131200  }
  0x88   : > { %3371 = vsyncadd (%p3877_p6), [#allocation9], 4294836096  ;;  %v324_v0 = vlaneseq  ;;  %v3401_v1 = vmov 0.0   ;;  %s3402_s7 = smov 95   ;;  %v321_v6 = vld [vmem:[%s267_s15 + $0x8] sm:$0xff]  ;;  %v320_v7 = vld [vmem:[%s267_s15] sm:$0xff] }
  0x89   : > { %441 = vrot.lane.b32.xlu1 %v3401_v1, %s3402_s7  ;;  %627 = vmatprep.mubr.f32.mxu0 %v3401_v1  ;;  %v349_v8 = vld [vmem:[#allocation8 + $0x1] ss:$2 sm:$0xf]  ;;  %v322_v11 = vld [vmem:[#allocation8] ss:$2 sm:$0xf] }
  0x8a   : > { %v325_v2 = vshrl.u32 %v324_v0, 7  ;;  %439 = vrot.lane.b32.xlu0 %v321_v6, %s3402_s7  ;;  %s3403_s24 = smov 94   ;;  %s3404_s17 = smov 96   ;;  %vm443_vm0 = vcmask 777216   ;;  %vm384_vm1 = vcmask 1039360   ;;  %vm415_vm2 = vcmask 908288  }
  0x8b   : > { %s3405_s28 = smov 110   ;;  %s3406_s9 = smov 111   ;;  %vm452_vm3 = vcmask 769024   ;;  %vm434_vm4 = vcmask 785408   ;;  %vm424_vm5 = vcmask 900096   ;;  %vm408_vm6 = vcmask 916480  }
  0x8c   : > { %v338_v3 = vsub.s32 3, %v325_v2  ;;  %v330_v4 = vsub.s32 1, %v325_v2  ;;  %v334_v5 = vsub.s32 2, %v325_v2  ;;  %v326_v22 = vsub.s32 0, %v325_v2  ;;  %s3407_s30 = smov 112   ;;  %s3408_s8 = smov 126  }
  0x8d   : > { %437 = vrot.lane.b32.xlu1 %v320_v7, %s3402_s7  ;;  %s3409_s12 = smov 127   ;;  %s3410_s27 = smov 17   ;;  %vm396_vm7 = vcmask 1031168   ;;  %v1030_v0 = vld [vmem:[#allocation10 + $0xbc8] sm:$0xff]  ;;  %v1029_v2 = vld [vmem:[#allocation10 + $0xbc0] sm:$0xff]  ;;  %vm513_vm8 = vcmask 138240  }
  0x8e   : > { %v366_v9 = vrot.slane %v349_v8, %v338_v3  ;;  %v358_v10 = vrot.slane %v349_v8, %v330_v4  ;;  %v362_v12 = vrot.slane %v349_v8, %v334_v5  ;;  %v335_v13 = vrot.slane %v322_v11, %v334_v5  ;;  %1165 = vmatprep.subr.mxu1 %v1030_v0  ;;  %v1021_v5 = vld [vmem:[#allocation10 + $0xb80] sm:$0xff]  ;;  %s3067_s16 = sshll.u32 %s3608_s0, 7  ;;  %s3079_s15 = sshll.u32 %s3465_s22, 11 }
  0x8f   : > { %v331_v18 = vrot.slane %v322_v11, %v330_v4  ;;  %v339_v20 = vrot.slane %v322_v11, %v338_v3  ;;  %v354_v23 = vrot.slane %v349_v8, %v326_v22  ;;  %v327_v24 = vrot.slane %v322_v11, %v326_v22  ;;  %v1022_v3 = vld [vmem:[#allocation10 + $0xb88] sm:$0xff]  ;;  %1166 = vmatpush1.msra.mxu1 %v1029_v2  ;;  %v997_v11 = vld [vmem:[#allocation10 + $0xac0] sm:$0xff]  ;;  %s3777_s11 = scalar_lea.vmem [#allocation11], %s3067_s16  ;;  %s3799_s13 = scalar_lea.hbm %s3857_s5, %s3079_s15 }
  0x90   : > { %v374_v14 = vmul.f32 0.0, %v366_v9  ;;  %v372_v15 = vmul.f32 %v358_v10, %v320_v7  ;;  %v3634_v16 = vmul.f32 %v335_v13, %v321_v6  ;;  %v373_v17 = vmul.f32 %v362_v12, %v321_v6  ;;  %1167 = vmatprep.subr.mxu1 %v1022_v3  ;;  %v1006_v8 = vld [vmem:[#allocation10 + $0xb08] sm:$0xff]  ;;  %v1005_v9 = vld [vmem:[#allocation10 + $0xb00] sm:$0xff]  ;;  %s2925_s23 = sshll.u32 %s3777_s11, 4  ;;  %p3878_p0 = scmp.ne.s32.totalorder %s3868_s29, 0  ;;  %s3801_s23 = int_to_ptr.vmem [resolvable:$true] %s2925_s23 }
  0x91   : > { %v3637_v19 = vmul.f32 %v331_v18, %v320_v7  ;;  %v347_v21 = vmul.f32 0.0, %v339_v20  ;;  %v371_v25 = vmul.f32 0.0, %v354_v23  ;;  %v3642_v26 = vmul.f32 0.0, %v327_v24  ;;  %1168 = vmatpush1.msra.mxu1 %v1021_v5  ;;  %v998_v10 = vld [vmem:[#allocation10 + $0xac8] sm:$0xff]  ;;  %v989_v13 = vld [vmem:[#allocation10 + $0xa80] sm:$0xff]  ;;  %s3314_s7 = scalar_lea.vmem %s3801_s23, 2048 }
  0x92   : > { %450 = vrot.lane.b32.xlu1 %v374_v14, %s3403_s24  ;;  %446 = vrot.lane.b32.xlu0 %v372_v15, %s3403_s24  ;;  %v990_v12 = vld [vmem:[#allocation10 + $0xa88] sm:$0xff]  ;;  %v949_v23 = vld [vmem:[#allocation10 + $0x940] sm:$0xff]  ;;  %vm550_vm9 = vcmask 588800   ;;  %p3315_p12 = scmp.ne.s32.totalorder %s3801_s23, %s3314_s7 }
  0x93   : > { %v966_v18 = vld [vmem:[#allocation10 + $0x9c8] sm:$0xff] }
  0x94   : > { %v958_v20 = vld [vmem:[#allocation10 + $0x988] sm:$0xff]  ;;  %p3316_p5 = pnand %p3315_p12, %p3878_p0 }
  0x95   : > { %v950_v22 = vld [vmem:[#allocation10 + $0x948] sm:$0xff] }
  0x96   : > { %430 = vrot.lane.b32.xlu1 %v3634_v16, %s3404_s17  ;;  %448 = vrot.lane.b32.xlu0 %v373_v17, %s3403_s24  ;;  %v942_v24 = vld [vmem:[#allocation10 + $0x908] sm:$0xff]  ;;  %p3317_p3 = pneg %p3316_p5  ;;  %s3411_s24 = smov [#allocation11]  }
  0x9a   : > { %418 = vrot.lane.b32.xlu1 %v372_v15, %s3405_s28  ;;  %428 = vrot.lane.b32.xlu0 %v3637_v19, %s3404_s17 }
  0x9e   : > { %422 = vrot.lane.b32.xlu1 %v374_v14, %s3405_s28  ;;  %432 = vrot.lane.b32.xlu0 %v347_v21, %s3404_s17  ;;  %v982_v14 = vld [vmem:[#allocation10 + $0xa48] sm:$0xff]  ;;  %v957_v21 = vld [vmem:[#allocation10 + $0x980] sm:$0xff]  ;;  %s3318_s17 = sshll.u32 %s3411_s24, 4  ;;  %s3319_s17 = int_to_ptr.vmem [resolvable:$false] %s3318_s17 }
  0x9f   : > { %p3321_p7 = scmp.lt.s32.totalorder %s3801_s23, %s3319_s17 }
  0xa2   : > { %413 = vrot.lane.b32.xlu1 %v321_v6, %s3406_s9  ;;  %420 = vrot.lane.b32.xlu0 %v373_v17, %s3405_s28  ;;  %s3320_s28 = scalar_lea.vmem %s3319_s17, 4096 }
  0xa3   : > { %p3322_p9 = scmp.lt.s32.totalorder %s3320_s28, %s3314_s7 }
  0xa5   : > { %p3323_p8 = por %p3322_p9, %p3321_p7 }
  0xa6   : > { %406 = vrot.lane.b32.xlu1 %v3634_v16, %s3407_s30  ;;  %411 = vrot.lane.b32.xlu0 %v320_v7, %s3406_s9 }
  0xa7   : > { %p3324_p10 = pnand %p3323_p8, %p3317_p3 }
  0xaa   : > { %392 = vrot.lane.b32.xlu1 %v372_v15, %s3408_s8  ;;  %404 = vrot.lane.b32.xlu0 %v3637_v19, %s3407_s30  ;;  %v981_v15 = vld [vmem:[#allocation10 + $0xa40] sm:$0xff] }
  0xae   : > { %390 = vrot.lane.b32.xlu1 %v371_v25, %s3408_s8  ;;  %402 = vrot.lane.b32.xlu0 %v3642_v26, %s3407_s30  ;;  %v941_v25 = vld [vmem:[#allocation10 + $0x900] sm:$0xff] }
  0xb2   : > { %382 = vrot.lane.b32.xlu1 %v321_v6, %s3409_s12  ;;  %394 = vrot.lane.b32.xlu0 %v373_v17, %s3408_s8  ;;  %v1014_v6 = vld [vmem:[#allocation10 + $0xb48] sm:$0xff]  ;;  %v973_v17 = vld [vmem:[#allocation10 + $0xa00] sm:$0xff] }
  0xb3   : > { %1169 = vmatprep.subr.mxu1 %v1014_v6 }
  0xb6   : > { %380 = vrot.lane.b32.xlu0 %v320_v7, %s3409_s12  ;;  %v1013_v7 = vld [vmem:[#allocation10 + $0xb40] sm:$0xff] }
  0xb7   : > { %1170 = vmatpush1.msra.mxu1 %v1013_v7 }
  0xb8   : > { %1171 = vmatprep.subr.mxu1 %v1006_v8 }
  0xb9   : > { %1172 = vmatpush1.msra.mxu1 %v1005_v9 }
  0xba   : > { %378 = vrot.lane.b32.xlu0 %v3401_v1, %s3409_s12  ;;  %1173 = vmatprep.subr.mxu1 %v998_v10 }
  0xbb   : > { %1174 = vmatpush1.msra.mxu1 %v997_v11 }
  0xbc   : > { %1175 = vmatprep.subr.mxu1 %v990_v12 }
  0xbd   : > { %1176 = vmatpush1.msra.mxu1 %v989_v13 }
  0xbe   : > { %1177 = vmatprep.subr.mxu1 %v982_v14 }
  0xbf   : > { %1178 = vmatpush1.msra.mxu1 %v981_v15 }
  0xfb   : > { %v442_v27 = vpop.permute.xlu1 %441 }
  0xfc   : > { %v440_v28 = vpop.permute.xlu0 %439 }
  0xfd   : > { %v445_v50 = vsel %vm443_vm0, %v440_v28, %v442_v27  ;;  %v933_v27 = vld [vmem:[#allocation10 + $0x8c0] sm:$0xff] }
  0xff   : > { %v438_v29 = vpop.permute.xlu1 %437 }
 0x100   : > { %501 = vrot.lane.b32.xlu0 %v438_v29, %s3410_s27  ;;  %v444_v42 = vsel %vm443_vm0, %v438_v29, %v440_v28  ;;  %v926_v28 = vld [vmem:[#allocation10 + $0x888] sm:$0xff]  ;;  %v925_v29 = vld [vmem:[#allocation10 + $0x880] sm:$0xff] }
 0x104   : > { %v451_v30 = vpop.permute.xlu1 %450  ;;  %v447_v31 = vpop.permute.xlu0 %446 }
 0x108   : > { %v431_v32 = vpop.permute.xlu1 %430  ;;  %v449_v33 = vpop.permute.xlu0 %448 }
 0x109   : > { %v454_v53 = vsel %vm452_vm3, %v449_v33, %v451_v30  ;;  %v453_v55 = vsel %vm452_vm3, %v447_v31, %v449_v33  ;;  %v918_v30 = vld [vmem:[#allocation10 + $0x848] sm:$0xff]  ;;  %v909_v33 = vld [vmem:[#allocation10 + $0x800] sm:$0xff] }
 0x10c   : > { %v419_v34 = vpop.permute.xlu1 %418  ;;  %v429_v35 = vpop.permute.xlu0 %428 }
 0x10d   : > { %v435_v57 = vsel %vm434_vm4, %v429_v35, %v431_v32 }
 0x110   : > { %v423_v36 = vpop.permute.xlu1 %422  ;;  %v433_v37 = vpop.permute.xlu0 %432 }
 0x111   : > { %v436_v54 = vsel %vm434_vm4, %v431_v32, %v433_v37  ;;  %v910_v32 = vld [vmem:[#allocation10 + $0x808] sm:$0xff]  ;;  %v1149_v37 = vld [vmem:[#allocation10 + $0xf80] sm:$0xff] }
 0x114   : > { %v414_v38 = vpop.permute.xlu1 %413  ;;  %v421_v39 = vpop.permute.xlu0 %420 }
 0x115   : > { %487 = vrot.lane.b32.xlu0 %v414_v38, %s3410_s27  ;;  %v425_v56 = vsel %vm424_vm5, %v419_v34, %v421_v39  ;;  %v426_v59 = vsel %vm424_vm5, %v421_v39, %v423_v36  ;;  %v1150_v36 = vld [vmem:[#allocation10 + $0xf88] sm:$0xff]  ;;  %v1141_v39 = vld [vmem:[#allocation10 + $0xf40] sm:$0xff] }
 0x118   : > { %v407_v40 = vpop.permute.xlu1 %406  ;;  %v412_v41 = vpop.permute.xlu0 %411 }
 0x119   : > { %503 = vrot.lane.b32.xlu0 %v444_v42, %s3410_s27  ;;  %483 = vrot.lane.b32.xlu1 %v412_v41, %s3410_s27  ;;  %v416_v52 = vsel %vm415_vm2, %v412_v41, %v414_v38  ;;  %v1142_v38 = vld [vmem:[#allocation10 + $0xf48] sm:$0xff]  ;;  %v1133_v41 = vld [vmem:[#allocation10 + $0xf00] sm:$0xff] }
 0x11a   : > { %v1126_v42 = vld [vmem:[#allocation10 + $0xec8] sm:$0xff] }
 0x11c   : > { %v393_v43 = vpop.permute.xlu1 %392  ;;  %v405_v44 = vpop.permute.xlu0 %404 }
 0x11d   : > { %v410_v58 = vsel %vm408_vm6, %v405_v44, %v407_v40 }
 0x120   : > { %v391_v45 = vpop.permute.xlu1 %390  ;;  %v403_v46 = vpop.permute.xlu0 %402 }
 0x121   : > { %v409_v60 = vsel %vm408_vm6, %v403_v46, %v405_v44  ;;  %v397_v4 = vsel %vm396_vm7, %v391_v45, %v393_v43  ;;  %v1118_v44 = vld [vmem:[#allocation10 + $0xe88] sm:$0xff]  ;;  %v1117_v45 = vld [vmem:[#allocation10 + $0xe80] sm:$0xff] }
 0x122   : > { %v1110_v46 = vld [vmem:[#allocation10 + $0xe48] sm:$0xff] }
 0x124   : > { %v383_v47 = vpop.permute.xlu1 %382  ;;  %v395_v48 = vpop.permute.xlu0 %394 }
 0x125   : > { %469 = vrot.lane.b32.xlu1 %v383_v47, %s3410_s27  ;;  %v398_v63 = vsel %vm396_vm7, %v393_v43, %v395_v48  ;;  %v1125_v43 = vld [vmem:[#allocation10 + $0xec0] sm:$0xff] }
 0x128   : > { %v381_v49 = vpop.permute.xlu0 %380 }
 0x129   : > { %505 = vrot.lane.b32.xlu1 %v445_v50, %s3410_s27  ;;  %v386_v51 = vsel %vm384_vm1, %v381_v49, %v383_v47  ;;  %v1109_v47 = vld [vmem:[#allocation10 + $0xe40] sm:$0xff]  ;;  %v1094_v50 = vld [vmem:[#allocation10 + $0xdc8] sm:$0xff] }
 0x12a   : > { %467 = vrot.lane.b32.xlu0 %v386_v51, %s3410_s27  ;;  %v1093_v51 = vld [vmem:[#allocation10 + $0xdc0] sm:$0xff] }
 0x12c   : > { %v379_v61 = vpop.permute.xlu0 %378 }
 0x12d   : > { %485 = vrot.lane.b32.xlu1 %v416_v52, %s3410_s27  ;;  %v385_v62 = vsel %vm384_vm1, %v379_v61, %v381_v49  ;;  %v1101_v49 = vld [vmem:[#allocation10 + $0xe00] sm:$0xff]  ;;  %v1086_v52 = vld [vmem:[#allocation10 + $0xd88] sm:$0xff] }
 0x12e   : > { %489 = vrot.lane.b32.xlu0 %v419_v34, %s3410_s27  ;;  %v1158_v34 = vld [vmem:[#allocation10 + $0xfc8] sm:$0xff] }
 0x131   : > { %507 = vrot.lane.b32.xlu1 %v447_v31, %s3410_s27  ;;  %v917_v31 = vld [vmem:[#allocation10 + $0x840] sm:$0xff] }
 0x132   : > { %475 = vrot.lane.b32.xlu0 %v395_v48, %s3410_s27  ;;  %v1102_v48 = vld [vmem:[#allocation10 + $0xe08] sm:$0xff] }
 0x135   : > { %495 = vrot.lane.b32.xlu1 %v429_v35, %s3410_s27  ;;  %v1157_v35 = vld [vmem:[#allocation10 + $0xfc0] sm:$0xff] }
 0x136   : > { %511 = vrot.lane.b32.xlu0 %v454_v53, %s3410_s27  ;;  %v1085_v53 = vld [vmem:[#allocation10 + $0xd80] sm:$0xff] }
 0x139   : > { %481 = vrot.lane.b32.xlu1 %v407_v40, %s3410_s27  ;;  %v1134_v40 = vld [vmem:[#allocation10 + $0xf08] sm:$0xff] }
 0x13a   : > { %499 = vrot.lane.b32.xlu0 %v436_v54, %s3410_s27  ;;  %v1078_v54 = vld [vmem:[#allocation10 + $0xd48] sm:$0xff] }
 0x13d   : > { %509 = vrot.lane.b32.xlu1 %v453_v55, %s3410_s27  ;;  %v1077_v55 = vld [vmem:[#allocation10 + $0xd40] sm:$0xff] }
 0x13e   : > { %491 = vrot.lane.b32.xlu0 %v425_v56, %s3410_s27  ;;  %v1070_v56 = vld [vmem:[#allocation10 + $0xd08] sm:$0xff] }
 0x141   : > { %497 = vrot.lane.b32.xlu1 %v435_v57, %s3410_s27  ;;  %v1069_v57 = vld [vmem:[#allocation10 + $0xd00] sm:$0xff] }
 0x142   : > { %479 = vrot.lane.b32.xlu0 %v410_v58, %s3410_s27  ;;  %v1062_v58 = vld [vmem:[#allocation10 + $0xcc8] sm:$0xff] }
 0x145   : > { %493 = vrot.lane.b32.xlu1 %v426_v59, %s3410_s27 }
 0x146   : > { %477 = vrot.lane.b32.xlu0 %v409_v60, %s3410_s27 }
 0x149   : > { %461 = vrot.lane.b32.xlu1 %v3637_v19, %s3410_s27  ;;  %v965_v19 = vld [vmem:[#allocation10 + $0x9c0] sm:$0xff] }
 0x14a   : > { %465 = vrot.lane.b32.xlu0 %v385_v62, %s3410_s27 }
 0x14d   : > { %473 = vrot.lane.b32.xlu1 %v398_v63, %s3410_s27 }
 0x14e   : > { %463 = vrot.lane.b32.xlu0 %v3634_v16, %s3410_s27  ;;  %v974_v16 = vld [vmem:[#allocation10 + $0xa08] sm:$0xff] }
 0x14f   : > { %1179 = vmatprep.subr.mxu1 %v974_v16 }
 0x150   : > { %1180 = vmatpush1.msra.mxu1 %v973_v17 }
 0x151   : > { %471 = vrot.lane.b32.xlu1 %v397_v4, %s3410_s27  ;;  %1181 = vmatprep.subr.mxu1 %v966_v18 }
 0x152   : > { %1182 = vmatpush1.msra.mxu1 %v965_v19 }
 0x153   : > { %1183 = vmatprep.subr.mxu1 %v958_v20 }
 0x154   : > { %1184 = vmatpush1.msra.mxu1 %v957_v21 }
 0x155   : > { %459 = vrot.lane.b32.xlu1 %v3642_v26, %s3410_s27  ;;  %1185 = vmatprep.subr.mxu1 %v950_v22  ;;  %v934_v26 = vld [vmem:[#allocation10 + $0x8c8] sm:$0xff] }
 0x156   : > { %1186 = vmatpush1.msra.mxu1 %v949_v23 }
 0x157   : > { %1187 = vmatprep.subr.mxu1 %v942_v24 }
 0x158   : > { %1188 = vmatpush1.msra.mxu1 %v941_v25 }
 0x159   : > { %1189 = vmatprep.subr.mxu1 %v934_v26 }
 0x15a   : > { %1190 = vmatpush1.msra.mxu1 %v933_v27 }
 0x15b   : > { %1191 = vmatprep.subr.mxu1 %v926_v28 }
 0x15c   : > { %1192 = vmatpush1.msra.mxu1 %v925_v29 }
 0x15d   : > { %1193 = vmatprep.subr.mxu1 %v918_v30 }
 0x15e   : > { %1194 = vmatpush1.msra.mxu1 %v917_v31 }
 0x15f   : > { %1195 = vmatprep.subr.mxu1 %v910_v32 }
 0x160   : > { %1196 = vmatpush1.msra.mxu1 %v909_v33 }
 0x161   : > { %1197 = vmatprep.subr.mxu1 %v1158_v34 }
 0x162   : > { %1198 = vmatpush2.msra.mxu1 %v1157_v35 }
 0x163   : > { %1199 = vmatprep.subr.mxu1 %v1150_v36 }
 0x164   : > { %1200 = vmatpush2.msra.mxu1 %v1149_v37 }
 0x165   : > { %1201 = vmatprep.subr.mxu1 %v1142_v38 }
 0x166   : > { %1202 = vmatpush2.msra.mxu1 %v1141_v39 }
 0x167   : > { %1203 = vmatprep.subr.mxu1 %v1134_v40  ;;  %v455_v40 = vld [vmem:[#allocation7] sm:$0xff] }
 0x168   : > { %1204 = vmatpush2.msra.mxu1 %v1133_v41  ;;  %v1032_v41 = vld [vmem:[#allocation10 + $0xbd8] sm:$0xff] }
 0x169   : > { %1205 = vmatprep.subr.mxu1 %v1126_v42 }
 0x16a   : > { %1206 = vmatpush2.msra.mxu1 %v1125_v43  ;;  %v1031_v43 = vld [vmem:[#allocation10 + $0xbd0] sm:$0xff] }
 0x16b   : > { %1207 = vmatprep.subr.mxu1 %v1118_v44  ;;  %v1024_v44 = vld [vmem:[#allocation10 + $0xb98] sm:$0xff] }
 0x16c   : > { %1208 = vmatpush2.msra.mxu1 %v1117_v45  ;;  %v1023_v45 = vld [vmem:[#allocation10 + $0xb90] sm:$0xff] }
 0x16d   : > { %1209 = vmatprep.subr.mxu1 %v1110_v46  ;;  %v456_v46 = vld [vmem:[#allocation7 + $0x8] sm:$0xff] }
 0x16e   : > { %1210 = vmatpush2.msra.mxu1 %v1109_v47  ;;  %v1016_v47 = vld [vmem:[#allocation10 + $0xb58] sm:$0xff] }
 0x16f   : > { %1211 = vmatprep.subr.mxu1 %v1102_v48  ;;  %v1015_v48 = vld [vmem:[#allocation10 + $0xb50] sm:$0xff] }
 0x170   : > { %1212 = vmatpush2.msra.mxu1 %v1101_v49  ;;  %v1008_v49 = vld [vmem:[#allocation10 + $0xb18] sm:$0xff] }
 0x171   : > { %1213 = vmatprep.subr.mxu1 %v1094_v50  ;;  %v1007_v50 = vld [vmem:[#allocation10 + $0xb10] sm:$0xff] }
 0x172   : > { %1214 = vmatpush2.msra.mxu1 %v1093_v51  ;;  %v502_v59 = vpop.permute.xlu0 %501  ;;  %v1000_v51 = vld [vmem:[#allocation10 + $0xad8] sm:$0xff] }
 0x173   : > { %1215 = vmatprep.subr.mxu1 %v1086_v52  ;;  %v999_v52 = vld [vmem:[#allocation10 + $0xad0] sm:$0xff] }
 0x174   : > { %1216 = vmatpush2.msra.mxu1 %v1085_v53  ;;  %v992_v53 = vld [vmem:[#allocation10 + $0xa98] sm:$0xff] }
 0x175   : > { %1217 = vmatprep.subr.mxu1 %v1078_v54  ;;  %v991_v54 = vld [vmem:[#allocation10 + $0xa90] sm:$0xff] }
 0x176   : > { %1218 = vmatpush2.msra.mxu1 %v1077_v55  ;;  %v984_v55 = vld [vmem:[#allocation10 + $0xa58] sm:$0xff] }
 0x177   : > { %1219 = vmatprep.subr.mxu1 %v1070_v56  ;;  %v983_v56 = vld [vmem:[#allocation10 + $0xa50] sm:$0xff] }
 0x178   : > { %1220 = vmatpush2.msra.mxu1 %v1069_v57  ;;  %v976_v57 = vld [vmem:[#allocation10 + $0xa18] sm:$0xff] }
 0x179   : > { %1221 = vmatprep.subr.mxu1 %v1062_v58  ;;  %v975_v58 = vld [vmem:[#allocation10 + $0xa10] sm:$0xff] }
 0x187   : > { %v488_v60 = vpop.permute.xlu0 %487 }
 0x18b   : > { %v484_v61 = vpop.permute.xlu1 %483  ;;  %v504_v63 = vpop.permute.xlu0 %503 }
 0x18c   : > { %v528_v17 = vsel %vm513_vm8, %v502_v59, %v504_v63  ;;  %v968_v59 = vld [vmem:[#allocation10 + $0x9d8] sm:$0xff] }
 0x197   : > { %v470_v62 = vpop.permute.xlu1 %469 }
 0x19b   : > { %v506_v0 = vpop.permute.xlu1 %505 }
 0x19c   : > { %v468_v2 = vpop.permute.xlu0 %467  ;;  %v529_v15 = vsel %vm513_vm8, %v504_v63, %v506_v0  ;;  %v952_v63 = vld [vmem:[#allocation10 + $0x958] sm:$0xff]  ;;  %v951_v0 = vld [vmem:[#allocation10 + $0x950] sm:$0xff] }
 0x19d   : > { %v517_v36 = vsel %vm513_vm8, %v468_v2, %v470_v62  ;;  %v959_v62 = vld [vmem:[#allocation10 + $0x990] sm:$0xff] }
 0x19f   : > { %v486_v3 = vpop.permute.xlu1 %485 }
 0x1a0   : > { %v490_v4 = vpop.permute.xlu0 %489  ;;  %v523_v25 = vsel %vm513_vm8, %v486_v3, %v488_v60  ;;  %v522_v27 = vsel %vm513_vm8, %v484_v61, %v486_v3  ;;  %v967_v60 = vld [vmem:[#allocation10 + $0x9d0] sm:$0xff]  ;;  %v960_v61 = vld [vmem:[#allocation10 + $0x998] sm:$0xff] }
 0x1a1   : > { %v943_v3 = vld [vmem:[#allocation10 + $0x910] sm:$0xff] }
 0x1a3   : > { %v508_v5 = vpop.permute.xlu1 %507 }
 0x1a4   : > { %v476_v6 = vpop.permute.xlu0 %475 }
 0x1a7   : > { %v496_v7 = vpop.permute.xlu1 %495 }
 0x1a8   : > { %v512_v8 = vpop.permute.xlu0 %511 }
 0x1ab   : > { %v482_v9 = vpop.permute.xlu1 %481 }
 0x1ac   : > { %v500_v10 = vpop.permute.xlu0 %499 }
 0x1af   : > { %v510_v11 = vpop.permute.xlu1 %509 }
 0x1b0   : > { %v492_v12 = vpop.permute.xlu0 %491  ;;  %v531_v13 = vsel %vm513_vm8, %v510_v11, %v512_v8  ;;  %v530_v14 = vsel %vm513_vm8, %v508_v5, %v510_v11  ;;  %v935_v5 = vld [vmem:[#allocation10 + $0x8d0] sm:$0xff]  ;;  %v920_v8 = vld [vmem:[#allocation10 + $0x858] sm:$0xff] }
 0x1b1   : > { %577 = vmatprep.subr.mxu0 %v531_v13  ;;  %v524_v24 = vsel %vm513_vm8, %v490_v4, %v492_v12  ;;  %v936_v4 = vld [vmem:[#allocation10 + $0x8d8] sm:$0xff]  ;;  %v911_v11 = vld [vmem:[#allocation10 + $0x810] sm:$0xff] }
 0x1b2   : > { %578 = vmatpush1.msra.mxu0 %v530_v14  ;;  %v1159_v13 = vld [vmem:[#allocation10 + $0xfd0] sm:$0xff]  ;;  %v1152_v14 = vld [vmem:[#allocation10 + $0xf98] sm:$0xff] }
 0x1b3   : > { %v498_v16 = vpop.permute.xlu1 %497  ;;  %579 = vmatprep.subr.mxu0 %v529_v15  ;;  %v1151_v15 = vld [vmem:[#allocation10 + $0xf90] sm:$0xff] }
 0x1b4   : > { %580 = vmatpush1.msra.mxu0 %v528_v17  ;;  %v480_v18 = vpop.permute.xlu0 %479  ;;  %v527_v19 = vsel %vm513_vm8, %v498_v16, %v500_v10  ;;  %v526_v20 = vsel %vm513_vm8, %v496_v7, %v498_v16  ;;  %v927_v7 = vld [vmem:[#allocation10 + $0x890] sm:$0xff]  ;;  %v912_v10 = vld [vmem:[#allocation10 + $0x818] sm:$0xff] }
 0x1b5   : > { %581 = vmatprep.subr.mxu0 %v527_v19  ;;  %v521_v28 = vsel %vm513_vm8, %v480_v18, %v482_v9  ;;  %v919_v9 = vld [vmem:[#allocation10 + $0x850] sm:$0xff]  ;;  %v1144_v16 = vld [vmem:[#allocation10 + $0xf58] sm:$0xff] }
 0x1b6   : > { %582 = vmatpush1.msra.mxu0 %v526_v20  ;;  %v1143_v17 = vld [vmem:[#allocation10 + $0xf50] sm:$0xff]  ;;  %v1128_v20 = vld [vmem:[#allocation10 + $0xed8] sm:$0xff] }
 0x1b7   : > { %v494_v21 = vpop.permute.xlu1 %493  ;;  %v1135_v19 = vld [vmem:[#allocation10 + $0xf10] sm:$0xff] }
 0x1b8   : > { %v478_v22 = vpop.permute.xlu0 %477  ;;  %v525_v23 = vsel %vm513_vm8, %v492_v12, %v494_v21  ;;  %v1160_v12 = vld [vmem:[#allocation10 + $0xfd8] sm:$0xff]  ;;  %v1127_v21 = vld [vmem:[#allocation10 + $0xed0] sm:$0xff] }
 0x1b9   : > { %583 = vmatprep.subr.mxu0 %v525_v23  ;;  %v520_v29 = vsel %vm513_vm8, %v478_v22, %v480_v18  ;;  %v1136_v18 = vld [vmem:[#allocation10 + $0xf18] sm:$0xff]  ;;  %v1119_v23 = vld [vmem:[#allocation10 + $0xe90] sm:$0xff] }
 0x1ba   : > { %584 = vmatpush1.msra.mxu0 %v524_v24  ;;  %v1120_v22 = vld [vmem:[#allocation10 + $0xe98] sm:$0xff] }
 0x1bb   : > { %v462_v26 = vpop.permute.xlu1 %461  ;;  %585 = vmatprep.subr.mxu0 %v523_v25  ;;  %v1112_v24 = vld [vmem:[#allocation10 + $0xe58] sm:$0xff]  ;;  %v1111_v25 = vld [vmem:[#allocation10 + $0xe50] sm:$0xff] }
 0x1bc   : > { %586 = vmatpush1.msra.mxu0 %v522_v27  ;;  %v466_v30 = vpop.permute.xlu0 %465  ;;  %v1103_v27 = vld [vmem:[#allocation10 + $0xe10] sm:$0xff] }
 0x1bd   : > { %587 = vmatprep.subr.mxu0 %v521_v28  ;;  %v516_v37 = vsel %vm513_vm8, %v466_v30, %v468_v2  ;;  %v944_v2 = vld [vmem:[#allocation10 + $0x918] sm:$0xff] }
 0x1be   : > { %588 = vmatpush1.msra.mxu0 %v520_v29  ;;  %v1096_v28 = vld [vmem:[#allocation10 + $0xdd8] sm:$0xff]  ;;  %v1095_v29 = vld [vmem:[#allocation10 + $0xdd0] sm:$0xff] }
 0x1bf   : > { %v474_v31 = vpop.permute.xlu1 %473  ;;  %v1088_v30 = vld [vmem:[#allocation10 + $0xd98] sm:$0xff] }
 0x1c0   : > { %v519_v32 = vsel %vm513_vm8, %v474_v31, %v476_v6  ;;  %v464_v34 = vpop.permute.xlu0 %463  ;;  %v928_v6 = vld [vmem:[#allocation10 + $0x898] sm:$0xff] }
 0x1c1   : > { %589 = vmatprep.subr.mxu0 %v519_v32  ;;  %v515_v39 = vsel %vm513_vm8, %v462_v26, %v464_v34  ;;  %v1080_v32 = vld [vmem:[#allocation10 + $0xd58] sm:$0xff] }
 0x1c2   : > { %v1072_v34 = vld [vmem:[#allocation10 + $0xd18] sm:$0xff] }
 0x1c3   : > { %v472_v33 = vpop.permute.xlu1 %471 }
 0x1c4   : > { %v518_v35 = vsel %vm513_vm8, %v472_v33, %v474_v31  ;;  %v1087_v31 = vld [vmem:[#allocation10 + $0xd90] sm:$0xff] }
 0x1c5   : > { %590 = vmatpush1.msra.mxu0 %v518_v35  ;;  %v1079_v33 = vld [vmem:[#allocation10 + $0xd50] sm:$0xff] }
 0x1c6   : > { %591 = vmatprep.subr.mxu0 %v517_v36  ;;  %v1071_v35 = vld [vmem:[#allocation10 + $0xd10] sm:$0xff]  ;;  %v1064_v36 = vld [vmem:[#allocation10 + $0xcd8] sm:$0xff] }
 0x1c7   : > { %v460_v38 = vpop.permute.xlu1 %459  ;;  %592 = vmatpush1.msra.mxu0 %v516_v37  ;;  %v457_v37 = vld [vmem:[#allocation7 + $0x10] sm:$0xff] }
 0x1c8   : > { %593 = vmatprep.subr.mxu0 %v515_v39  ;;  %v514_v42 = vsel %vm513_vm8, %v460_v38, %v462_v26  ;;  %v1104_v26 = vld [vmem:[#allocation10 + $0xe18] sm:$0xff]  ;;  %v1061_v38 = vld [vmem:[#allocation10 + $0xcc0] sm:$0xff]  ;;  %v1063_v39 = vld [vmem:[#allocation10 + $0xcd0] sm:$0xff] }
 0x1c9   : > { %594 = vmatpush1.msra.mxu0 %v514_v42  ;;  %1222 = vmatpush2.msra.mxu1 %v1061_v38  ;;  %v1053_v42 = vld [vmem:[#allocation10 + $0xc80] sm:$0xff]  ;;  %v948_v38 = vld [vmem:[#allocation10 + $0x938] sm:$0xff] }
 0x1ca   : > { %3068 = vmatmul.mubr.msk.f32.vlgmr.msra.gmra.mxu0 %vm550_vm9, %v455_v40  ;;  %1236 = vmatprep.subr.mxu0 %v1032_v41  ;;  %v1054_v40 = vld [vmem:[#allocation10 + $0xc88] sm:$0xff]  ;;  %v1056_v41 = vld [vmem:[#allocation10 + $0xc98] sm:$0xff] }
 0x1cb   : > { %633 = vmatprep.mubr.f32.mxu0 %v3401_v1  ;;  %1237 = vmatpush1.msra.mxu0 %v1031_v43  ;;  %v1055_v43 = vld [vmem:[#allocation10 + $0xc90] sm:$0xff] }
 0x1cc   : > { %1238 = vmatprep.subr.mxu0 %v1024_v44  ;;  %1223 = vmatprep.subr.mxu1 %v1054_v40  ;;  %v1046_v44 = vld [vmem:[#allocation10 + $0xc48] sm:$0xff]  ;;  %v947_v40 = vld [vmem:[#allocation10 + $0x930] sm:$0xff] }
 0x1cd   : > { %1239 = vmatpush1.msra.mxu0 %v1023_v45  ;;  %1224 = vmatpush2.msra.mxu1 %v1053_v42  ;;  %v1048_v45 = vld [vmem:[#allocation10 + $0xc58] sm:$0xff] }
 0x1ce   : > { %3069 = vmatmul.mubr.msk.f32.gmra.mxu0 %vm550_vm9, %v456_v46  ;;  %1240 = vmatprep.subr.mxu0 %v1016_v47  ;;  %v458_v46 = vld [vmem:[#allocation7 + $0x18] sm:$0xff]  ;;  %v1045_v47 = vld [vmem:[#allocation10 + $0xc40] sm:$0xff]  ;;  %v940_v42 = vld [vmem:[#allocation10 + $0x8f8] sm:$0xff] }
 0x1cf   : > { %1241 = vmatpush1.msra.mxu0 %v1015_v48  ;;  %639 = vmatprep.mubr.f32.mxu0 %v3401_v1  ;;  %v1047_v48 = vld [vmem:[#allocation10 + $0xc50] sm:$0xff] }
 0x1d0   : > { %1242 = vmatprep.subr.mxu0 %v1008_v49  ;;  %1225 = vmatprep.subr.mxu1 %v1046_v44  ;;  %v1038_v49 = vld [vmem:[#allocation10 + $0xc08] sm:$0xff]  ;;  %v939_v44 = vld [vmem:[#allocation10 + $0x8f0] sm:$0xff] }
 0x1d1   : > { %1243 = vmatpush1.msra.mxu0 %v1007_v50  ;;  %v1040_v50 = vld [vmem:[#allocation10 + $0xc18] sm:$0xff]  ;;  %1226 = vmatpush2.msra.mxu1 %v1045_v47  ;;  %v929_v47 = vld [vmem:[#allocation10 + $0x8a0] sm:$0xff] }
 0x1d2   : > { %1244 = vmatprep.subr.mxu0 %v1000_v51  ;;  %3070 = vmatmul.mubr.msk.f32.gmra.mxu0 %vm550_vm9, %v457_v37  ;;  %v1037_v51 = vld [vmem:[#allocation10 + $0xc00] sm:$0xff]  ;;  %v946_v37 = vld [vmem:[#allocation10 + $0x928] sm:$0xff] }
 0x1d3   : > { %1245 = vmatpush1.msra.mxu0 %v999_v52  ;;  %645 = vmatprep.mubr.f32.mxu0 %v3401_v1  ;;  %v1039_v52 = vld [vmem:[#allocation10 + $0xc10] sm:$0xff] }
 0x1d4   : > { %1246 = vmatprep.subr.mxu0 %v992_v53  ;;  %1227 = vmatprep.subr.mxu1 %v1038_v49  ;;  %v1034_v53 = vld [vmem:[#allocation10 + $0xbe8] sm:$0xff] }
 0x1d5   : > { %1247 = vmatpush1.msra.mxu0 %v991_v54  ;;  %v1036_v54 = vld [vmem:[#allocation10 + $0xbf8] sm:$0xff]  ;;  %1228 = vmatpush2.msra.mxu1 %v1037_v51  ;;  %v922_v49 = vld [vmem:[#allocation10 + $0x868] sm:$0xff]  ;;  %v921_v51 = vld [vmem:[#allocation10 + $0x860] sm:$0xff] }
 0x1d6   : > { %1248 = vmatprep.subr.mxu0 %v984_v55  ;;  %3071 = vmatmul.mubr.msk.f32.gmra.mxu0 %vm550_vm9, %v458_v46  ;;  %v932_v46 = vld [vmem:[#allocation10 + $0x8b8] sm:$0xff] }
 0x1d7   : > { %1249 = vmatpush1.msra.mxu0 %v983_v56  ;;  %1307 = vmatprep.subr.mxu1 %v1034_v53  ;;  %v914_v53 = vld [vmem:[#allocation10 + $0x828] sm:$0xff] }
 0x1d8   : > { %1250 = vmatprep.subr.mxu0 %v976_v57 }
 0x1d9   : > { %1251 = vmatpush1.msra.mxu0 %v975_v58  ;;  %v1033_v58 = vld [vmem:[#allocation10 + $0xbe0] sm:$0xff] }
 0x1da   : > { %1252 = vmatprep.subr.mxu0 %v968_v59  ;;  %v1035_v59 = vld [vmem:[#allocation10 + $0xbf0] sm:$0xff] }
 0x1db   : > { %1253 = vmatpush1.msra.mxu0 %v967_v60  ;;  %v1026_v60 = vld [vmem:[#allocation10 + $0xba8] sm:$0xff] }
 0x1dc   : > { %1254 = vmatprep.subr.mxu0 %v960_v61  ;;  %v1028_v61 = vld [vmem:[#allocation10 + $0xbb8] sm:$0xff] }
 0x1dd   : > { %1255 = vmatpush1.msra.mxu0 %v959_v62  ;;  %v1025_v62 = vld [vmem:[#allocation10 + $0xba0] sm:$0xff] }
 0x1de   : > { %1256 = vmatprep.subr.mxu0 %v952_v63  ;;  %v1027_v63 = vld [vmem:[#allocation10 + $0xbb0] sm:$0xff] }
 0x1df   : > { %1257 = vmatpush1.msra.mxu0 %v951_v0  ;;  %v1018_v0 = vld [vmem:[#allocation10 + $0xb68] sm:$0xff] }
 0x1e0   : > { %1258 = vmatprep.subr.mxu0 %v944_v2  ;;  %v1020_v2 = vld [vmem:[#allocation10 + $0xb78] sm:$0xff] }
 0x1e1   : > { %1259 = vmatpush1.msra.mxu0 %v943_v3  ;;  %v1017_v3 = vld [vmem:[#allocation10 + $0xb60] sm:$0xff] }
 0x1e2   : > { %1260 = vmatprep.subr.mxu0 %v936_v4  ;;  %v1019_v4 = vld [vmem:[#allocation10 + $0xb70] sm:$0xff] }
 0x1e3   : > { %1261 = vmatpush1.msra.mxu0 %v935_v5  ;;  %v1010_v5 = vld [vmem:[#allocation10 + $0xb28] sm:$0xff] }
 0x1e4   : > { %1262 = vmatprep.subr.mxu0 %v928_v6  ;;  %v1012_v6 = vld [vmem:[#allocation10 + $0xb38] sm:$0xff] }
 0x1e5   : > { %1263 = vmatpush1.msra.mxu0 %v927_v7  ;;  %v1009_v7 = vld [vmem:[#allocation10 + $0xb20] sm:$0xff] }
 0x1e6   : > { %1264 = vmatprep.subr.mxu0 %v920_v8  ;;  %v1011_v8 = vld [vmem:[#allocation10 + $0xb30] sm:$0xff] }
 0x1e7   : > { %1265 = vmatpush1.msra.mxu0 %v919_v9  ;;  %v1002_v9 = vld [vmem:[#allocation10 + $0xae8] sm:$0xff] }
 0x1e8   : > { %1266 = vmatprep.subr.mxu0 %v912_v10  ;;  %v1004_v10 = vld [vmem:[#allocation10 + $0xaf8] sm:$0xff] }
 0x1e9   : > { %1267 = vmatpush1.msra.mxu0 %v911_v11  ;;  %v1001_v11 = vld [vmem:[#allocation10 + $0xae0] sm:$0xff] }
 0x1ea   : > { %1268 = vmatprep.subr.mxu0 %v1160_v12  ;;  %v1003_v12 = vld [vmem:[#allocation10 + $0xaf0] sm:$0xff] }
 0x1eb   : > { %1269 = vmatpush2.msra.mxu0 %v1159_v13  ;;  %v994_v13 = vld [vmem:[#allocation10 + $0xaa8] sm:$0xff] }
 0x1ec   : > { %1270 = vmatprep.subr.mxu0 %v1152_v14  ;;  %v996_v14 = vld [vmem:[#allocation10 + $0xab8] sm:$0xff] }
 0x1ed   : > { %1271 = vmatpush2.msra.mxu0 %v1151_v15  ;;  %v993_v15 = vld [vmem:[#allocation10 + $0xaa0] sm:$0xff] }
 0x1ee   : > { %1272 = vmatprep.subr.mxu0 %v1144_v16  ;;  %v995_v16 = vld [vmem:[#allocation10 + $0xab0] sm:$0xff] }
 0x1ef   : > { %1273 = vmatpush2.msra.mxu0 %v1143_v17  ;;  %v986_v17 = vld [vmem:[#allocation10 + $0xa68] sm:$0xff] }
 0x1f0   : > { %1274 = vmatprep.subr.mxu0 %v1136_v18  ;;  %v988_v18 = vld [vmem:[#allocation10 + $0xa78] sm:$0xff] }
 0x1f1   : > { %1275 = vmatpush2.msra.mxu0 %v1135_v19  ;;  %v985_v19 = vld [vmem:[#allocation10 + $0xa60] sm:$0xff] }
 0x1f2   : > { %1276 = vmatprep.subr.mxu0 %v1128_v20  ;;  %v987_v20 = vld [vmem:[#allocation10 + $0xa70] sm:$0xff] }
 0x1f3   : > { %1277 = vmatpush2.msra.mxu0 %v1127_v21  ;;  %v978_v21 = vld [vmem:[#allocation10 + $0xa28] sm:$0xff] }
 0x1f4   : > { %1278 = vmatprep.subr.mxu0 %v1120_v22  ;;  %v980_v22 = vld [vmem:[#allocation10 + $0xa38] sm:$0xff] }
 0x1f5   : > { %1279 = vmatpush2.msra.mxu0 %v1119_v23  ;;  %v977_v23 = vld [vmem:[#allocation10 + $0xa20] sm:$0xff] }
 0x1f6   : > { %1280 = vmatprep.subr.mxu0 %v1112_v24  ;;  %v979_v24 = vld [vmem:[#allocation10 + $0xa30] sm:$0xff] }
 0x1f7   : > { %1281 = vmatpush2.msra.mxu0 %v1111_v25  ;;  %v970_v25 = vld [vmem:[#allocation10 + $0x9e8] sm:$0xff] }
 0x1f8   : > { %1282 = vmatprep.subr.mxu0 %v1104_v26  ;;  %v972_v26 = vld [vmem:[#allocation10 + $0x9f8] sm:$0xff] }
 0x1f9   : > { %1283 = vmatpush2.msra.mxu0 %v1103_v27  ;;  %v969_v27 = vld [vmem:[#allocation10 + $0x9e0] sm:$0xff] }
 0x1fa   : > { %1284 = vmatprep.subr.mxu0 %v1096_v28  ;;  %v971_v28 = vld [vmem:[#allocation10 + $0x9f0] sm:$0xff] }
 0x1fb   : > { %1285 = vmatpush2.msra.mxu0 %v1095_v29  ;;  %v962_v29 = vld [vmem:[#allocation10 + $0x9a8] sm:$0xff] }
 0x1fc   : > { %1286 = vmatprep.subr.mxu0 %v1088_v30  ;;  %v964_v30 = vld [vmem:[#allocation10 + $0x9b8] sm:$0xff] }
 0x1fd   : > { %1287 = vmatpush2.msra.mxu0 %v1087_v31  ;;  %v961_v31 = vld [vmem:[#allocation10 + $0x9a0] sm:$0xff] }
 0x1fe   : > { %1288 = vmatprep.subr.mxu0 %v1080_v32  ;;  %v963_v32 = vld [vmem:[#allocation10 + $0x9b0] sm:$0xff] }
 0x1ff   : > { %1289 = vmatpush2.msra.mxu0 %v1079_v33  ;;  %v954_v33 = vld [vmem:[#allocation10 + $0x968] sm:$0xff] }
 0x200   : > { %1290 = vmatprep.subr.mxu0 %v1072_v34  ;;  %v956_v34 = vld [vmem:[#allocation10 + $0x978] sm:$0xff] }
 0x201   : > { %1291 = vmatpush2.msra.mxu0 %v1071_v35  ;;  %v953_v35 = vld [vmem:[#allocation10 + $0x960] sm:$0xff] }
 0x202   : > { %1292 = vmatprep.subr.mxu0 %v1064_v36  ;;  %v955_v36 = vld [vmem:[#allocation10 + $0x970] sm:$0xff] }
 0x203   : > { %1293 = vmatpush2.msra.mxu0 %v1063_v39  ;;  %v945_v39 = vld [vmem:[#allocation10 + $0x920] sm:$0xff] }
 0x204   : > { %1294 = vmatprep.subr.mxu0 %v1056_v41  ;;  %v938_v41 = vld [vmem:[#allocation10 + $0x8e8] sm:$0xff] }
 0x205   : > { %1295 = vmatpush2.msra.mxu0 %v1055_v43  ;;  %v937_v43 = vld [vmem:[#allocation10 + $0x8e0] sm:$0xff] }
 0x206   : > { %1296 = vmatprep.subr.mxu0 %v1048_v45  ;;  %v930_v45 = vld [vmem:[#allocation10 + $0x8a8] sm:$0xff] }
 0x207   : > { %1297 = vmatpush2.msra.mxu0 %v1047_v48  ;;  %v931_v48 = vld [vmem:[#allocation10 + $0x8b0] sm:$0xff] }
 0x208   : > { %1298 = vmatprep.subr.mxu0 %v1040_v50  ;;  %v924_v50 = vld [vmem:[#allocation10 + $0x878] sm:$0xff] }
 0x209   : > { %1299 = vmatpush2.msra.mxu0 %v1039_v52  ;;  %v923_v52 = vld [vmem:[#allocation10 + $0x870] sm:$0xff] }
 0x20a   : > { %1378 = vmatprep.subr.mxu0 %v1036_v54  ;;  %v916_v54 = vld [vmem:[#allocation10 + $0x838] sm:$0xff] }
 0x28a   : > { %v3703_v1 = vpop.f32.mrf.mxu0 }
 0x28c   : > { %v3705_v55 = vpop.f32.mrf.mxu0 }
 0x28e   : > { %v3707_v56 = vpop.f32.mrf.mxu0 }
 0x290   : > { %v637_v57 = vpop.f32.mrf.mxu0 }
 0x291   : > { %1229 = vmatprep.mubr.f32.mxu1 %v637_v57  ;;  %1300 = vmatprep.mubr.f32.mxu0 %v637_v57 }
 0x292   : > { %1230 = vmatmul.mubr.f32.vlgmr.msra.gmra.mxu1 %v3707_v56  ;;  %1301 = vmatmul.mubr.f32.vlgmr.msra.gmra.mxu0 %v3707_v56 }
 0x293   : > { %1308 = vmatpush1.msra.mxu1 %v1033_v58  ;;  %1379 = vmatpush1.msra.mxu0 %v1035_v59  ;;  %v915_v58 = vld [vmem:[#allocation10 + $0x830] sm:$0xff]  ;;  %v1162_v59 = vld [vmem:[#allocation10 + $0xfe8] sm:$0xff] }
 0x294   : > { %1309 = vmatprep.subr.mxu1 %v1026_v60  ;;  %1371 = vmatprep.mubr.f32.mxu1 %v637_v57  ;;  %v1164_v60 = vld [vmem:[#allocation10 + $0xff8] sm:$0xff] }
 0x295   : > { %1380 = vmatprep.subr.mxu0 %v1028_v61  ;;  %1442 = vmatprep.mubr.f32.mxu0 %v637_v57  ;;  %v913_v57 = vld [vmem:[#allocation10 + $0x820] sm:$0xff] }
 0x296   : > { %1310 = vmatpush1.msra.mxu1 %v1025_v62  ;;  %1381 = vmatpush1.msra.mxu0 %v1027_v63  ;;  %v1161_v61 = vld [vmem:[#allocation10 + $0xfe0] sm:$0xff]  ;;  %v1163_v62 = vld [vmem:[#allocation10 + $0xff0] sm:$0xff]  ;;  %v1154_v63 = vld [vmem:[#allocation10 + $0xfa8] sm:$0xff] }
 0x297   : > { %1311 = vmatprep.subr.mxu1 %v1018_v0  ;;  %1382 = vmatprep.subr.mxu0 %v1020_v2  ;;  %v1156_v0 = vld [vmem:[#allocation10 + $0xfb8] sm:$0xff]  ;;  %v1153_v2 = vld [vmem:[#allocation10 + $0xfa0] sm:$0xff] }
 0x298   : > { %1312 = vmatpush1.msra.mxu1 %v1017_v3  ;;  %1383 = vmatpush1.msra.mxu0 %v1019_v4  ;;  %v1155_v3 = vld [vmem:[#allocation10 + $0xfb0] sm:$0xff]  ;;  %v1146_v4 = vld [vmem:[#allocation10 + $0xf68] sm:$0xff] }
 0x299   : > { %1313 = vmatprep.subr.mxu1 %v1010_v5  ;;  %1384 = vmatprep.subr.mxu0 %v1012_v6  ;;  %v1148_v5 = vld [vmem:[#allocation10 + $0xf78] sm:$0xff]  ;;  %v1145_v6 = vld [vmem:[#allocation10 + $0xf60] sm:$0xff] }
 0x29a   : > { %1314 = vmatpush1.msra.mxu1 %v1009_v7  ;;  %1385 = vmatpush1.msra.mxu0 %v1011_v8  ;;  %v1147_v7 = vld [vmem:[#allocation10 + $0xf70] sm:$0xff]  ;;  %v1138_v8 = vld [vmem:[#allocation10 + $0xf28] sm:$0xff] }
 0x29b   : > { %1315 = vmatprep.subr.mxu1 %v1002_v9  ;;  %1386 = vmatprep.subr.mxu0 %v1004_v10  ;;  %v1140_v9 = vld [vmem:[#allocation10 + $0xf38] sm:$0xff]  ;;  %v1137_v10 = vld [vmem:[#allocation10 + $0xf20] sm:$0xff] }
 0x29c   : > { %1316 = vmatpush1.msra.mxu1 %v1001_v11  ;;  %1387 = vmatpush1.msra.mxu0 %v1003_v12  ;;  %v1139_v11 = vld [vmem:[#allocation10 + $0xf30] sm:$0xff]  ;;  %v1130_v12 = vld [vmem:[#allocation10 + $0xee8] sm:$0xff] }
 0x29d   : > { %1317 = vmatprep.subr.mxu1 %v994_v13  ;;  %1388 = vmatprep.subr.mxu0 %v996_v14  ;;  %v1132_v13 = vld [vmem:[#allocation10 + $0xef8] sm:$0xff]  ;;  %v1129_v14 = vld [vmem:[#allocation10 + $0xee0] sm:$0xff] }
 0x29e   : > { %1318 = vmatpush1.msra.mxu1 %v993_v15  ;;  %1389 = vmatpush1.msra.mxu0 %v995_v16  ;;  %v1131_v15 = vld [vmem:[#allocation10 + $0xef0] sm:$0xff]  ;;  %v1122_v16 = vld [vmem:[#allocation10 + $0xea8] sm:$0xff] }
 0x29f   : > { %1319 = vmatprep.subr.mxu1 %v986_v17  ;;  %1390 = vmatprep.subr.mxu0 %v988_v18  ;;  %v1124_v17 = vld [vmem:[#allocation10 + $0xeb8] sm:$0xff]  ;;  %v1121_v18 = vld [vmem:[#allocation10 + $0xea0] sm:$0xff] }
 0x2a0   : > { %1320 = vmatpush1.msra.mxu1 %v985_v19  ;;  %1391 = vmatpush1.msra.mxu0 %v987_v20  ;;  %v1123_v19 = vld [vmem:[#allocation10 + $0xeb0] sm:$0xff]  ;;  %v1114_v20 = vld [vmem:[#allocation10 + $0xe68] sm:$0xff] }
 0x2a1   : > { %1321 = vmatprep.subr.mxu1 %v978_v21  ;;  %1392 = vmatprep.subr.mxu0 %v980_v22  ;;  %v1116_v21 = vld [vmem:[#allocation10 + $0xe78] sm:$0xff]  ;;  %v1113_v22 = vld [vmem:[#allocation10 + $0xe60] sm:$0xff] }
 0x2a2   : > { %1322 = vmatpush1.msra.mxu1 %v977_v23  ;;  %1393 = vmatpush1.msra.mxu0 %v979_v24  ;;  %v1115_v23 = vld [vmem:[#allocation10 + $0xe70] sm:$0xff]  ;;  %v1106_v24 = vld [vmem:[#allocation10 + $0xe28] sm:$0xff] }
 0x2a3   : > { %1323 = vmatprep.subr.mxu1 %v970_v25  ;;  %1394 = vmatprep.subr.mxu0 %v972_v26  ;;  %v1108_v25 = vld [vmem:[#allocation10 + $0xe38] sm:$0xff]  ;;  %v1105_v26 = vld [vmem:[#allocation10 + $0xe20] sm:$0xff] }
 0x2a4   : > { %1324 = vmatpush1.msra.mxu1 %v969_v27  ;;  %1395 = vmatpush1.msra.mxu0 %v971_v28  ;;  %v1107_v27 = vld [vmem:[#allocation10 + $0xe30] sm:$0xff]  ;;  %v1098_v28 = vld [vmem:[#allocation10 + $0xde8] sm:$0xff] }
 0x2a5   : > { %1325 = vmatprep.subr.mxu1 %v962_v29  ;;  %1396 = vmatprep.subr.mxu0 %v964_v30  ;;  %v1100_v29 = vld [vmem:[#allocation10 + $0xdf8] sm:$0xff]  ;;  %v1097_v30 = vld [vmem:[#allocation10 + $0xde0] sm:$0xff] }
 0x2a6   : > { %1326 = vmatpush1.msra.mxu1 %v961_v31  ;;  %1397 = vmatpush1.msra.mxu0 %v963_v32  ;;  %v1099_v31 = vld [vmem:[#allocation10 + $0xdf0] sm:$0xff]  ;;  %v1090_v32 = vld [vmem:[#allocation10 + $0xda8] sm:$0xff] }
 0x2a7   : > { %1327 = vmatprep.subr.mxu1 %v954_v33  ;;  %1398 = vmatprep.subr.mxu0 %v956_v34  ;;  %v1092_v33 = vld [vmem:[#allocation10 + $0xdb8] sm:$0xff]  ;;  %v1089_v34 = vld [vmem:[#allocation10 + $0xda0] sm:$0xff] }
 0x2a8   : > { %1328 = vmatpush1.msra.mxu1 %v953_v35  ;;  %1399 = vmatpush1.msra.mxu0 %v955_v36  ;;  %v1091_v35 = vld [vmem:[#allocation10 + $0xdb0] sm:$0xff]  ;;  %v1082_v36 = vld [vmem:[#allocation10 + $0xd68] sm:$0xff] }
 0x2a9   : > { %1329 = vmatprep.subr.mxu1 %v946_v37  ;;  %1400 = vmatprep.subr.mxu0 %v948_v38  ;;  %v1084_v37 = vld [vmem:[#allocation10 + $0xd78] sm:$0xff]  ;;  %v1081_v38 = vld [vmem:[#allocation10 + $0xd60] sm:$0xff] }
 0x2aa   : > { %1330 = vmatpush1.msra.mxu1 %v945_v39  ;;  %1401 = vmatpush1.msra.mxu0 %v947_v40  ;;  %v1083_v39 = vld [vmem:[#allocation10 + $0xd70] sm:$0xff]  ;;  %v1074_v40 = vld [vmem:[#allocation10 + $0xd28] sm:$0xff] }
 0x2ab   : > { %1331 = vmatprep.subr.mxu1 %v938_v41  ;;  %1402 = vmatprep.subr.mxu0 %v940_v42  ;;  %v1076_v41 = vld [vmem:[#allocation10 + $0xd38] sm:$0xff]  ;;  %v1073_v42 = vld [vmem:[#allocation10 + $0xd20] sm:$0xff] }
 0x2ac   : > { %1332 = vmatpush1.msra.mxu1 %v937_v43  ;;  %1403 = vmatpush1.msra.mxu0 %v939_v44  ;;  %v1075_v43 = vld [vmem:[#allocation10 + $0xd30] sm:$0xff]  ;;  %v1066_v44 = vld [vmem:[#allocation10 + $0xce8] sm:$0xff] }
 0x2ad   : > { %1333 = vmatprep.subr.mxu1 %v930_v45  ;;  %1404 = vmatprep.subr.mxu0 %v932_v46  ;;  %v1068_v45 = vld [vmem:[#allocation10 + $0xcf8] sm:$0xff]  ;;  %v1065_v46 = vld [vmem:[#allocation10 + $0xce0] sm:$0xff] }
 0x2ae   : > { %1334 = vmatpush1.msra.mxu1 %v929_v47  ;;  %1405 = vmatpush1.msra.mxu0 %v931_v48  ;;  %v1067_v47 = vld [vmem:[#allocation10 + $0xcf0] sm:$0xff]  ;;  %v1058_v48 = vld [vmem:[#allocation10 + $0xca8] sm:$0xff] }
 0x2af   : > { %1335 = vmatprep.subr.mxu1 %v922_v49  ;;  %1406 = vmatprep.subr.mxu0 %v924_v50  ;;  %v1060_v49 = vld [vmem:[#allocation10 + $0xcb8] sm:$0xff]  ;;  %v1057_v50 = vld [vmem:[#allocation10 + $0xca0] sm:$0xff] }
 0x2b0   : > { %1336 = vmatpush1.msra.mxu1 %v921_v51  ;;  %1407 = vmatpush1.msra.mxu0 %v923_v52  ;;  %v1059_v51 = vld [vmem:[#allocation10 + $0xcb0] sm:$0xff]  ;;  %v1050_v52 = vld [vmem:[#allocation10 + $0xc68] sm:$0xff] }
 0x2b1   : > { %1337 = vmatprep.subr.mxu1 %v914_v53  ;;  %1408 = vmatprep.subr.mxu0 %v916_v54  ;;  %v1052_v53 = vld [vmem:[#allocation10 + $0xc78] sm:$0xff]  ;;  %v1049_v54 = vld [vmem:[#allocation10 + $0xc60] sm:$0xff] }
 0x2b2   : > { %1338 = vmatpush1.msra.mxu1 %v913_v57  ;;  %1409 = vmatpush1.msra.mxu0 %v915_v58  ;;  %v1051_v57 = vld [vmem:[#allocation10 + $0xc70] sm:$0xff]  ;;  %v1042_v58 = vld [vmem:[#allocation10 + $0xc28] sm:$0xff] }
 0x2b3   : > { %1339 = vmatprep.subr.mxu1 %v1162_v59  ;;  %1410 = vmatprep.subr.mxu0 %v1164_v60  ;;  %v1044_v59 = vld [vmem:[#allocation10 + $0xc38] sm:$0xff]  ;;  %v1041_v60 = vld [vmem:[#allocation10 + $0xc20] sm:$0xff] }
 0x2b4   : > { %1340 = vmatpush2.msra.mxu1 %v1161_v61  ;;  %1411 = vmatpush2.msra.mxu0 %v1163_v62  ;;  %v1043_v61 = vld [vmem:[#allocation10 + $0xc30] sm:$0xff]  ;;  %v773_v62 = vld [vmem:[#allocation10 + $0x3c8] sm:$0xff] }
 0x2b5   : > { %1341 = vmatprep.subr.mxu1 %v1154_v63  ;;  %1412 = vmatprep.subr.mxu0 %v1156_v0  ;;  %v775_v63 = vld [vmem:[#allocation10 + $0x3d8] sm:$0xff]  ;;  %v772_v0 = vld [vmem:[#allocation10 + $0x3c0] sm:$0xff] }
 0x2b6   : > { %1342 = vmatpush2.msra.mxu1 %v1153_v2  ;;  %1413 = vmatpush2.msra.mxu0 %v1155_v3  ;;  %v774_v2 = vld [vmem:[#allocation10 + $0x3d0] sm:$0xff]  ;;  %v765_v3 = vld [vmem:[#allocation10 + $0x388] sm:$0xff] }
 0x2b7   : > { %1343 = vmatprep.subr.mxu1 %v1146_v4  ;;  %1414 = vmatprep.subr.mxu0 %v1148_v5  ;;  %v767_v4 = vld [vmem:[#allocation10 + $0x398] sm:$0xff]  ;;  %v764_v5 = vld [vmem:[#allocation10 + $0x380] sm:$0xff] }
 0x2b8   : > { %1344 = vmatpush2.msra.mxu1 %v1145_v6  ;;  %1415 = vmatpush2.msra.mxu0 %v1147_v7  ;;  %v766_v6 = vld [vmem:[#allocation10 + $0x390] sm:$0xff]  ;;  %v757_v7 = vld [vmem:[#allocation10 + $0x348] sm:$0xff] }
 0x2b9   : > { %1345 = vmatprep.subr.mxu1 %v1138_v8  ;;  %1416 = vmatprep.subr.mxu0 %v1140_v9  ;;  %v759_v8 = vld [vmem:[#allocation10 + $0x358] sm:$0xff]  ;;  %v756_v9 = vld [vmem:[#allocation10 + $0x340] sm:$0xff] }
 0x2ba   : > { %1346 = vmatpush2.msra.mxu1 %v1137_v10  ;;  %1417 = vmatpush2.msra.mxu0 %v1139_v11  ;;  %v758_v10 = vld [vmem:[#allocation10 + $0x350] sm:$0xff]  ;;  %v751_v11 = vld [vmem:[#allocation10 + $0x318] sm:$0xff] }
 0x2bb   : > { %1347 = vmatprep.subr.mxu1 %v1130_v12  ;;  %1418 = vmatprep.subr.mxu0 %v1132_v13  ;;  %v748_v12 = vld [vmem:[#allocation10 + $0x300] sm:$0xff]  ;;  %v750_v13 = vld [vmem:[#allocation10 + $0x310] sm:$0xff] }
 0x2bc   : > { %1348 = vmatpush2.msra.mxu1 %v1129_v14  ;;  %1419 = vmatpush2.msra.mxu0 %v1131_v15  ;;  %v741_v14 = vld [vmem:[#allocation10 + $0x2c8] sm:$0xff]  ;;  %v743_v15 = vld [vmem:[#allocation10 + $0x2d8] sm:$0xff] }
 0x2bd   : > { %1349 = vmatprep.subr.mxu1 %v1122_v16  ;;  %1420 = vmatprep.subr.mxu0 %v1124_v17  ;;  %v740_v16 = vld [vmem:[#allocation10 + $0x2c0] sm:$0xff]  ;;  %v742_v17 = vld [vmem:[#allocation10 + $0x2d0] sm:$0xff] }
 0x2be   : > { %1350 = vmatpush2.msra.mxu1 %v1121_v18  ;;  %1421 = vmatpush2.msra.mxu0 %v1123_v19  ;;  %v733_v18 = vld [vmem:[#allocation10 + $0x288] sm:$0xff]  ;;  %v735_v19 = vld [vmem:[#allocation10 + $0x298] sm:$0xff] }
 0x2bf   : > { %1351 = vmatprep.subr.mxu1 %v1114_v20  ;;  %1422 = vmatprep.subr.mxu0 %v1116_v21  ;;  %v732_v20 = vld [vmem:[#allocation10 + $0x280] sm:$0xff]  ;;  %v734_v21 = vld [vmem:[#allocation10 + $0x290] sm:$0xff] }
 0x2c0   : > { %1352 = vmatpush2.msra.mxu1 %v1113_v22  ;;  %1423 = vmatpush2.msra.mxu0 %v1115_v23  ;;  %v725_v22 = vld [vmem:[#allocation10 + $0x248] sm:$0xff]  ;;  %v727_v23 = vld [vmem:[#allocation10 + $0x258] sm:$0xff] }
 0x2c1   : > { %1353 = vmatprep.subr.mxu1 %v1106_v24  ;;  %1424 = vmatprep.subr.mxu0 %v1108_v25  ;;  %v724_v24 = vld [vmem:[#allocation10 + $0x240] sm:$0xff]  ;;  %v726_v25 = vld [vmem:[#allocation10 + $0x250] sm:$0xff] }
 0x2c2   : > { %1354 = vmatpush2.msra.mxu1 %v1105_v26  ;;  %1425 = vmatpush2.msra.mxu0 %v1107_v27  ;;  %v717_v26 = vld [vmem:[#allocation10 + $0x208] sm:$0xff]  ;;  %v719_v27 = vld [vmem:[#allocation10 + $0x218] sm:$0xff] }
 0x2c3   : > { %1355 = vmatprep.subr.mxu1 %v1098_v28  ;;  %1426 = vmatprep.subr.mxu0 %v1100_v29  ;;  %v716_v28 = vld [vmem:[#allocation10 + $0x200] sm:$0xff]  ;;  %v718_v29 = vld [vmem:[#allocation10 + $0x210] sm:$0xff] }
 0x2c4   : > { %1356 = vmatpush2.msra.mxu1 %v1097_v30  ;;  %1427 = vmatpush2.msra.mxu0 %v1099_v31  ;;  %v709_v30 = vld [vmem:[#allocation10 + $0x1c8] sm:$0xff]  ;;  %v711_v31 = vld [vmem:[#allocation10 + $0x1d8] sm:$0xff] }
 0x2c5   : > { %1357 = vmatprep.subr.mxu1 %v1090_v32  ;;  %1428 = vmatprep.subr.mxu0 %v1092_v33  ;;  %v708_v32 = vld [vmem:[#allocation10 + $0x1c0] sm:$0xff]  ;;  %v710_v33 = vld [vmem:[#allocation10 + $0x1d0] sm:$0xff] }
 0x2c6   : > { %1358 = vmatpush2.msra.mxu1 %v1089_v34  ;;  %1429 = vmatpush2.msra.mxu0 %v1091_v35  ;;  %v701_v34 = vld [vmem:[#allocation10 + $0x188] sm:$0xff]  ;;  %v703_v35 = vld [vmem:[#allocation10 + $0x198] sm:$0xff] }
 0x2c7   : > { %1359 = vmatprep.subr.mxu1 %v1082_v36  ;;  %1430 = vmatprep.subr.mxu0 %v1084_v37  ;;  %v700_v36 = vld [vmem:[#allocation10 + $0x180] sm:$0xff]  ;;  %v702_v37 = vld [vmem:[#allocation10 + $0x190] sm:$0xff] }
 0x2c8   : > { %1360 = vmatpush2.msra.mxu1 %v1081_v38  ;;  %1431 = vmatpush2.msra.mxu0 %v1083_v39  ;;  %v693_v38 = vld [vmem:[#allocation10 + $0x148] sm:$0xff]  ;;  %v695_v39 = vld [vmem:[#allocation10 + $0x158] sm:$0xff] }
 0x2c9   : > { %1361 = vmatprep.subr.mxu1 %v1074_v40  ;;  %1432 = vmatprep.subr.mxu0 %v1076_v41  ;;  %v692_v40 = vld [vmem:[#allocation10 + $0x140] sm:$0xff]  ;;  %v694_v41 = vld [vmem:[#allocation10 + $0x150] sm:$0xff] }
 0x2ca   : > { %1362 = vmatpush2.msra.mxu1 %v1073_v42  ;;  %1433 = vmatpush2.msra.mxu0 %v1075_v43  ;;  %v685_v42 = vld [vmem:[#allocation10 + $0x108] sm:$0xff]  ;;  %v687_v43 = vld [vmem:[#allocation10 + $0x118] sm:$0xff] }
 0x2cb   : > { %1363 = vmatprep.subr.mxu1 %v1066_v44  ;;  %1434 = vmatprep.subr.mxu0 %v1068_v45  ;;  %v684_v44 = vld [vmem:[#allocation10 + $0x100] sm:$0xff]  ;;  %v686_v45 = vld [vmem:[#allocation10 + $0x110] sm:$0xff] }
 0x2cc   : > { %1364 = vmatpush2.msra.mxu1 %v1065_v46  ;;  %1435 = vmatpush2.msra.mxu0 %v1067_v47  ;;  %v677_v46 = vld [vmem:[#allocation10 + $0xc8] sm:$0xff]  ;;  %v679_v47 = vld [vmem:[#allocation10 + $0xd8] sm:$0xff] }
 0x2cd   : > { %1365 = vmatprep.subr.mxu1 %v1058_v48  ;;  %1436 = vmatprep.subr.mxu0 %v1060_v49  ;;  %v676_v48 = vld [vmem:[#allocation10 + $0xc0] sm:$0xff]  ;;  %v678_v49 = vld [vmem:[#allocation10 + $0xd0] sm:$0xff] }
 0x2ce   : > { %1366 = vmatpush2.msra.mxu1 %v1057_v50  ;;  %1437 = vmatpush2.msra.mxu0 %v1059_v51  ;;  %v669_v50 = vld [vmem:[#allocation10 + $0x88] sm:$0xff]  ;;  %v671_v51 = vld [vmem:[#allocation10 + $0x98] sm:$0xff] }
 0x2cf   : > { %1367 = vmatprep.subr.mxu1 %v1050_v52  ;;  %1438 = vmatprep.subr.mxu0 %v1052_v53  ;;  %v668_v52 = vld [vmem:[#allocation10 + $0x80] sm:$0xff]  ;;  %v670_v53 = vld [vmem:[#allocation10 + $0x90] sm:$0xff] }
 0x2d0   : > { %1368 = vmatpush2.msra.mxu1 %v1049_v54  ;;  %1439 = vmatpush2.msra.mxu0 %v1051_v57  ;;  %v661_v54 = vld [vmem:[#allocation10 + $0x48] sm:$0xff]  ;;  %v663_v57 = vld [vmem:[#allocation10 + $0x58] sm:$0xff] }
 0x2d1   : > { %1369 = vmatprep.subr.mxu1 %v1042_v58  ;;  %1440 = vmatprep.subr.mxu0 %v1044_v59  ;;  %v660_v58 = vld [vmem:[#allocation10 + $0x40] sm:$0xff]  ;;  %v662_v59 = vld [vmem:[#allocation10 + $0x50] sm:$0xff] }
 0x2d2   : > { %1370 = vmatpush2.msra.mxu1 %v1041_v60  ;;  %1441 = vmatpush2.msra.mxu0 %v1043_v61  ;;  %v653_v60 = vld [vmem:[#allocation10 + $0x8] sm:$0xff]  ;;  %v655_v61 = vld [vmem:[#allocation10 + $0x18] sm:$0xff] }
 0x2d3   : > { %1372 = vmatmul.mubr.f32.vlgmr.msra.gmra.mxu1 %v3707_v56  ;;  %1443 = vmatmul.mubr.f32.vlgmr.msra.gmra.mxu0 %v3707_v56  ;;  %v749_v56 = vld [vmem:[#allocation10 + $0x308] sm:$0xff] }
 0x2d4   : > { %1449 = vmatprep.subr.mxu1 %v773_v62  ;;  %1520 = vmatprep.subr.mxu0 %v775_v63  ;;  %v652_v62 = vld [vmem:[#allocation10] sm:$0xff]  ;;  %v654_v63 = vld [vmem:[#allocation10 + $0x10] sm:$0xff] }
 0x2d5   : > { %1450 = vmatpush1.msra.mxu1 %v772_v0  ;;  %1513 = vmatprep.mubr.f32.mxu1 %v3705_v55  ;;  %v901_v0 = vld [vmem:[#allocation10 + $0x7c8] sm:$0xff] }
 0x2d6   : > { %1521 = vmatpush1.msra.mxu0 %v774_v2  ;;  %1584 = vmatprep.mubr.f32.mxu0 %v3705_v55  ;;  %v903_v2 = vld [vmem:[#allocation10 + $0x7d8] sm:$0xff] }
 0x2d7   : > { %1451 = vmatprep.subr.mxu1 %v765_v3  ;;  %1522 = vmatprep.subr.mxu0 %v767_v4  ;;  %v900_v3 = vld [vmem:[#allocation10 + $0x7c0] sm:$0xff]  ;;  %v902_v4 = vld [vmem:[#allocation10 + $0x7d0] sm:$0xff] }
 0x2d8   : > { %1452 = vmatpush1.msra.mxu1 %v764_v5  ;;  %1523 = vmatpush1.msra.mxu0 %v766_v6  ;;  %v893_v5 = vld [vmem:[#allocation10 + $0x788] sm:$0xff]  ;;  %v895_v6 = vld [vmem:[#allocation10 + $0x798] sm:$0xff] }
 0x2d9   : > { %1453 = vmatprep.subr.mxu1 %v757_v7  ;;  %1524 = vmatprep.subr.mxu0 %v759_v8  ;;  %v892_v7 = vld [vmem:[#allocation10 + $0x780] sm:$0xff]  ;;  %v894_v8 = vld [vmem:[#allocation10 + $0x790] sm:$0xff] }
 0x2da   : > { %1454 = vmatpush1.msra.mxu1 %v756_v9  ;;  %1525 = vmatpush1.msra.mxu0 %v758_v10  ;;  %v885_v9 = vld [vmem:[#allocation10 + $0x748] sm:$0xff]  ;;  %v887_v10 = vld [vmem:[#allocation10 + $0x758] sm:$0xff] }
 0x2db   : > { %1455 = vmatprep.subr.mxu1 %v749_v56  ;;  %1526 = vmatprep.subr.mxu0 %v751_v11  ;;  %v884_v56 = vld [vmem:[#allocation10 + $0x740] sm:$0xff]  ;;  %v886_v11 = vld [vmem:[#allocation10 + $0x750] sm:$0xff] }
 0x2dc   : > { %1456 = vmatpush1.msra.mxu1 %v748_v12  ;;  %1527 = vmatpush1.msra.mxu0 %v750_v13  ;;  %v877_v12 = vld [vmem:[#allocation10 + $0x708] sm:$0xff]  ;;  %v879_v13 = vld [vmem:[#allocation10 + $0x718] sm:$0xff] }
 0x2dd   : > { %1457 = vmatprep.subr.mxu1 %v741_v14  ;;  %1528 = vmatprep.subr.mxu0 %v743_v15  ;;  %v876_v14 = vld [vmem:[#allocation10 + $0x700] sm:$0xff]  ;;  %v878_v15 = vld [vmem:[#allocation10 + $0x710] sm:$0xff] }
 0x2de   : > { %1458 = vmatpush1.msra.mxu1 %v740_v16  ;;  %1529 = vmatpush1.msra.mxu0 %v742_v17  ;;  %v869_v16 = vld [vmem:[#allocation10 + $0x6c8] sm:$0xff]  ;;  %v871_v17 = vld [vmem:[#allocation10 + $0x6d8] sm:$0xff] }
 0x2df   : > { %1459 = vmatprep.subr.mxu1 %v733_v18  ;;  %1530 = vmatprep.subr.mxu0 %v735_v19  ;;  %v868_v18 = vld [vmem:[#allocation10 + $0x6c0] sm:$0xff]  ;;  %v870_v19 = vld [vmem:[#allocation10 + $0x6d0] sm:$0xff] }
 0x2e0   : > { %1460 = vmatpush1.msra.mxu1 %v732_v20  ;;  %1531 = vmatpush1.msra.mxu0 %v734_v21  ;;  %v861_v20 = vld [vmem:[#allocation10 + $0x688] sm:$0xff]  ;;  %v863_v21 = vld [vmem:[#allocation10 + $0x698] sm:$0xff] }
 0x2e1   : > { %1461 = vmatprep.subr.mxu1 %v725_v22  ;;  %1532 = vmatprep.subr.mxu0 %v727_v23  ;;  %v860_v22 = vld [vmem:[#allocation10 + $0x680] sm:$0xff]  ;;  %v862_v23 = vld [vmem:[#allocation10 + $0x690] sm:$0xff] }
 0x2e2   : > { %1462 = vmatpush1.msra.mxu1 %v724_v24  ;;  %1533 = vmatpush1.msra.mxu0 %v726_v25  ;;  %v853_v24 = vld [vmem:[#allocation10 + $0x648] sm:$0xff]  ;;  %v855_v25 = vld [vmem:[#allocation10 + $0x658] sm:$0xff] }
 0x2e3   : > { %1463 = vmatprep.subr.mxu1 %v717_v26  ;;  %1534 = vmatprep.subr.mxu0 %v719_v27  ;;  %v852_v26 = vld [vmem:[#allocation10 + $0x640] sm:$0xff]  ;;  %v854_v27 = vld [vmem:[#allocation10 + $0x650] sm:$0xff] }
 0x2e4   : > { %1464 = vmatpush1.msra.mxu1 %v716_v28  ;;  %1535 = vmatpush1.msra.mxu0 %v718_v29  ;;  %v845_v28 = vld [vmem:[#allocation10 + $0x608] sm:$0xff]  ;;  %v847_v29 = vld [vmem:[#allocation10 + $0x618] sm:$0xff] }
 0x2e5   : > { %1465 = vmatprep.subr.mxu1 %v709_v30  ;;  %1536 = vmatprep.subr.mxu0 %v711_v31  ;;  %v844_v30 = vld [vmem:[#allocation10 + $0x600] sm:$0xff]  ;;  %v846_v31 = vld [vmem:[#allocation10 + $0x610] sm:$0xff] }
 0x2e6   : > { %1466 = vmatpush1.msra.mxu1 %v708_v32  ;;  %1537 = vmatpush1.msra.mxu0 %v710_v33  ;;  %v837_v32 = vld [vmem:[#allocation10 + $0x5c8] sm:$0xff]  ;;  %v839_v33 = vld [vmem:[#allocation10 + $0x5d8] sm:$0xff] }
 0x2e7   : > { %1467 = vmatprep.subr.mxu1 %v701_v34  ;;  %1538 = vmatprep.subr.mxu0 %v703_v35  ;;  %v836_v34 = vld [vmem:[#allocation10 + $0x5c0] sm:$0xff]  ;;  %v838_v35 = vld [vmem:[#allocation10 + $0x5d0] sm:$0xff] }
 0x2e8   : > { %1468 = vmatpush1.msra.mxu1 %v700_v36  ;;  %1539 = vmatpush1.msra.mxu0 %v702_v37  ;;  %v829_v36 = vld [vmem:[#allocation10 + $0x588] sm:$0xff]  ;;  %v831_v37 = vld [vmem:[#allocation10 + $0x598] sm:$0xff] }
 0x2e9   : > { %1469 = vmatprep.subr.mxu1 %v693_v38  ;;  %1540 = vmatprep.subr.mxu0 %v695_v39  ;;  %v828_v38 = vld [vmem:[#allocation10 + $0x580] sm:$0xff]  ;;  %v830_v39 = vld [vmem:[#allocation10 + $0x590] sm:$0xff] }
 0x2ea   : > { %1470 = vmatpush1.msra.mxu1 %v692_v40  ;;  %1541 = vmatpush1.msra.mxu0 %v694_v41  ;;  %v821_v40 = vld [vmem:[#allocation10 + $0x548] sm:$0xff]  ;;  %v823_v41 = vld [vmem:[#allocation10 + $0x558] sm:$0xff] }
 0x2eb   : > { %1471 = vmatprep.subr.mxu1 %v685_v42  ;;  %1542 = vmatprep.subr.mxu0 %v687_v43  ;;  %v820_v42 = vld [vmem:[#allocation10 + $0x540] sm:$0xff]  ;;  %v822_v43 = vld [vmem:[#allocation10 + $0x550] sm:$0xff] }
 0x2ec   : > { %1472 = vmatpush1.msra.mxu1 %v684_v44  ;;  %1543 = vmatpush1.msra.mxu0 %v686_v45  ;;  %v813_v44 = vld [vmem:[#allocation10 + $0x508] sm:$0xff]  ;;  %v815_v45 = vld [vmem:[#allocation10 + $0x518] sm:$0xff] }
 0x2ed   : > { %1473 = vmatprep.subr.mxu1 %v677_v46  ;;  %1544 = vmatprep.subr.mxu0 %v679_v47  ;;  %v812_v46 = vld [vmem:[#allocation10 + $0x500] sm:$0xff]  ;;  %v814_v47 = vld [vmem:[#allocation10 + $0x510] sm:$0xff] }
 0x2ee   : > { %1474 = vmatpush1.msra.mxu1 %v676_v48  ;;  %1545 = vmatpush1.msra.mxu0 %v678_v49  ;;  %v805_v48 = vld [vmem:[#allocation10 + $0x4c8] sm:$0xff]  ;;  %v807_v49 = vld [vmem:[#allocation10 + $0x4d8] sm:$0xff] }
 0x2ef   : > { %1475 = vmatprep.subr.mxu1 %v669_v50  ;;  %1546 = vmatprep.subr.mxu0 %v671_v51  ;;  %v804_v50 = vld [vmem:[#allocation10 + $0x4c0] sm:$0xff]  ;;  %v806_v51 = vld [vmem:[#allocation10 + $0x4d0] sm:$0xff] }
 0x2f0   : > { %1476 = vmatpush1.msra.mxu1 %v668_v52  ;;  %1547 = vmatpush1.msra.mxu0 %v670_v53  ;;  %v797_v52 = vld [vmem:[#allocation10 + $0x488] sm:$0xff]  ;;  %v799_v53 = vld [vmem:[#allocation10 + $0x498] sm:$0xff] }
 0x2f1   : > { %1477 = vmatprep.subr.mxu1 %v661_v54  ;;  %1548 = vmatprep.subr.mxu0 %v663_v57  ;;  %v796_v54 = vld [vmem:[#allocation10 + $0x480] sm:$0xff]  ;;  %v798_v57 = vld [vmem:[#allocation10 + $0x490] sm:$0xff] }
 0x2f2   : > { %1478 = vmatpush1.msra.mxu1 %v660_v58  ;;  %1549 = vmatpush1.msra.mxu0 %v662_v59  ;;  %v789_v58 = vld [vmem:[#allocation10 + $0x448] sm:$0xff]  ;;  %v791_v59 = vld [vmem:[#allocation10 + $0x458] sm:$0xff] }
 0x2f3   : > { %1479 = vmatprep.subr.mxu1 %v653_v60  ;;  %1550 = vmatprep.subr.mxu0 %v655_v61  ;;  %v788_v60 = vld [vmem:[#allocation10 + $0x440] sm:$0xff]  ;;  %v790_v61 = vld [vmem:[#allocation10 + $0x450] sm:$0xff] }
 0x2f4   : > { %1480 = vmatpush1.msra.mxu1 %v652_v62  ;;  %1551 = vmatpush1.msra.mxu0 %v654_v63  ;;  %v781_v62 = vld [vmem:[#allocation10 + $0x408] sm:$0xff]  ;;  %v783_v63 = vld [vmem:[#allocation10 + $0x418] sm:$0xff] }
 0x2f5   : > { %1481 = vmatprep.subr.mxu1 %v901_v0  ;;  %1552 = vmatprep.subr.mxu0 %v903_v2  ;;  %v780_v0 = vld [vmem:[#allocation10 + $0x400] sm:$0xff]  ;;  %v782_v2 = vld [vmem:[#allocation10 + $0x410] sm:$0xff] }
 0x2f6   : > { %1482 = vmatpush2.msra.mxu1 %v900_v3  ;;  %1553 = vmatpush2.msra.mxu0 %v902_v4  ;;  %v777_v3 = vld [vmem:[#allocation10 + $0x3e8] sm:$0xff]  ;;  %v779_v4 = vld [vmem:[#allocation10 + $0x3f8] sm:$0xff] }
 0x2f7   : > { %1483 = vmatprep.subr.mxu1 %v893_v5  ;;  %1554 = vmatprep.subr.mxu0 %v895_v6  ;;  %v776_v5 = vld [vmem:[#allocation10 + $0x3e0] sm:$0xff]  ;;  %v778_v6 = vld [vmem:[#allocation10 + $0x3f0] sm:$0xff] }
 0x2f8   : > { %1484 = vmatpush2.msra.mxu1 %v892_v7  ;;  %1555 = vmatpush2.msra.mxu0 %v894_v8  ;;  %v769_v7 = vld [vmem:[#allocation10 + $0x3a8] sm:$0xff]  ;;  %v771_v8 = vld [vmem:[#allocation10 + $0x3b8] sm:$0xff] }
 0x2f9   : > { %1485 = vmatprep.subr.mxu1 %v885_v9  ;;  %1556 = vmatprep.subr.mxu0 %v887_v10  ;;  %v768_v9 = vld [vmem:[#allocation10 + $0x3a0] sm:$0xff]  ;;  %v770_v10 = vld [vmem:[#allocation10 + $0x3b0] sm:$0xff] }
 0x2fa   : > { %1486 = vmatpush2.msra.mxu1 %v884_v56  ;;  %1557 = vmatpush2.msra.mxu0 %v886_v11  ;;  %v761_v56 = vld [vmem:[#allocation10 + $0x368] sm:$0xff]  ;;  %v763_v11 = vld [vmem:[#allocation10 + $0x378] sm:$0xff] }
 0x2fb   : > { %1487 = vmatprep.subr.mxu1 %v877_v12  ;;  %1558 = vmatprep.subr.mxu0 %v879_v13  ;;  %v760_v12 = vld [vmem:[#allocation10 + $0x360] sm:$0xff]  ;;  %v762_v13 = vld [vmem:[#allocation10 + $0x370] sm:$0xff] }
 0x2fc   : > { %1488 = vmatpush2.msra.mxu1 %v876_v14  ;;  %1559 = vmatpush2.msra.mxu0 %v878_v15  ;;  %v753_v14 = vld [vmem:[#allocation10 + $0x328] sm:$0xff]  ;;  %v755_v15 = vld [vmem:[#allocation10 + $0x338] sm:$0xff] }
 0x2fd   : > { %1489 = vmatprep.subr.mxu1 %v869_v16  ;;  %1560 = vmatprep.subr.mxu0 %v871_v17  ;;  %v752_v16 = vld [vmem:[#allocation10 + $0x320] sm:$0xff]  ;;  %v754_v17 = vld [vmem:[#allocation10 + $0x330] sm:$0xff] }
 0x2fe   : > { %1490 = vmatpush2.msra.mxu1 %v868_v18  ;;  %1561 = vmatpush2.msra.mxu0 %v870_v19  ;;  %v745_v18 = vld [vmem:[#allocation10 + $0x2e8] sm:$0xff]  ;;  %v747_v19 = vld [vmem:[#allocation10 + $0x2f8] sm:$0xff] }
 0x2ff   : > { %1491 = vmatprep.subr.mxu1 %v861_v20  ;;  %1562 = vmatprep.subr.mxu0 %v863_v21  ;;  %v746_v20 = vld [vmem:[#allocation10 + $0x2f0] sm:$0xff]  ;;  %v737_v21 = vld [vmem:[#allocation10 + $0x2a8] sm:$0xff] }
 0x300   : > { %1492 = vmatpush2.msra.mxu1 %v860_v22  ;;  %1563 = vmatpush2.msra.mxu0 %v862_v23  ;;  %v739_v22 = vld [vmem:[#allocation10 + $0x2b8] sm:$0xff]  ;;  %v736_v23 = vld [vmem:[#allocation10 + $0x2a0] sm:$0xff] }
 0x301   : > { %1493 = vmatprep.subr.mxu1 %v853_v24  ;;  %1564 = vmatprep.subr.mxu0 %v855_v25  ;;  %v738_v24 = vld [vmem:[#allocation10 + $0x2b0] sm:$0xff]  ;;  %v729_v25 = vld [vmem:[#allocation10 + $0x268] sm:$0xff] }
 0x302   : > { %1494 = vmatpush2.msra.mxu1 %v852_v26  ;;  %1565 = vmatpush2.msra.mxu0 %v854_v27  ;;  %v731_v26 = vld [vmem:[#allocation10 + $0x278] sm:$0xff]  ;;  %v728_v27 = vld [vmem:[#allocation10 + $0x260] sm:$0xff] }
 0x303   : > { %1495 = vmatprep.subr.mxu1 %v845_v28  ;;  %1566 = vmatprep.subr.mxu0 %v847_v29  ;;  %v730_v28 = vld [vmem:[#allocation10 + $0x270] sm:$0xff]  ;;  %v721_v29 = vld [vmem:[#allocation10 + $0x228] sm:$0xff] }
 0x304   : > { %1496 = vmatpush2.msra.mxu1 %v844_v30  ;;  %1567 = vmatpush2.msra.mxu0 %v846_v31  ;;  %v723_v30 = vld [vmem:[#allocation10 + $0x238] sm:$0xff]  ;;  %v720_v31 = vld [vmem:[#allocation10 + $0x220] sm:$0xff] }
 0x305   : > { %1497 = vmatprep.subr.mxu1 %v837_v32  ;;  %1568 = vmatprep.subr.mxu0 %v839_v33  ;;  %v722_v32 = vld [vmem:[#allocation10 + $0x230] sm:$0xff]  ;;  %v713_v33 = vld [vmem:[#allocation10 + $0x1e8] sm:$0xff] }
 0x306   : > { %1498 = vmatpush2.msra.mxu1 %v836_v34  ;;  %1569 = vmatpush2.msra.mxu0 %v838_v35  ;;  %v715_v34 = vld [vmem:[#allocation10 + $0x1f8] sm:$0xff]  ;;  %v712_v35 = vld [vmem:[#allocation10 + $0x1e0] sm:$0xff] }
 0x307   : > { %1499 = vmatprep.subr.mxu1 %v829_v36  ;;  %1570 = vmatprep.subr.mxu0 %v831_v37  ;;  %v714_v36 = vld [vmem:[#allocation10 + $0x1f0] sm:$0xff]  ;;  %v705_v37 = vld [vmem:[#allocation10 + $0x1a8] sm:$0xff] }
 0x308   : > { %1500 = vmatpush2.msra.mxu1 %v828_v38  ;;  %1571 = vmatpush2.msra.mxu0 %v830_v39  ;;  %v707_v38 = vld [vmem:[#allocation10 + $0x1b8] sm:$0xff]  ;;  %v704_v39 = vld [vmem:[#allocation10 + $0x1a0] sm:$0xff] }
 0x309   : > { %1501 = vmatprep.subr.mxu1 %v821_v40  ;;  %1572 = vmatprep.subr.mxu0 %v823_v41  ;;  %v706_v40 = vld [vmem:[#allocation10 + $0x1b0] sm:$0xff]  ;;  %v697_v41 = vld [vmem:[#allocation10 + $0x168] sm:$0xff] }
 0x30a   : > { %1502 = vmatpush2.msra.mxu1 %v820_v42  ;;  %1573 = vmatpush2.msra.mxu0 %v822_v43  ;;  %v699_v42 = vld [vmem:[#allocation10 + $0x178] sm:$0xff]  ;;  %v696_v43 = vld [vmem:[#allocation10 + $0x160] sm:$0xff] }
 0x30b   : > { %1503 = vmatprep.subr.mxu1 %v813_v44  ;;  %1574 = vmatprep.subr.mxu0 %v815_v45  ;;  %v698_v44 = vld [vmem:[#allocation10 + $0x170] sm:$0xff]  ;;  %v689_v45 = vld [vmem:[#allocation10 + $0x128] sm:$0xff] }
 0x30c   : > { %1504 = vmatpush2.msra.mxu1 %v812_v46  ;;  %1575 = vmatpush2.msra.mxu0 %v814_v47  ;;  %v691_v46 = vld [vmem:[#allocation10 + $0x138] sm:$0xff]  ;;  %v688_v47 = vld [vmem:[#allocation10 + $0x120] sm:$0xff] }
 0x30d   : > { %1505 = vmatprep.subr.mxu1 %v805_v48  ;;  %1576 = vmatprep.subr.mxu0 %v807_v49  ;;  %v690_v48 = vld [vmem:[#allocation10 + $0x130] sm:$0xff]  ;;  %v681_v49 = vld [vmem:[#allocation10 + $0xe8] sm:$0xff] }
 0x30e   : > { %1506 = vmatpush2.msra.mxu1 %v804_v50  ;;  %1577 = vmatpush2.msra.mxu0 %v806_v51  ;;  %v683_v50 = vld [vmem:[#allocation10 + $0xf8] sm:$0xff]  ;;  %v680_v51 = vld [vmem:[#allocation10 + $0xe0] sm:$0xff] }
 0x30f   : > { %1507 = vmatprep.subr.mxu1 %v797_v52  ;;  %1578 = vmatprep.subr.mxu0 %v799_v53  ;;  %v682_v52 = vld [vmem:[#allocation10 + $0xf0] sm:$0xff]  ;;  %v673_v53 = vld [vmem:[#allocation10 + $0xa8] sm:$0xff] }
 0x310   : > { %1508 = vmatpush2.msra.mxu1 %v796_v54  ;;  %1579 = vmatpush2.msra.mxu0 %v798_v57  ;;  %v675_v54 = vld [vmem:[#allocation10 + $0xb8] sm:$0xff]  ;;  %v672_v57 = vld [vmem:[#allocation10 + $0xa0] sm:$0xff] }
 0x311   : > { %1509 = vmatprep.subr.mxu1 %v789_v58  ;;  %1580 = vmatprep.subr.mxu0 %v791_v59  ;;  %v674_v58 = vld [vmem:[#allocation10 + $0xb0] sm:$0xff]  ;;  %v665_v59 = vld [vmem:[#allocation10 + $0x68] sm:$0xff] }
 0x312   : > { %1510 = vmatpush2.msra.mxu1 %v788_v60  ;;  %1581 = vmatpush2.msra.mxu0 %v790_v61  ;;  %v667_v60 = vld [vmem:[#allocation10 + $0x78] sm:$0xff]  ;;  %v664_v61 = vld [vmem:[#allocation10 + $0x60] sm:$0xff] }
 0x313   : > { %1511 = vmatprep.subr.mxu1 %v781_v62  ;;  %1582 = vmatprep.subr.mxu0 %v783_v63  ;;  %v666_v62 = vld [vmem:[#allocation10 + $0x70] sm:$0xff]  ;;  %v657_v63 = vld [vmem:[#allocation10 + $0x28] sm:$0xff] }
 0x314   : > { %1512 = vmatpush2.msra.mxu1 %v780_v0  ;;  %1583 = vmatpush2.msra.mxu0 %v782_v2  ;;  %v659_v0 = vld [vmem:[#allocation10 + $0x38] sm:$0xff]  ;;  %v656_v2 = vld [vmem:[#allocation10 + $0x20] sm:$0xff] }
 0x315   : > { %1514 = vmatmul.mubr.f32.vlgmr.msra.gmra.mxu1 %v3703_v1  ;;  %1585 = vmatmul.mubr.f32.vlgmr.msra.gmra.mxu0 %v3703_v1 }
 0x316   : > { %1591 = vmatprep.subr.mxu1 %v777_v3  ;;  %1662 = vmatprep.subr.mxu0 %v779_v4  ;;  %v658_v3 = vld [vmem:[#allocation10 + $0x30] sm:$0xff]  ;;  %v905_v4 = vld [vmem:[#allocation10 + $0x7e8] sm:$0xff] }
 0x317   : > { %1592 = vmatpush1.msra.mxu1 %v776_v5  ;;  %1655 = vmatprep.mubr.f32.mxu1 %v3705_v55  ;;  %v907_v5 = vld [vmem:[#allocation10 + $0x7f8] sm:$0xff] }
 0x318   : > { %1663 = vmatpush1.msra.mxu0 %v778_v6  ;;  %1726 = vmatprep.mubr.f32.mxu0 %v3705_v55  ;;  %v744_v55 = vld [vmem:[#allocation10 + $0x2e0] sm:$0xff] }
 0x319   : > { %1593 = vmatprep.subr.mxu1 %v769_v7  ;;  %1664 = vmatprep.subr.mxu0 %v771_v8  ;;  %v904_v6 = vld [vmem:[#allocation10 + $0x7e0] sm:$0xff]  ;;  %v906_v7 = vld [vmem:[#allocation10 + $0x7f0] sm:$0xff]  ;;  %v897_v8 = vld [vmem:[#allocation10 + $0x7a8] sm:$0xff] }
 0x31a   : > { %1594 = vmatpush1.msra.mxu1 %v768_v9  ;;  %1665 = vmatpush1.msra.mxu0 %v770_v10  ;;  %v899_v9 = vld [vmem:[#allocation10 + $0x7b8] sm:$0xff]  ;;  %v896_v10 = vld [vmem:[#allocation10 + $0x7a0] sm:$0xff] }
 0x31b   : > { %1595 = vmatprep.subr.mxu1 %v761_v56  ;;  %1666 = vmatprep.subr.mxu0 %v763_v11  ;;  %v898_v56 = vld [vmem:[#allocation10 + $0x7b0] sm:$0xff]  ;;  %v889_v11 = vld [vmem:[#allocation10 + $0x768] sm:$0xff] }
 0x31c   : > { %1596 = vmatpush1.msra.mxu1 %v760_v12  ;;  %1667 = vmatpush1.msra.mxu0 %v762_v13  ;;  %v891_v12 = vld [vmem:[#allocation10 + $0x778] sm:$0xff]  ;;  %v888_v13 = vld [vmem:[#allocation10 + $0x760] sm:$0xff] }
 0x31d   : > { %1597 = vmatprep.subr.mxu1 %v753_v14  ;;  %1668 = vmatprep.subr.mxu0 %v755_v15  ;;  %v890_v14 = vld [vmem:[#allocation10 + $0x770] sm:$0xff]  ;;  %v881_v15 = vld [vmem:[#allocation10 + $0x728] sm:$0xff] }
 0x31e   : > { %1598 = vmatpush1.msra.mxu1 %v752_v16  ;;  %1669 = vmatpush1.msra.mxu0 %v754_v17  ;;  %v883_v16 = vld [vmem:[#allocation10 + $0x738] sm:$0xff]  ;;  %v880_v17 = vld [vmem:[#allocation10 + $0x720] sm:$0xff] }
 0x31f   : > { %1599 = vmatprep.subr.mxu1 %v745_v18  ;;  %1670 = vmatprep.subr.mxu0 %v747_v19  ;;  %v882_v18 = vld [vmem:[#allocation10 + $0x730] sm:$0xff]  ;;  %v873_v19 = vld [vmem:[#allocation10 + $0x6e8] sm:$0xff] }
 0x320   : > { %1600 = vmatpush1.msra.mxu1 %v744_v55  ;;  %1671 = vmatpush1.msra.mxu0 %v746_v20  ;;  %v875_v55 = vld [vmem:[#allocation10 + $0x6f8] sm:$0xff]  ;;  %v872_v20 = vld [vmem:[#allocation10 + $0x6e0] sm:$0xff] }
 0x321   : > { %1601 = vmatprep.subr.mxu1 %v737_v21  ;;  %1672 = vmatprep.subr.mxu0 %v739_v22  ;;  %v874_v21 = vld [vmem:[#allocation10 + $0x6f0] sm:$0xff]  ;;  %v865_v22 = vld [vmem:[#allocation10 + $0x6a8] sm:$0xff] }
 0x322   : > { %1602 = vmatpush1.msra.mxu1 %v736_v23  ;;  %1673 = vmatpush1.msra.mxu0 %v738_v24  ;;  %v867_v23 = vld [vmem:[#allocation10 + $0x6b8] sm:$0xff]  ;;  %v864_v24 = vld [vmem:[#allocation10 + $0x6a0] sm:$0xff] }
 0x323   : > { %1603 = vmatprep.subr.mxu1 %v729_v25  ;;  %1674 = vmatprep.subr.mxu0 %v731_v26  ;;  %v866_v25 = vld [vmem:[#allocation10 + $0x6b0] sm:$0xff]  ;;  %v857_v26 = vld [vmem:[#allocation10 + $0x668] sm:$0xff] }
 0x324   : > { %1604 = vmatpush1.msra.mxu1 %v728_v27  ;;  %1675 = vmatpush1.msra.mxu0 %v730_v28  ;;  %v859_v27 = vld [vmem:[#allocation10 + $0x678] sm:$0xff]  ;;  %v856_v28 = vld [vmem:[#allocation10 + $0x660] sm:$0xff] }
 0x325   : > { %1605 = vmatprep.subr.mxu1 %v721_v29  ;;  %1676 = vmatprep.subr.mxu0 %v723_v30  ;;  %v858_v29 = vld [vmem:[#allocation10 + $0x670] sm:$0xff]  ;;  %v849_v30 = vld [vmem:[#allocation10 + $0x628] sm:$0xff] }
 0x326   : > { %1606 = vmatpush1.msra.mxu1 %v720_v31  ;;  %1677 = vmatpush1.msra.mxu0 %v722_v32  ;;  %v851_v31 = vld [vmem:[#allocation10 + $0x638] sm:$0xff]  ;;  %v848_v32 = vld [vmem:[#allocation10 + $0x620] sm:$0xff] }
 0x327   : > { %1607 = vmatprep.subr.mxu1 %v713_v33  ;;  %1678 = vmatprep.subr.mxu0 %v715_v34  ;;  %v850_v33 = vld [vmem:[#allocation10 + $0x630] sm:$0xff]  ;;  %v841_v34 = vld [vmem:[#allocation10 + $0x5e8] sm:$0xff] }
 0x328   : > { %1608 = vmatpush1.msra.mxu1 %v712_v35  ;;  %1679 = vmatpush1.msra.mxu0 %v714_v36  ;;  %v843_v35 = vld [vmem:[#allocation10 + $0x5f8] sm:$0xff]  ;;  %v840_v36 = vld [vmem:[#allocation10 + $0x5e0] sm:$0xff] }
 0x329   : > { %1609 = vmatprep.subr.mxu1 %v705_v37  ;;  %1680 = vmatprep.subr.mxu0 %v707_v38  ;;  %v842_v37 = vld [vmem:[#allocation10 + $0x5f0] sm:$0xff]  ;;  %v833_v38 = vld [vmem:[#allocation10 + $0x5a8] sm:$0xff] }
 0x32a   : > { %1610 = vmatpush1.msra.mxu1 %v704_v39  ;;  %1681 = vmatpush1.msra.mxu0 %v706_v40  ;;  %v835_v39 = vld [vmem:[#allocation10 + $0x5b8] sm:$0xff]  ;;  %v832_v40 = vld [vmem:[#allocation10 + $0x5a0] sm:$0xff] }
 0x32b   : > { %1611 = vmatprep.subr.mxu1 %v697_v41  ;;  %1682 = vmatprep.subr.mxu0 %v699_v42  ;;  %v834_v41 = vld [vmem:[#allocation10 + $0x5b0] sm:$0xff]  ;;  %v825_v42 = vld [vmem:[#allocation10 + $0x568] sm:$0xff] }
 0x32c   : > { %1612 = vmatpush1.msra.mxu1 %v696_v43  ;;  %1683 = vmatpush1.msra.mxu0 %v698_v44  ;;  %v827_v43 = vld [vmem:[#allocation10 + $0x578] sm:$0xff]  ;;  %v824_v44 = vld [vmem:[#allocation10 + $0x560] sm:$0xff] }
 0x32d   : > { %1613 = vmatprep.subr.mxu1 %v689_v45  ;;  %1684 = vmatprep.subr.mxu0 %v691_v46  ;;  %v826_v45 = vld [vmem:[#allocation10 + $0x570] sm:$0xff]  ;;  %v817_v46 = vld [vmem:[#allocation10 + $0x528] sm:$0xff] }
 0x32e   : > { %1614 = vmatpush1.msra.mxu1 %v688_v47  ;;  %1685 = vmatpush1.msra.mxu0 %v690_v48  ;;  %v819_v47 = vld [vmem:[#allocation10 + $0x538] sm:$0xff]  ;;  %v816_v48 = vld [vmem:[#allocation10 + $0x520] sm:$0xff] }
 0x32f   : > { %1615 = vmatprep.subr.mxu1 %v681_v49  ;;  %1686 = vmatprep.subr.mxu0 %v683_v50  ;;  %v818_v49 = vld [vmem:[#allocation10 + $0x530] sm:$0xff]  ;;  %v809_v50 = vld [vmem:[#allocation10 + $0x4e8] sm:$0xff] }
 0x330   : > { %1616 = vmatpush1.msra.mxu1 %v680_v51  ;;  %1687 = vmatpush1.msra.mxu0 %v682_v52  ;;  %v811_v51 = vld [vmem:[#allocation10 + $0x4f8] sm:$0xff]  ;;  %v808_v52 = vld [vmem:[#allocation10 + $0x4e0] sm:$0xff] }
 0x331   : > { %1617 = vmatprep.subr.mxu1 %v673_v53  ;;  %1688 = vmatprep.subr.mxu0 %v675_v54  ;;  %v810_v53 = vld [vmem:[#allocation10 + $0x4f0] sm:$0xff]  ;;  %v801_v54 = vld [vmem:[#allocation10 + $0x4a8] sm:$0xff] }
 0x332   : > { %1618 = vmatpush1.msra.mxu1 %v672_v57  ;;  %1689 = vmatpush1.msra.mxu0 %v674_v58  ;;  %v803_v57 = vld [vmem:[#allocation10 + $0x4b8] sm:$0xff]  ;;  %v800_v58 = vld [vmem:[#allocation10 + $0x4a0] sm:$0xff] }
 0x333   : > { %1619 = vmatprep.subr.mxu1 %v665_v59  ;;  %1690 = vmatprep.subr.mxu0 %v667_v60  ;;  %v802_v59 = vld [vmem:[#allocation10 + $0x4b0] sm:$0xff]  ;;  %v793_v60 = vld [vmem:[#allocation10 + $0x468] sm:$0xff] }
 0x334   : > { %1620 = vmatpush1.msra.mxu1 %v664_v61  ;;  %1691 = vmatpush1.msra.mxu0 %v666_v62  ;;  %v795_v61 = vld [vmem:[#allocation10 + $0x478] sm:$0xff]  ;;  %v792_v62 = vld [vmem:[#allocation10 + $0x460] sm:$0xff] }
 0x335   : > { %1621 = vmatprep.subr.mxu1 %v657_v63  ;;  %1692 = vmatprep.subr.mxu0 %v659_v0  ;;  %v794_v63 = vld [vmem:[#allocation10 + $0x470] sm:$0xff]  ;;  %v785_v0 = vld [vmem:[#allocation10 + $0x428] sm:$0xff] }
 0x336   : > { %1622 = vmatpush1.msra.mxu1 %v656_v2  ;;  %1693 = vmatpush1.msra.mxu0 %v658_v3  ;;  %v787_v2 = vld [vmem:[#allocation10 + $0x438] sm:$0xff]  ;;  %v784_v3 = vld [vmem:[#allocation10 + $0x420] sm:$0xff] }
 0x337   : > { %1623 = vmatprep.subr.mxu1 %v905_v4  ;;  %1694 = vmatprep.subr.mxu0 %v907_v5  ;;  %v786_v4 = vld [vmem:[#allocation10 + $0x430] sm:$0xff]  ;;  %v3719_v5 = vpop.f32.mrf.mxu0 }
 0x338   : > { %1624 = vmatpush2.msra.mxu1 %v904_v6  ;;  %1695 = vmatpush2.msra.mxu0 %v906_v7  ;;  %v1855_v6 = vld [vmem:[#allocation10 + $0x13c8] sm:$0xff]  ;;  %v1857_v7 = vld [vmem:[#allocation10 + $0x13d8] sm:$0xff] }
 0x339   : > { %1625 = vmatprep.subr.mxu1 %v897_v8  ;;  %1696 = vmatprep.subr.mxu0 %v899_v9  ;;  %v1854_v8 = vld [vmem:[#allocation10 + $0x13c0] sm:$0xff]  ;;  %v1856_v9 = vld [vmem:[#allocation10 + $0x13d0] sm:$0xff] }
 0x33a   : > { %1626 = vmatpush2.msra.mxu1 %v896_v10  ;;  %1697 = vmatpush2.msra.mxu0 %v898_v56  ;;  %v3723_v10 = vpop.f32.mrf.mxu0  ;;  %v1847_v56 = vld [vmem:[#allocation10 + $0x1388] sm:$0xff] }
 0x33b   : > { %1627 = vmatprep.subr.mxu1 %v889_v11  ;;  %1698 = vmatprep.subr.mxu0 %v891_v12  ;;  %v1849_v11 = vld [vmem:[#allocation10 + $0x1398] sm:$0xff]  ;;  %v1846_v12 = vld [vmem:[#allocation10 + $0x1380] sm:$0xff] }
 0x33c   : > { %1628 = vmatpush2.msra.mxu1 %v888_v13  ;;  %1699 = vmatpush2.msra.mxu0 %v890_v14  ;;  %v1848_v13 = vld [vmem:[#allocation10 + $0x1390] sm:$0xff]  ;;  %v1839_v14 = vld [vmem:[#allocation10 + $0x1348] sm:$0xff] }
 0x33d   : > { %1629 = vmatprep.subr.mxu1 %v881_v15  ;;  %1700 = vmatprep.subr.mxu0 %v883_v16  ;;  %v1841_v15 = vld [vmem:[#allocation10 + $0x1358] sm:$0xff]  ;;  %v1840_v16 = vld [vmem:[#allocation10 + $0x1350] sm:$0xff] }
 0x33e   : > { %1630 = vmatpush2.msra.mxu1 %v880_v17  ;;  %1701 = vmatpush2.msra.mxu0 %v882_v18  ;;  %v1831_v17 = vld [vmem:[#allocation10 + $0x1308] sm:$0xff]  ;;  %v1833_v18 = vld [vmem:[#allocation10 + $0x1318] sm:$0xff] }
 0x33f   : > { %1631 = vmatprep.subr.mxu1 %v873_v19  ;;  %1702 = vmatprep.subr.mxu0 %v875_v55  ;;  %v1830_v19 = vld [vmem:[#allocation10 + $0x1300] sm:$0xff]  ;;  %v1832_v55 = vld [vmem:[#allocation10 + $0x1310] sm:$0xff] }
 0x340   : > { %1632 = vmatpush2.msra.mxu1 %v872_v20  ;;  %1703 = vmatpush2.msra.mxu0 %v874_v21  ;;  %v1823_v20 = vld [vmem:[#allocation10 + $0x12c8] sm:$0xff]  ;;  %v1825_v21 = vld [vmem:[#allocation10 + $0x12d8] sm:$0xff] }
 0x341   : > { %1633 = vmatprep.subr.mxu1 %v865_v22  ;;  %1704 = vmatprep.subr.mxu0 %v867_v23  ;;  %v1822_v22 = vld [vmem:[#allocation10 + $0x12c0] sm:$0xff]  ;;  %v1824_v23 = vld [vmem:[#allocation10 + $0x12d0] sm:$0xff] }
 0x342   : > { %1634 = vmatpush2.msra.mxu1 %v864_v24  ;;  %1705 = vmatpush2.msra.mxu0 %v866_v25  ;;  %v1815_v24 = vld [vmem:[#allocation10 + $0x1288] sm:$0xff]  ;;  %v1817_v25 = vld [vmem:[#allocation10 + $0x1298] sm:$0xff] }
 0x343   : > { %1635 = vmatprep.subr.mxu1 %v857_v26  ;;  %1706 = vmatprep.subr.mxu0 %v859_v27  ;;  %v1814_v26 = vld [vmem:[#allocation10 + $0x1280] sm:$0xff]  ;;  %v1816_v27 = vld [vmem:[#allocation10 + $0x1290] sm:$0xff] }
 0x344   : > { %1636 = vmatpush2.msra.mxu1 %v856_v28  ;;  %1707 = vmatpush2.msra.mxu0 %v858_v29  ;;  %v1807_v28 = vld [vmem:[#allocation10 + $0x1248] sm:$0xff]  ;;  %v1809_v29 = vld [vmem:[#allocation10 + $0x1258] sm:$0xff] }
 0x345   : > { %1637 = vmatprep.subr.mxu1 %v849_v30  ;;  %1708 = vmatprep.subr.mxu0 %v851_v31  ;;  %v1806_v30 = vld [vmem:[#allocation10 + $0x1240] sm:$0xff]  ;;  %v1808_v31 = vld [vmem:[#allocation10 + $0x1250] sm:$0xff] }
 0x346   : > { %1638 = vmatpush2.msra.mxu1 %v848_v32  ;;  %1709 = vmatpush2.msra.mxu0 %v850_v33  ;;  %v1799_v32 = vld [vmem:[#allocation10 + $0x1208] sm:$0xff]  ;;  %v1801_v33 = vld [vmem:[#allocation10 + $0x1218] sm:$0xff] }
 0x347   : > { %1639 = vmatprep.subr.mxu1 %v841_v34  ;;  %1710 = vmatprep.subr.mxu0 %v843_v35  ;;  %v1798_v34 = vld [vmem:[#allocation10 + $0x1200] sm:$0xff]  ;;  %v1800_v35 = vld [vmem:[#allocation10 + $0x1210] sm:$0xff] }
 0x348   : > { %1640 = vmatpush2.msra.mxu1 %v840_v36  ;;  %1711 = vmatpush2.msra.mxu0 %v842_v37  ;;  %v1791_v36 = vld [vmem:[#allocation10 + $0x11c8] sm:$0xff]  ;;  %v1793_v37 = vld [vmem:[#allocation10 + $0x11d8] sm:$0xff] }
 0x349   : > { %1641 = vmatprep.subr.mxu1 %v833_v38  ;;  %1712 = vmatprep.subr.mxu0 %v835_v39  ;;  %v1790_v38 = vld [vmem:[#allocation10 + $0x11c0] sm:$0xff]  ;;  %v1792_v39 = vld [vmem:[#allocation10 + $0x11d0] sm:$0xff] }
 0x34a   : > { %1642 = vmatpush2.msra.mxu1 %v832_v40  ;;  %1713 = vmatpush2.msra.mxu0 %v834_v41  ;;  %v1783_v40 = vld [vmem:[#allocation10 + $0x1188] sm:$0xff]  ;;  %v1785_v41 = vld [vmem:[#allocation10 + $0x1198] sm:$0xff] }
 0x34b   : > { %1643 = vmatprep.subr.mxu1 %v825_v42  ;;  %1714 = vmatprep.subr.mxu0 %v827_v43  ;;  %v1782_v42 = vld [vmem:[#allocation10 + $0x1180] sm:$0xff]  ;;  %v1784_v43 = vld [vmem:[#allocation10 + $0x1190] sm:$0xff] }
 0x34c   : > { %1644 = vmatpush2.msra.mxu1 %v824_v44  ;;  %1715 = vmatpush2.msra.mxu0 %v826_v45  ;;  %v1775_v44 = vld [vmem:[#allocation10 + $0x1148] sm:$0xff]  ;;  %v1777_v45 = vld [vmem:[#allocation10 + $0x1158] sm:$0xff] }
 0x34d   : > { %1645 = vmatprep.subr.mxu1 %v817_v46  ;;  %1716 = vmatprep.subr.mxu0 %v819_v47  ;;  %v1774_v46 = vld [vmem:[#allocation10 + $0x1140] sm:$0xff]  ;;  %v1776_v47 = vld [vmem:[#allocation10 + $0x1150] sm:$0xff] }
 0x34e   : > { %1646 = vmatpush2.msra.mxu1 %v816_v48  ;;  %1717 = vmatpush2.msra.mxu0 %v818_v49  ;;  %v1767_v48 = vld [vmem:[#allocation10 + $0x1108] sm:$0xff]  ;;  %v1769_v49 = vld [vmem:[#allocation10 + $0x1118] sm:$0xff] }
 0x34f   : > { %1647 = vmatprep.subr.mxu1 %v809_v50  ;;  %1718 = vmatprep.subr.mxu0 %v811_v51  ;;  %v1766_v50 = vld [vmem:[#allocation10 + $0x1100] sm:$0xff]  ;;  %v1768_v51 = vld [vmem:[#allocation10 + $0x1110] sm:$0xff] }
 0x350   : > { %1648 = vmatpush2.msra.mxu1 %v808_v52  ;;  %1719 = vmatpush2.msra.mxu0 %v810_v53  ;;  %v1759_v52 = vld [vmem:[#allocation10 + $0x10c8] sm:$0xff]  ;;  %v1761_v53 = vld [vmem:[#allocation10 + $0x10d8] sm:$0xff] }
 0x351   : > { %1649 = vmatprep.subr.mxu1 %v801_v54  ;;  %1720 = vmatprep.subr.mxu0 %v803_v57  ;;  %v1758_v54 = vld [vmem:[#allocation10 + $0x10c0] sm:$0xff]  ;;  %v1760_v57 = vld [vmem:[#allocation10 + $0x10d0] sm:$0xff] }
 0x352   : > { %1650 = vmatpush2.msra.mxu1 %v800_v58  ;;  %1721 = vmatpush2.msra.mxu0 %v802_v59  ;;  %v1751_v58 = vld [vmem:[#allocation10 + $0x1088] sm:$0xff]  ;;  %v1753_v59 = vld [vmem:[#allocation10 + $0x1098] sm:$0xff] }
 0x353   : > { %1651 = vmatprep.subr.mxu1 %v793_v60  ;;  %1722 = vmatprep.subr.mxu0 %v795_v61  ;;  %v1750_v60 = vld [vmem:[#allocation10 + $0x1080] sm:$0xff]  ;;  %v1752_v61 = vld [vmem:[#allocation10 + $0x1090] sm:$0xff] }
 0x354   : > { %1652 = vmatpush2.msra.mxu1 %v792_v62  ;;  %1723 = vmatpush2.msra.mxu0 %v794_v63  ;;  %v1743_v62 = vld [vmem:[#allocation10 + $0x1048] sm:$0xff]  ;;  %v1745_v63 = vld [vmem:[#allocation10 + $0x1058] sm:$0xff] }
 0x355   : > { %1653 = vmatprep.subr.mxu1 %v785_v0  ;;  %1724 = vmatprep.subr.mxu0 %v787_v2  ;;  %v1742_v0 = vld [vmem:[#allocation10 + $0x1040] sm:$0xff]  ;;  %v1744_v2 = vld [vmem:[#allocation10 + $0x1050] sm:$0xff] }
 0x356   : > { %1654 = vmatpush2.msra.mxu1 %v784_v3  ;;  %1725 = vmatpush2.msra.mxu0 %v786_v4  ;;  %v1735_v3 = vld [vmem:[#allocation10 + $0x1008] sm:$0xff]  ;;  %v1737_v4 = vld [vmem:[#allocation10 + $0x1018] sm:$0xff] }
 0x357   : > { %1656 = vmatmul.mubr.f32.vlgmr.msra.gmra.mxu1 %v3703_v1  ;;  %1727 = vmatmul.mubr.f32.vlgmr.msra.gmra.mxu0 %v3703_v1  ;;  %v1838_v1 = vld [vmem:[#allocation10 + $0x1340] sm:$0xff] }
 0x358   : > { %1990 = vmatprep.subr.mxu1 %v1855_v6  ;;  %2061 = vmatprep.subr.mxu0 %v1857_v7  ;;  %v1734_v6 = vld [vmem:[#allocation10 + $0x1000] sm:$0xff]  ;;  %v1736_v7 = vld [vmem:[#allocation10 + $0x1010] sm:$0xff] }
 0x359   : > { %1991 = vmatpush1.msra.mxu1 %v1854_v8  ;;  %2054 = vmatprep.mubr.f32.mxu1 %v3723_v10  ;;  %v1983_v8 = vld [vmem:[#allocation10 + $0x17c8] sm:$0xff] }
 0x35a   : > { %2062 = vmatpush1.msra.mxu0 %v1856_v9  ;;  %2125 = vmatprep.mubr.f32.mxu0 %v3723_v10  ;;  %v1985_v9 = vld [vmem:[#allocation10 + $0x17d8] sm:$0xff] }
 0x35b   : > { %1992 = vmatprep.subr.mxu1 %v1847_v56  ;;  %2063 = vmatprep.subr.mxu0 %v1849_v11  ;;  %v1982_v56 = vld [vmem:[#allocation10 + $0x17c0] sm:$0xff]  ;;  %v1984_v11 = vld [vmem:[#allocation10 + $0x17d0] sm:$0xff] }
 0x35c   : > { %1993 = vmatpush1.msra.mxu1 %v1846_v12  ;;  %2064 = vmatpush1.msra.mxu0 %v1848_v13  ;;  %v1975_v12 = vld [vmem:[#allocation10 + $0x1788] sm:$0xff]  ;;  %v1977_v13 = vld [vmem:[#allocation10 + $0x1798] sm:$0xff] }
 0x35d   : > { %1994 = vmatprep.subr.mxu1 %v1839_v14  ;;  %2065 = vmatprep.subr.mxu0 %v1841_v15  ;;  %v1974_v14 = vld [vmem:[#allocation10 + $0x1780] sm:$0xff]  ;;  %v1976_v15 = vld [vmem:[#allocation10 + $0x1790] sm:$0xff] }
 0x35e   : > { %1995 = vmatpush1.msra.mxu1 %v1838_v1  ;;  %2066 = vmatpush1.msra.mxu0 %v1840_v16  ;;  %v1967_v1 = vld [vmem:[#allocation10 + $0x1748] sm:$0xff]  ;;  %v1969_v16 = vld [vmem:[#allocation10 + $0x1758] sm:$0xff] }
 0x35f   : > { %1996 = vmatprep.subr.mxu1 %v1831_v17  ;;  %2067 = vmatprep.subr.mxu0 %v1833_v18  ;;  %v1966_v17 = vld [vmem:[#allocation10 + $0x1740] sm:$0xff]  ;;  %v1968_v18 = vld [vmem:[#allocation10 + $0x1750] sm:$0xff] }
 0x360   : > { %1997 = vmatpush1.msra.mxu1 %v1830_v19  ;;  %2068 = vmatpush1.msra.mxu0 %v1832_v55  ;;  %v1959_v19 = vld [vmem:[#allocation10 + $0x1708] sm:$0xff]  ;;  %v1961_v55 = vld [vmem:[#allocation10 + $0x1718] sm:$0xff] }
 0x361   : > { %1998 = vmatprep.subr.mxu1 %v1823_v20  ;;  %2069 = vmatprep.subr.mxu0 %v1825_v21  ;;  %v1958_v20 = vld [vmem:[#allocation10 + $0x1700] sm:$0xff]  ;;  %v1960_v21 = vld [vmem:[#allocation10 + $0x1710] sm:$0xff] }
 0x362   : > { %1999 = vmatpush1.msra.mxu1 %v1822_v22  ;;  %2070 = vmatpush1.msra.mxu0 %v1824_v23  ;;  %v1951_v22 = vld [vmem:[#allocation10 + $0x16c8] sm:$0xff]  ;;  %v1953_v23 = vld [vmem:[#allocation10 + $0x16d8] sm:$0xff] }
 0x363   : > { %2000 = vmatprep.subr.mxu1 %v1815_v24  ;;  %2071 = vmatprep.subr.mxu0 %v1817_v25  ;;  %v1950_v24 = vld [vmem:[#allocation10 + $0x16c0] sm:$0xff]  ;;  %v1952_v25 = vld [vmem:[#allocation10 + $0x16d0] sm:$0xff] }
 0x364   : > { %2001 = vmatpush1.msra.mxu1 %v1814_v26  ;;  %2072 = vmatpush1.msra.mxu0 %v1816_v27  ;;  %v1943_v26 = vld [vmem:[#allocation10 + $0x1688] sm:$0xff]  ;;  %v1945_v27 = vld [vmem:[#allocation10 + $0x1698] sm:$0xff] }
 0x365   : > { %2002 = vmatprep.subr.mxu1 %v1807_v28  ;;  %2073 = vmatprep.subr.mxu0 %v1809_v29  ;;  %v1942_v28 = vld [vmem:[#allocation10 + $0x1680] sm:$0xff]  ;;  %v1944_v29 = vld [vmem:[#allocation10 + $0x1690] sm:$0xff] }
 0x366   : > { %2003 = vmatpush1.msra.mxu1 %v1806_v30  ;;  %2074 = vmatpush1.msra.mxu0 %v1808_v31  ;;  %v1935_v30 = vld [vmem:[#allocation10 + $0x1648] sm:$0xff]  ;;  %v1937_v31 = vld [vmem:[#allocation10 + $0x1658] sm:$0xff] }
 0x367   : > { %2004 = vmatprep.subr.mxu1 %v1799_v32  ;;  %2075 = vmatprep.subr.mxu0 %v1801_v33  ;;  %v1934_v32 = vld [vmem:[#allocation10 + $0x1640] sm:$0xff]  ;;  %v1936_v33 = vld [vmem:[#allocation10 + $0x1650] sm:$0xff] }
 0x368   : > { %2005 = vmatpush1.msra.mxu1 %v1798_v34  ;;  %2076 = vmatpush1.msra.mxu0 %v1800_v35  ;;  %v1927_v34 = vld [vmem:[#allocation10 + $0x1608] sm:$0xff]  ;;  %v1929_v35 = vld [vmem:[#allocation10 + $0x1618] sm:$0xff] }
 0x369   : > { %2006 = vmatprep.subr.mxu1 %v1791_v36  ;;  %2077 = vmatprep.subr.mxu0 %v1793_v37  ;;  %v1926_v36 = vld [vmem:[#allocation10 + $0x1600] sm:$0xff]  ;;  %v1928_v37 = vld [vmem:[#allocation10 + $0x1610] sm:$0xff] }
 0x36a   : > { %2007 = vmatpush1.msra.mxu1 %v1790_v38  ;;  %2078 = vmatpush1.msra.mxu0 %v1792_v39  ;;  %v1919_v38 = vld [vmem:[#allocation10 + $0x15c8] sm:$0xff]  ;;  %v1921_v39 = vld [vmem:[#allocation10 + $0x15d8] sm:$0xff] }
 0x36b   : > { %2008 = vmatprep.subr.mxu1 %v1783_v40  ;;  %2079 = vmatprep.subr.mxu0 %v1785_v41  ;;  %v1918_v40 = vld [vmem:[#allocation10 + $0x15c0] sm:$0xff]  ;;  %v1920_v41 = vld [vmem:[#allocation10 + $0x15d0] sm:$0xff] }
 0x36c   : > { %2009 = vmatpush1.msra.mxu1 %v1782_v42  ;;  %2080 = vmatpush1.msra.mxu0 %v1784_v43  ;;  %v1911_v42 = vld [vmem:[#allocation10 + $0x1588] sm:$0xff]  ;;  %v1913_v43 = vld [vmem:[#allocation10 + $0x1598] sm:$0xff] }
 0x36d   : > { %2010 = vmatprep.subr.mxu1 %v1775_v44  ;;  %2081 = vmatprep.subr.mxu0 %v1777_v45  ;;  %v1910_v44 = vld [vmem:[#allocation10 + $0x1580] sm:$0xff]  ;;  %v1912_v45 = vld [vmem:[#allocation10 + $0x1590] sm:$0xff] }
 0x36e   : > { %2011 = vmatpush1.msra.mxu1 %v1774_v46  ;;  %2082 = vmatpush1.msra.mxu0 %v1776_v47  ;;  %v1903_v46 = vld [vmem:[#allocation10 + $0x1548] sm:$0xff]  ;;  %v1905_v47 = vld [vmem:[#allocation10 + $0x1558] sm:$0xff] }
 0x36f   : > { %2012 = vmatprep.subr.mxu1 %v1767_v48  ;;  %2083 = vmatprep.subr.mxu0 %v1769_v49  ;;  %v1902_v48 = vld [vmem:[#allocation10 + $0x1540] sm:$0xff]  ;;  %v1904_v49 = vld [vmem:[#allocation10 + $0x1550] sm:$0xff] }
 0x370   : > { %2013 = vmatpush1.msra.mxu1 %v1766_v50  ;;  %2084 = vmatpush1.msra.mxu0 %v1768_v51  ;;  %v1895_v50 = vld [vmem:[#allocation10 + $0x1508] sm:$0xff]  ;;  %v1897_v51 = vld [vmem:[#allocation10 + $0x1518] sm:$0xff] }
 0x371   : > { %2014 = vmatprep.subr.mxu1 %v1759_v52  ;;  %2085 = vmatprep.subr.mxu0 %v1761_v53  ;;  %v1894_v52 = vld [vmem:[#allocation10 + $0x1500] sm:$0xff]  ;;  %v1896_v53 = vld [vmem:[#allocation10 + $0x1510] sm:$0xff] }
 0x372   : > { %2015 = vmatpush1.msra.mxu1 %v1758_v54  ;;  %2086 = vmatpush1.msra.mxu0 %v1760_v57  ;;  %v1887_v54 = vld [vmem:[#allocation10 + $0x14c8] sm:$0xff]  ;;  %v1889_v57 = vld [vmem:[#allocation10 + $0x14d8] sm:$0xff] }
 0x373   : > { %2016 = vmatprep.subr.mxu1 %v1751_v58  ;;  %2087 = vmatprep.subr.mxu0 %v1753_v59  ;;  %v1886_v58 = vld [vmem:[#allocation10 + $0x14c0] sm:$0xff]  ;;  %v1888_v59 = vld [vmem:[#allocation10 + $0x14d0] sm:$0xff] }
 0x374   : > { %2017 = vmatpush1.msra.mxu1 %v1750_v60  ;;  %2088 = vmatpush1.msra.mxu0 %v1752_v61  ;;  %v1879_v60 = vld [vmem:[#allocation10 + $0x1488] sm:$0xff]  ;;  %v1881_v61 = vld [vmem:[#allocation10 + $0x1498] sm:$0xff] }
 0x375   : > { %2018 = vmatprep.subr.mxu1 %v1743_v62  ;;  %2089 = vmatprep.subr.mxu0 %v1745_v63  ;;  %v1878_v62 = vld [vmem:[#allocation10 + $0x1480] sm:$0xff]  ;;  %v1880_v63 = vld [vmem:[#allocation10 + $0x1490] sm:$0xff] }
 0x376   : > { %2019 = vmatpush1.msra.mxu1 %v1742_v0  ;;  %2090 = vmatpush1.msra.mxu0 %v1744_v2  ;;  %v1871_v0 = vld [vmem:[#allocation10 + $0x1448] sm:$0xff]  ;;  %v1873_v2 = vld [vmem:[#allocation10 + $0x1458] sm:$0xff] }
 0x377   : > { %2020 = vmatprep.subr.mxu1 %v1735_v3  ;;  %2091 = vmatprep.subr.mxu0 %v1737_v4  ;;  %v1870_v3 = vld [vmem:[#allocation10 + $0x1440] sm:$0xff]  ;;  %v1872_v4 = vld [vmem:[#allocation10 + $0x1450] sm:$0xff] }
 0x378   : > { %2021 = vmatpush1.msra.mxu1 %v1734_v6  ;;  %2092 = vmatpush1.msra.mxu0 %v1736_v7  ;;  %v1863_v6 = vld [vmem:[#allocation10 + $0x1408] sm:$0xff]  ;;  %v1865_v7 = vld [vmem:[#allocation10 + $0x1418] sm:$0xff] }
 0x379   : > { %2022 = vmatprep.subr.mxu1 %v1983_v8  ;;  %2093 = vmatprep.subr.mxu0 %v1985_v9  ;;  %v1862_v8 = vld [vmem:[#allocation10 + $0x1400] sm:$0xff]  ;;  %v1864_v9 = vld [vmem:[#allocation10 + $0x1410] sm:$0xff] }
 0x37a   : > { %2023 = vmatpush2.msra.mxu1 %v1982_v56  ;;  %2094 = vmatpush2.msra.mxu0 %v1984_v11  ;;  %v1859_v56 = vld [vmem:[#allocation10 + $0x13e8] sm:$0xff]  ;;  %v1861_v11 = vld [vmem:[#allocation10 + $0x13f8] sm:$0xff] }
 0x37b   : > { %2024 = vmatprep.subr.mxu1 %v1975_v12  ;;  %2095 = vmatprep.subr.mxu0 %v1977_v13  ;;  %v1858_v12 = vld [vmem:[#allocation10 + $0x13e0] sm:$0xff]  ;;  %v1860_v13 = vld [vmem:[#allocation10 + $0x13f0] sm:$0xff] }
 0x37c   : > { %2025 = vmatpush2.msra.mxu1 %v1974_v14  ;;  %2096 = vmatpush2.msra.mxu0 %v1976_v15  ;;  %v1851_v14 = vld [vmem:[#allocation10 + $0x13a8] sm:$0xff]  ;;  %v1853_v15 = vld [vmem:[#allocation10 + $0x13b8] sm:$0xff] }
 0x37d   : > { %2026 = vmatprep.subr.mxu1 %v1967_v1  ;;  %2097 = vmatprep.subr.mxu0 %v1969_v16  ;;  %v1850_v1 = vld [vmem:[#allocation10 + $0x13a0] sm:$0xff]  ;;  %v1852_v16 = vld [vmem:[#allocation10 + $0x13b0] sm:$0xff] }
 0x37e   : > { %2027 = vmatpush2.msra.mxu1 %v1966_v17  ;;  %2098 = vmatpush2.msra.mxu0 %v1968_v18  ;;  %v1843_v17 = vld [vmem:[#allocation10 + $0x1368] sm:$0xff]  ;;  %v1845_v18 = vld [vmem:[#allocation10 + $0x1378] sm:$0xff] }
 0x37f   : > { %2028 = vmatprep.subr.mxu1 %v1959_v19  ;;  %2099 = vmatprep.subr.mxu0 %v1961_v55  ;;  %v1842_v19 = vld [vmem:[#allocation10 + $0x1360] sm:$0xff]  ;;  %v1844_v55 = vld [vmem:[#allocation10 + $0x1370] sm:$0xff] }
 0x380   : > { %2029 = vmatpush2.msra.mxu1 %v1958_v20  ;;  %2100 = vmatpush2.msra.mxu0 %v1960_v21  ;;  %v1835_v20 = vld [vmem:[#allocation10 + $0x1328] sm:$0xff]  ;;  %v1837_v21 = vld [vmem:[#allocation10 + $0x1338] sm:$0xff] }
 0x381   : > { %2030 = vmatprep.subr.mxu1 %v1951_v22  ;;  %2101 = vmatprep.subr.mxu0 %v1953_v23  ;;  %v1834_v22 = vld [vmem:[#allocation10 + $0x1320] sm:$0xff]  ;;  %v1836_v23 = vld [vmem:[#allocation10 + $0x1330] sm:$0xff] }
 0x382   : > { %2031 = vmatpush2.msra.mxu1 %v1950_v24  ;;  %2102 = vmatpush2.msra.mxu0 %v1952_v25  ;;  %v1827_v24 = vld [vmem:[#allocation10 + $0x12e8] sm:$0xff]  ;;  %v1829_v25 = vld [vmem:[#allocation10 + $0x12f8] sm:$0xff] }
 0x383   : > { %2032 = vmatprep.subr.mxu1 %v1943_v26  ;;  %2103 = vmatprep.subr.mxu0 %v1945_v27  ;;  %v1828_v26 = vld [vmem:[#allocation10 + $0x12f0] sm:$0xff]  ;;  %v1819_v27 = vld [vmem:[#allocation10 + $0x12a8] sm:$0xff] }
 0x384   : > { %2033 = vmatpush2.msra.mxu1 %v1942_v28  ;;  %2104 = vmatpush2.msra.mxu0 %v1944_v29  ;;  %v1821_v28 = vld [vmem:[#allocation10 + $0x12b8] sm:$0xff]  ;;  %v1818_v29 = vld [vmem:[#allocation10 + $0x12a0] sm:$0xff] }
 0x385   : > { %2034 = vmatprep.subr.mxu1 %v1935_v30  ;;  %2105 = vmatprep.subr.mxu0 %v1937_v31  ;;  %v1820_v30 = vld [vmem:[#allocation10 + $0x12b0] sm:$0xff]  ;;  %v1811_v31 = vld [vmem:[#allocation10 + $0x1268] sm:$0xff] }
 0x386   : > { %2035 = vmatpush2.msra.mxu1 %v1934_v32  ;;  %2106 = vmatpush2.msra.mxu0 %v1936_v33  ;;  %v1813_v32 = vld [vmem:[#allocation10 + $0x1278] sm:$0xff]  ;;  %v1810_v33 = vld [vmem:[#allocation10 + $0x1260] sm:$0xff] }
 0x387   : > { %2036 = vmatprep.subr.mxu1 %v1927_v34  ;;  %2107 = vmatprep.subr.mxu0 %v1929_v35  ;;  %v1812_v34 = vld [vmem:[#allocation10 + $0x1270] sm:$0xff]  ;;  %v1803_v35 = vld [vmem:[#allocation10 + $0x1228] sm:$0xff] }
 0x388   : > { %2037 = vmatpush2.msra.mxu1 %v1926_v36  ;;  %2108 = vmatpush2.msra.mxu0 %v1928_v37  ;;  %v1805_v36 = vld [vmem:[#allocation10 + $0x1238] sm:$0xff]  ;;  %v1802_v37 = vld [vmem:[#allocation10 + $0x1220] sm:$0xff] }
 0x389   : > { %2038 = vmatprep.subr.mxu1 %v1919_v38  ;;  %2109 = vmatprep.subr.mxu0 %v1921_v39  ;;  %v1804_v38 = vld [vmem:[#allocation10 + $0x1230] sm:$0xff]  ;;  %v1795_v39 = vld [vmem:[#allocation10 + $0x11e8] sm:$0xff] }
 0x38a   : > { %2039 = vmatpush2.msra.mxu1 %v1918_v40  ;;  %2110 = vmatpush2.msra.mxu0 %v1920_v41  ;;  %v1797_v40 = vld [vmem:[#allocation10 + $0x11f8] sm:$0xff]  ;;  %v1794_v41 = vld [vmem:[#allocation10 + $0x11e0] sm:$0xff] }
 0x38b   : > { %2040 = vmatprep.subr.mxu1 %v1911_v42  ;;  %2111 = vmatprep.subr.mxu0 %v1913_v43  ;;  %v1796_v42 = vld [vmem:[#allocation10 + $0x11f0] sm:$0xff]  ;;  %v1787_v43 = vld [vmem:[#allocation10 + $0x11a8] sm:$0xff] }
 0x38c   : > { %2041 = vmatpush2.msra.mxu1 %v1910_v44  ;;  %2112 = vmatpush2.msra.mxu0 %v1912_v45  ;;  %v1789_v44 = vld [vmem:[#allocation10 + $0x11b8] sm:$0xff]  ;;  %v1786_v45 = vld [vmem:[#allocation10 + $0x11a0] sm:$0xff] }
 0x38d   : > { %2042 = vmatprep.subr.mxu1 %v1903_v46  ;;  %2113 = vmatprep.subr.mxu0 %v1905_v47  ;;  %v1788_v46 = vld [vmem:[#allocation10 + $0x11b0] sm:$0xff]  ;;  %v1779_v47 = vld [vmem:[#allocation10 + $0x1168] sm:$0xff] }
 0x38e   : > { %2043 = vmatpush2.msra.mxu1 %v1902_v48  ;;  %2114 = vmatpush2.msra.mxu0 %v1904_v49  ;;  %v1781_v48 = vld [vmem:[#allocation10 + $0x1178] sm:$0xff]  ;;  %v1778_v49 = vld [vmem:[#allocation10 + $0x1160] sm:$0xff] }
 0x38f   : > { %2044 = vmatprep.subr.mxu1 %v1895_v50  ;;  %2115 = vmatprep.subr.mxu0 %v1897_v51  ;;  %v1780_v50 = vld [vmem:[#allocation10 + $0x1170] sm:$0xff]  ;;  %v1771_v51 = vld [vmem:[#allocation10 + $0x1128] sm:$0xff] }
 0x390   : > { %2045 = vmatpush2.msra.mxu1 %v1894_v52  ;;  %2116 = vmatpush2.msra.mxu0 %v1896_v53  ;;  %v1773_v52 = vld [vmem:[#allocation10 + $0x1138] sm:$0xff]  ;;  %v1770_v53 = vld [vmem:[#allocation10 + $0x1120] sm:$0xff] }
 0x391   : > { %2046 = vmatprep.subr.mxu1 %v1887_v54  ;;  %2117 = vmatprep.subr.mxu0 %v1889_v57  ;;  %v1772_v54 = vld [vmem:[#allocation10 + $0x1130] sm:$0xff]  ;;  %v1763_v57 = vld [vmem:[#allocation10 + $0x10e8] sm:$0xff] }
 0x392   : > { %2047 = vmatpush2.msra.mxu1 %v1886_v58  ;;  %2118 = vmatpush2.msra.mxu0 %v1888_v59  ;;  %v1765_v58 = vld [vmem:[#allocation10 + $0x10f8] sm:$0xff]  ;;  %v1762_v59 = vld [vmem:[#allocation10 + $0x10e0] sm:$0xff] }
 0x393   : > { %2048 = vmatprep.subr.mxu1 %v1879_v60  ;;  %2119 = vmatprep.subr.mxu0 %v1881_v61  ;;  %v1764_v60 = vld [vmem:[#allocation10 + $0x10f0] sm:$0xff]  ;;  %v1755_v61 = vld [vmem:[#allocation10 + $0x10a8] sm:$0xff] }
 0x394   : > { %2049 = vmatpush2.msra.mxu1 %v1878_v62  ;;  %2120 = vmatpush2.msra.mxu0 %v1880_v63  ;;  %v1757_v62 = vld [vmem:[#allocation10 + $0x10b8] sm:$0xff]  ;;  %v1754_v63 = vld [vmem:[#allocation10 + $0x10a0] sm:$0xff] }
 0x395   : > { %2050 = vmatprep.subr.mxu1 %v1871_v0  ;;  %2121 = vmatprep.subr.mxu0 %v1873_v2  ;;  %v1756_v0 = vld [vmem:[#allocation10 + $0x10b0] sm:$0xff]  ;;  %v1747_v2 = vld [vmem:[#allocation10 + $0x1068] sm:$0xff] }
 0x396   : > { %2051 = vmatpush2.msra.mxu1 %v1870_v3  ;;  %2122 = vmatpush2.msra.mxu0 %v1872_v4  ;;  %v1749_v3 = vld [vmem:[#allocation10 + $0x1078] sm:$0xff]  ;;  %v1746_v4 = vld [vmem:[#allocation10 + $0x1060] sm:$0xff] }
 0x397   : > { %2052 = vmatprep.subr.mxu1 %v1863_v6  ;;  %2123 = vmatprep.subr.mxu0 %v1865_v7  ;;  %v1748_v6 = vld [vmem:[#allocation10 + $0x1070] sm:$0xff]  ;;  %v1739_v7 = vld [vmem:[#allocation10 + $0x1028] sm:$0xff] }
 0x398   : > { %2053 = vmatpush2.msra.mxu1 %v1862_v8  ;;  %2124 = vmatpush2.msra.mxu0 %v1864_v9  ;;  %v1741_v8 = vld [vmem:[#allocation10 + $0x1038] sm:$0xff]  ;;  %v1738_v9 = vld [vmem:[#allocation10 + $0x1020] sm:$0xff] }
 0x399   : > { %2055 = vmatmul.mubr.f32.vlgmr.msra.gmra.mxu1 %v3719_v5  ;;  %2126 = vmatmul.mubr.f32.vlgmr.msra.gmra.mxu0 %v3719_v5 }
 0x39a   : > { %2132 = vmatprep.subr.mxu1 %v1859_v56  ;;  %2203 = vmatprep.subr.mxu0 %v1861_v11  ;;  %v1740_v56 = vld [vmem:[#allocation10 + $0x1030] sm:$0xff]  ;;  %v1987_v11 = vld [vmem:[#allocation10 + $0x17e8] sm:$0xff] }
 0x39b   : > { %2133 = vmatpush1.msra.mxu1 %v1858_v12  ;;  %2196 = vmatprep.mubr.f32.mxu1 %v3723_v10  ;;  %v1989_v12 = vld [vmem:[#allocation10 + $0x17f8] sm:$0xff] }
 0x39c   : > { %2204 = vmatpush1.msra.mxu0 %v1860_v13  ;;  %2267 = vmatprep.mubr.f32.mxu0 %v3723_v10  ;;  %v1826_v10 = vld [vmem:[#allocation10 + $0x12e0] sm:$0xff] }
 0x39d   : > { %2134 = vmatprep.subr.mxu1 %v1851_v14  ;;  %2205 = vmatprep.subr.mxu0 %v1853_v15  ;;  %v1986_v13 = vld [vmem:[#allocation10 + $0x17e0] sm:$0xff]  ;;  %v1988_v14 = vld [vmem:[#allocation10 + $0x17f0] sm:$0xff]  ;;  %v1979_v15 = vld [vmem:[#allocation10 + $0x17a8] sm:$0xff] }
 0x39e   : > { %2135 = vmatpush1.msra.mxu1 %v1850_v1  ;;  %2206 = vmatpush1.msra.mxu0 %v1852_v16  ;;  %v1981_v1 = vld [vmem:[#allocation10 + $0x17b8] sm:$0xff]  ;;  %v1978_v16 = vld [vmem:[#allocation10 + $0x17a0] sm:$0xff] }
 0x39f   : > { %2136 = vmatprep.subr.mxu1 %v1843_v17  ;;  %2207 = vmatprep.subr.mxu0 %v1845_v18  ;;  %v1980_v17 = vld [vmem:[#allocation10 + $0x17b0] sm:$0xff]  ;;  %v1971_v18 = vld [vmem:[#allocation10 + $0x1768] sm:$0xff] }
 0x3a0   : > { %2137 = vmatpush1.msra.mxu1 %v1842_v19  ;;  %2208 = vmatpush1.msra.mxu0 %v1844_v55  ;;  %v1973_v19 = vld [vmem:[#allocation10 + $0x1778] sm:$0xff]  ;;  %v1970_v55 = vld [vmem:[#allocation10 + $0x1760] sm:$0xff] }
 0x3a1   : > { %2138 = vmatprep.subr.mxu1 %v1835_v20  ;;  %2209 = vmatprep.subr.mxu0 %v1837_v21  ;;  %v1972_v20 = vld [vmem:[#allocation10 + $0x1770] sm:$0xff]  ;;  %v1963_v21 = vld [vmem:[#allocation10 + $0x1728] sm:$0xff] }
 0x3a2   : > { %2139 = vmatpush1.msra.mxu1 %v1834_v22  ;;  %2210 = vmatpush1.msra.mxu0 %v1836_v23  ;;  %v1965_v22 = vld [vmem:[#allocation10 + $0x1738] sm:$0xff]  ;;  %v1962_v23 = vld [vmem:[#allocation10 + $0x1720] sm:$0xff] }
 0x3a3   : > { %2140 = vmatprep.subr.mxu1 %v1827_v24  ;;  %2211 = vmatprep.subr.mxu0 %v1829_v25  ;;  %v1964_v24 = vld [vmem:[#allocation10 + $0x1730] sm:$0xff]  ;;  %v1955_v25 = vld [vmem:[#allocation10 + $0x16e8] sm:$0xff] }
 0x3a4   : > { %2141 = vmatpush1.msra.mxu1 %v1826_v10  ;;  %2212 = vmatpush1.msra.mxu0 %v1828_v26  ;;  %v1957_v10 = vld [vmem:[#allocation10 + $0x16f8] sm:$0xff]  ;;  %v1954_v26 = vld [vmem:[#allocation10 + $0x16e0] sm:$0xff] }
 0x3a5   : > { %2142 = vmatprep.subr.mxu1 %v1819_v27  ;;  %2213 = vmatprep.subr.mxu0 %v1821_v28  ;;  %v1956_v27 = vld [vmem:[#allocation10 + $0x16f0] sm:$0xff]  ;;  %v1947_v28 = vld [vmem:[#allocation10 + $0x16a8] sm:$0xff] }
 0x3a6   : > { %2143 = vmatpush1.msra.mxu1 %v1818_v29  ;;  %2214 = vmatpush1.msra.mxu0 %v1820_v30  ;;  %v1949_v29 = vld [vmem:[#allocation10 + $0x16b8] sm:$0xff]  ;;  %v1946_v30 = vld [vmem:[#allocation10 + $0x16a0] sm:$0xff] }
 0x3a7   : > { %2144 = vmatprep.subr.mxu1 %v1811_v31  ;;  %2215 = vmatprep.subr.mxu0 %v1813_v32  ;;  %v1948_v31 = vld [vmem:[#allocation10 + $0x16b0] sm:$0xff]  ;;  %v1939_v32 = vld [vmem:[#allocation10 + $0x1668] sm:$0xff] }
 0x3a8   : > { %2145 = vmatpush1.msra.mxu1 %v1810_v33  ;;  %2216 = vmatpush1.msra.mxu0 %v1812_v34  ;;  %v1941_v33 = vld [vmem:[#allocation10 + $0x1678] sm:$0xff]  ;;  %v1938_v34 = vld [vmem:[#allocation10 + $0x1660] sm:$0xff] }
 0x3a9   : > { %2146 = vmatprep.subr.mxu1 %v1803_v35  ;;  %2217 = vmatprep.subr.mxu0 %v1805_v36  ;;  %v1940_v35 = vld [vmem:[#allocation10 + $0x1670] sm:$0xff]  ;;  %v1931_v36 = vld [vmem:[#allocation10 + $0x1628] sm:$0xff] }
 0x3aa   : > { %2147 = vmatpush1.msra.mxu1 %v1802_v37  ;;  %2218 = vmatpush1.msra.mxu0 %v1804_v38  ;;  %v1933_v37 = vld [vmem:[#allocation10 + $0x1638] sm:$0xff]  ;;  %v1930_v38 = vld [vmem:[#allocation10 + $0x1620] sm:$0xff] }
 0x3ab   : > { %2148 = vmatprep.subr.mxu1 %v1795_v39  ;;  %2219 = vmatprep.subr.mxu0 %v1797_v40  ;;  %v1932_v39 = vld [vmem:[#allocation10 + $0x1630] sm:$0xff]  ;;  %v1923_v40 = vld [vmem:[#allocation10 + $0x15e8] sm:$0xff] }
 0x3ac   : > { %2149 = vmatpush1.msra.mxu1 %v1794_v41  ;;  %2220 = vmatpush1.msra.mxu0 %v1796_v42  ;;  %v1925_v41 = vld [vmem:[#allocation10 + $0x15f8] sm:$0xff]  ;;  %v1922_v42 = vld [vmem:[#allocation10 + $0x15e0] sm:$0xff] }
 0x3ad   : > { %2150 = vmatprep.subr.mxu1 %v1787_v43  ;;  %2221 = vmatprep.subr.mxu0 %v1789_v44  ;;  %v1924_v43 = vld [vmem:[#allocation10 + $0x15f0] sm:$0xff]  ;;  %v1915_v44 = vld [vmem:[#allocation10 + $0x15a8] sm:$0xff] }
 0x3ae   : > { %2151 = vmatpush1.msra.mxu1 %v1786_v45  ;;  %2222 = vmatpush1.msra.mxu0 %v1788_v46  ;;  %v1917_v45 = vld [vmem:[#allocation10 + $0x15b8] sm:$0xff]  ;;  %v1914_v46 = vld [vmem:[#allocation10 + $0x15a0] sm:$0xff] }
 0x3af   : > { %2152 = vmatprep.subr.mxu1 %v1779_v47  ;;  %2223 = vmatprep.subr.mxu0 %v1781_v48  ;;  %v1916_v47 = vld [vmem:[#allocation10 + $0x15b0] sm:$0xff]  ;;  %v1907_v48 = vld [vmem:[#allocation10 + $0x1568] sm:$0xff] }
 0x3b0   : > { %2153 = vmatpush1.msra.mxu1 %v1778_v49  ;;  %2224 = vmatpush1.msra.mxu0 %v1780_v50  ;;  %v1909_v49 = vld [vmem:[#allocation10 + $0x1578] sm:$0xff]  ;;  %v1906_v50 = vld [vmem:[#allocation10 + $0x1560] sm:$0xff] }
 0x3b1   : > { %2154 = vmatprep.subr.mxu1 %v1771_v51  ;;  %2225 = vmatprep.subr.mxu0 %v1773_v52  ;;  %v1908_v51 = vld [vmem:[#allocation10 + $0x1570] sm:$0xff]  ;;  %v1899_v52 = vld [vmem:[#allocation10 + $0x1528] sm:$0xff] }
 0x3b2   : > { %2155 = vmatpush1.msra.mxu1 %v1770_v53  ;;  %2226 = vmatpush1.msra.mxu0 %v1772_v54  ;;  %v1901_v53 = vld [vmem:[#allocation10 + $0x1538] sm:$0xff]  ;;  %v1898_v54 = vld [vmem:[#allocation10 + $0x1520] sm:$0xff] }
 0x3b3   : > { %2156 = vmatprep.subr.mxu1 %v1763_v57  ;;  %2227 = vmatprep.subr.mxu0 %v1765_v58  ;;  %v1900_v57 = vld [vmem:[#allocation10 + $0x1530] sm:$0xff]  ;;  %v1891_v58 = vld [vmem:[#allocation10 + $0x14e8] sm:$0xff] }
 0x3b4   : > { %2157 = vmatpush1.msra.mxu1 %v1762_v59  ;;  %2228 = vmatpush1.msra.mxu0 %v1764_v60  ;;  %v1893_v59 = vld [vmem:[#allocation10 + $0x14f8] sm:$0xff]  ;;  %v1890_v60 = vld [vmem:[#allocation10 + $0x14e0] sm:$0xff] }
 0x3b5   : > { %2158 = vmatprep.subr.mxu1 %v1755_v61  ;;  %2229 = vmatprep.subr.mxu0 %v1757_v62  ;;  %v1892_v61 = vld [vmem:[#allocation10 + $0x14f0] sm:$0xff]  ;;  %v1883_v62 = vld [vmem:[#allocation10 + $0x14a8] sm:$0xff] }
 0x3b6   : > { %2159 = vmatpush1.msra.mxu1 %v1754_v63  ;;  %2230 = vmatpush1.msra.mxu0 %v1756_v0  ;;  %v1885_v63 = vld [vmem:[#allocation10 + $0x14b8] sm:$0xff]  ;;  %v1882_v0 = vld [vmem:[#allocation10 + $0x14a0] sm:$0xff] }
 0x3b7   : > { %2160 = vmatprep.subr.mxu1 %v1747_v2  ;;  %2231 = vmatprep.subr.mxu0 %v1749_v3  ;;  %v1884_v2 = vld [vmem:[#allocation10 + $0x14b0] sm:$0xff]  ;;  %v1875_v3 = vld [vmem:[#allocation10 + $0x1468] sm:$0xff] }
 0x3b8   : > { %2161 = vmatpush1.msra.mxu1 %v1746_v4  ;;  %2232 = vmatpush1.msra.mxu0 %v1748_v6  ;;  %v1877_v4 = vld [vmem:[#allocation10 + $0x1478] sm:$0xff]  ;;  %v1874_v6 = vld [vmem:[#allocation10 + $0x1460] sm:$0xff] }
 0x3b9   : > { %2162 = vmatprep.subr.mxu1 %v1739_v7  ;;  %2233 = vmatprep.subr.mxu0 %v1741_v8  ;;  %v1876_v7 = vld [vmem:[#allocation10 + $0x1470] sm:$0xff]  ;;  %v1867_v8 = vld [vmem:[#allocation10 + $0x1428] sm:$0xff] }
 0x3ba   : > { %2163 = vmatpush1.msra.mxu1 %v1738_v9  ;;  %2234 = vmatpush1.msra.mxu0 %v1740_v56  ;;  %v1869_v9 = vld [vmem:[#allocation10 + $0x1438] sm:$0xff]  ;;  %v1866_v56 = vld [vmem:[#allocation10 + $0x1420] sm:$0xff] }
 0x3bb   : > { %2164 = vmatprep.subr.mxu1 %v1987_v11  ;;  %2235 = vmatprep.subr.mxu0 %v1989_v12  ;;  %v1868_v11 = vld [vmem:[#allocation10 + $0x1430] sm:$0xff]  ;;  %v3731_v12 = vpop.f32.mrf.mxu0 }
 0x3bc   : > { %2165 = vmatpush2.msra.mxu1 %v1986_v13  ;;  %2236 = vmatpush2.msra.mxu0 %v1988_v14  ;;  %v2404_v13 = vld [vmem:[#allocation10 + $0x1bc8] sm:$0xff]  ;;  %v2406_v14 = vld [vmem:[#allocation10 + $0x1bd8] sm:$0xff] }
 0x3bd   : > { %2166 = vmatprep.subr.mxu1 %v1979_v15  ;;  %2237 = vmatprep.subr.mxu0 %v1981_v1  ;;  %v2403_v15 = vld [vmem:[#allocation10 + $0x1bc0] sm:$0xff]  ;;  %v2405_v1 = vld [vmem:[#allocation10 + $0x1bd0] sm:$0xff] }
 0x3be   : > { %2167 = vmatpush2.msra.mxu1 %v1978_v16  ;;  %2238 = vmatpush2.msra.mxu0 %v1980_v17  ;;  %v3735_v16 = vpop.f32.mrf.mxu0  ;;  %v2396_v17 = vld [vmem:[#allocation10 + $0x1b88] sm:$0xff] }
 0x3bf   : > { %2168 = vmatprep.subr.mxu1 %v1971_v18  ;;  %2239 = vmatprep.subr.mxu0 %v1973_v19  ;;  %v2398_v18 = vld [vmem:[#allocation10 + $0x1b98] sm:$0xff]  ;;  %v2395_v19 = vld [vmem:[#allocation10 + $0x1b80] sm:$0xff] }
 0x3c0   : > { %2169 = vmatpush2.msra.mxu1 %v1970_v55  ;;  %2240 = vmatpush2.msra.mxu0 %v1972_v20  ;;  %v2397_v55 = vld [vmem:[#allocation10 + $0x1b90] sm:$0xff]  ;;  %v2388_v20 = vld [vmem:[#allocation10 + $0x1b48] sm:$0xff] }
 0x3c1   : > { %2170 = vmatprep.subr.mxu1 %v1963_v21  ;;  %2241 = vmatprep.subr.mxu0 %v1965_v22  ;;  %v2390_v21 = vld [vmem:[#allocation10 + $0x1b58] sm:$0xff]  ;;  %v2389_v22 = vld [vmem:[#allocation10 + $0x1b50] sm:$0xff] }
 0x3c2   : > { %2171 = vmatpush2.msra.mxu1 %v1962_v23  ;;  %2242 = vmatpush2.msra.mxu0 %v1964_v24  ;;  %v2380_v23 = vld [vmem:[#allocation10 + $0x1b08] sm:$0xff]  ;;  %v2382_v24 = vld [vmem:[#allocation10 + $0x1b18] sm:$0xff] }
 0x3c3   : > { %2172 = vmatprep.subr.mxu1 %v1955_v25  ;;  %2243 = vmatprep.subr.mxu0 %v1957_v10  ;;  %v2379_v25 = vld [vmem:[#allocation10 + $0x1b00] sm:$0xff]  ;;  %v2381_v10 = vld [vmem:[#allocation10 + $0x1b10] sm:$0xff] }
 0x3c4   : > { %2173 = vmatpush2.msra.mxu1 %v1954_v26  ;;  %2244 = vmatpush2.msra.mxu0 %v1956_v27  ;;  %v2372_v26 = vld [vmem:[#allocation10 + $0x1ac8] sm:$0xff]  ;;  %v2374_v27 = vld [vmem:[#allocation10 + $0x1ad8] sm:$0xff] }
 0x3c5   : > { %2174 = vmatprep.subr.mxu1 %v1947_v28  ;;  %2245 = vmatprep.subr.mxu0 %v1949_v29  ;;  %v2371_v28 = vld [vmem:[#allocation10 + $0x1ac0] sm:$0xff]  ;;  %v2373_v29 = vld [vmem:[#allocation10 + $0x1ad0] sm:$0xff] }
 0x3c6   : > { %2175 = vmatpush2.msra.mxu1 %v1946_v30  ;;  %2246 = vmatpush2.msra.mxu0 %v1948_v31  ;;  %v2364_v30 = vld [vmem:[#allocation10 + $0x1a88] sm:$0xff]  ;;  %v2366_v31 = vld [vmem:[#allocation10 + $0x1a98] sm:$0xff] }
 0x3c7   : > { %2176 = vmatprep.subr.mxu1 %v1939_v32  ;;  %2247 = vmatprep.subr.mxu0 %v1941_v33  ;;  %v2363_v32 = vld [vmem:[#allocation10 + $0x1a80] sm:$0xff]  ;;  %v2365_v33 = vld [vmem:[#allocation10 + $0x1a90] sm:$0xff] }
 0x3c8   : > { %2177 = vmatpush2.msra.mxu1 %v1938_v34  ;;  %2248 = vmatpush2.msra.mxu0 %v1940_v35  ;;  %v2356_v34 = vld [vmem:[#allocation10 + $0x1a48] sm:$0xff]  ;;  %v2358_v35 = vld [vmem:[#allocation10 + $0x1a58] sm:$0xff] }
 0x3c9   : > { %2178 = vmatprep.subr.mxu1 %v1931_v36  ;;  %2249 = vmatprep.subr.mxu0 %v1933_v37  ;;  %v2355_v36 = vld [vmem:[#allocation10 + $0x1a40] sm:$0xff]  ;;  %v2357_v37 = vld [vmem:[#allocation10 + $0x1a50] sm:$0xff] }
 0x3ca   : > { %2179 = vmatpush2.msra.mxu1 %v1930_v38  ;;  %2250 = vmatpush2.msra.mxu0 %v1932_v39  ;;  %v2348_v38 = vld [vmem:[#allocation10 + $0x1a08] sm:$0xff]  ;;  %v2350_v39 = vld [vmem:[#allocation10 + $0x1a18] sm:$0xff] }
 0x3cb   : > { %2180 = vmatprep.subr.mxu1 %v1923_v40  ;;  %2251 = vmatprep.subr.mxu0 %v1925_v41  ;;  %v2347_v40 = vld [vmem:[#allocation10 + $0x1a00] sm:$0xff]  ;;  %v2349_v41 = vld [vmem:[#allocation10 + $0x1a10] sm:$0xff] }
 0x3cc   : > { %2181 = vmatpush2.msra.mxu1 %v1922_v42  ;;  %2252 = vmatpush2.msra.mxu0 %v1924_v43  ;;  %v2340_v42 = vld [vmem:[#allocation10 + $0x19c8] sm:$0xff]  ;;  %v2342_v43 = vld [vmem:[#allocation10 + $0x19d8] sm:$0xff] }
 0x3cd   : > { %2182 = vmatprep.subr.mxu1 %v1915_v44  ;;  %2253 = vmatprep.subr.mxu0 %v1917_v45  ;;  %v2339_v44 = vld [vmem:[#allocation10 + $0x19c0] sm:$0xff]  ;;  %v2341_v45 = vld [vmem:[#allocation10 + $0x19d0] sm:$0xff] }
 0x3ce   : > { %2183 = vmatpush2.msra.mxu1 %v1914_v46  ;;  %2254 = vmatpush2.msra.mxu0 %v1916_v47  ;;  %v2332_v46 = vld [vmem:[#allocation10 + $0x1988] sm:$0xff]  ;;  %v2334_v47 = vld [vmem:[#allocation10 + $0x1998] sm:$0xff] }
 0x3cf   : > { %2184 = vmatprep.subr.mxu1 %v1907_v48  ;;  %2255 = vmatprep.subr.mxu0 %v1909_v49  ;;  %v2331_v48 = vld [vmem:[#allocation10 + $0x1980] sm:$0xff]  ;;  %v2333_v49 = vld [vmem:[#allocation10 + $0x1990] sm:$0xff] }
 0x3d0   : > { %2185 = vmatpush2.msra.mxu1 %v1906_v50  ;;  %2256 = vmatpush2.msra.mxu0 %v1908_v51  ;;  %v2324_v50 = vld [vmem:[#allocation10 + $0x1948] sm:$0xff]  ;;  %v2326_v51 = vld [vmem:[#allocation10 + $0x1958] sm:$0xff] }
 0x3d1   : > { %2186 = vmatprep.subr.mxu1 %v1899_v52  ;;  %2257 = vmatprep.subr.mxu0 %v1901_v53  ;;  %v2323_v52 = vld [vmem:[#allocation10 + $0x1940] sm:$0xff]  ;;  %v2325_v53 = vld [vmem:[#allocation10 + $0x1950] sm:$0xff] }
 0x3d2   : > { %2187 = vmatpush2.msra.mxu1 %v1898_v54  ;;  %2258 = vmatpush2.msra.mxu0 %v1900_v57  ;;  %v2316_v54 = vld [vmem:[#allocation10 + $0x1908] sm:$0xff]  ;;  %v2318_v57 = vld [vmem:[#allocation10 + $0x1918] sm:$0xff] }
 0x3d3   : > { %2188 = vmatprep.subr.mxu1 %v1891_v58  ;;  %2259 = vmatprep.subr.mxu0 %v1893_v59  ;;  %v2315_v58 = vld [vmem:[#allocation10 + $0x1900] sm:$0xff]  ;;  %v2317_v59 = vld [vmem:[#allocation10 + $0x1910] sm:$0xff] }
 0x3d4   : > { %2189 = vmatpush2.msra.mxu1 %v1890_v60  ;;  %2260 = vmatpush2.msra.mxu0 %v1892_v61  ;;  %v2308_v60 = vld [vmem:[#allocation10 + $0x18c8] sm:$0xff]  ;;  %v2310_v61 = vld [vmem:[#allocation10 + $0x18d8] sm:$0xff] }
 0x3d5   : > { %2190 = vmatprep.subr.mxu1 %v1883_v62  ;;  %2261 = vmatprep.subr.mxu0 %v1885_v63  ;;  %v2307_v62 = vld [vmem:[#allocation10 + $0x18c0] sm:$0xff]  ;;  %v2309_v63 = vld [vmem:[#allocation10 + $0x18d0] sm:$0xff] }
 0x3d6   : > { %2191 = vmatpush2.msra.mxu1 %v1882_v0  ;;  %2262 = vmatpush2.msra.mxu0 %v1884_v2  ;;  %v2300_v0 = vld [vmem:[#allocation10 + $0x1888] sm:$0xff]  ;;  %v2302_v2 = vld [vmem:[#allocation10 + $0x1898] sm:$0xff] }
 0x3d7   : > { %2192 = vmatprep.subr.mxu1 %v1875_v3  ;;  %2263 = vmatprep.subr.mxu0 %v1877_v4  ;;  %v2299_v3 = vld [vmem:[#allocation10 + $0x1880] sm:$0xff]  ;;  %v2301_v4 = vld [vmem:[#allocation10 + $0x1890] sm:$0xff] }
 0x3d8   : > { %2193 = vmatpush2.msra.mxu1 %v1874_v6  ;;  %2264 = vmatpush2.msra.mxu0 %v1876_v7  ;;  %v2292_v6 = vld [vmem:[#allocation10 + $0x1848] sm:$0xff]  ;;  %v2294_v7 = vld [vmem:[#allocation10 + $0x1858] sm:$0xff] }
 0x3d9   : > { %2194 = vmatprep.subr.mxu1 %v1867_v8  ;;  %2265 = vmatprep.subr.mxu0 %v1869_v9  ;;  %v2291_v8 = vld [vmem:[#allocation10 + $0x1840] sm:$0xff]  ;;  %v2293_v9 = vld [vmem:[#allocation10 + $0x1850] sm:$0xff] }
 0x3da   : > { %2195 = vmatpush2.msra.mxu1 %v1866_v56  ;;  %2266 = vmatpush2.msra.mxu0 %v1868_v11  ;;  %v2284_v56 = vld [vmem:[#allocation10 + $0x1808] sm:$0xff]  ;;  %v2286_v11 = vld [vmem:[#allocation10 + $0x1818] sm:$0xff] }
 0x3db   : > { %2197 = vmatmul.mubr.f32.vlgmr.msra.gmra.mxu1 %v3719_v5  ;;  %2268 = vmatmul.mubr.f32.vlgmr.msra.gmra.mxu0 %v3719_v5  ;;  %v2387_v5 = vld [vmem:[#allocation10 + $0x1b40] sm:$0xff] }
 0x3dc   : > { %2539 = vmatprep.subr.mxu1 %v2404_v13  ;;  %2610 = vmatprep.subr.mxu0 %v2406_v14  ;;  %v2283_v13 = vld [vmem:[#allocation10 + $0x1800] sm:$0xff]  ;;  %v2285_v14 = vld [vmem:[#allocation10 + $0x1810] sm:$0xff] }
 0x3dd   : > { %2540 = vmatpush1.msra.mxu1 %v2403_v15  ;;  %2603 = vmatprep.mubr.f32.mxu1 %v3735_v16  ;;  %v2532_v15 = vld [vmem:[#allocation10 + $0x1fc8] sm:$0xff] }
 0x3de   : > { %2611 = vmatpush1.msra.mxu0 %v2405_v1  ;;  %2674 = vmatprep.mubr.f32.mxu0 %v3735_v16  ;;  %v2534_v1 = vld [vmem:[#allocation10 + $0x1fd8] sm:$0xff] }
 0x3df   : > { %2541 = vmatprep.subr.mxu1 %v2396_v17  ;;  %2612 = vmatprep.subr.mxu0 %v2398_v18  ;;  %v2531_v17 = vld [vmem:[#allocation10 + $0x1fc0] sm:$0xff]  ;;  %v2533_v18 = vld [vmem:[#allocation10 + $0x1fd0] sm:$0xff] }
 0x3e0   : > { %2542 = vmatpush1.msra.mxu1 %v2395_v19  ;;  %2613 = vmatpush1.msra.mxu0 %v2397_v55  ;;  %v2524_v19 = vld [vmem:[#allocation10 + $0x1f88] sm:$0xff]  ;;  %v2526_v55 = vld [vmem:[#allocation10 + $0x1f98] sm:$0xff] }
 0x3e1   : > { %2543 = vmatprep.subr.mxu1 %v2388_v20  ;;  %2614 = vmatprep.subr.mxu0 %v2390_v21  ;;  %v2523_v20 = vld [vmem:[#allocation10 + $0x1f80] sm:$0xff]  ;;  %v2525_v21 = vld [vmem:[#allocation10 + $0x1f90] sm:$0xff] }
 0x3e2   : > { %2544 = vmatpush1.msra.mxu1 %v2387_v5  ;;  %2615 = vmatpush1.msra.mxu0 %v2389_v22  ;;  %v2516_v5 = vld [vmem:[#allocation10 + $0x1f48] sm:$0xff]  ;;  %v2518_v22 = vld [vmem:[#allocation10 + $0x1f58] sm:$0xff] }
 0x3e3   : > { %2545 = vmatprep.subr.mxu1 %v2380_v23  ;;  %2616 = vmatprep.subr.mxu0 %v2382_v24  ;;  %v2515_v23 = vld [vmem:[#allocation10 + $0x1f40] sm:$0xff]  ;;  %v2517_v24 = vld [vmem:[#allocation10 + $0x1f50] sm:$0xff] }
 0x3e4   : > { %2546 = vmatpush1.msra.mxu1 %v2379_v25  ;;  %2617 = vmatpush1.msra.mxu0 %v2381_v10  ;;  %v2508_v25 = vld [vmem:[#allocation10 + $0x1f08] sm:$0xff]  ;;  %v2510_v10 = vld [vmem:[#allocation10 + $0x1f18] sm:$0xff] }
 0x3e5   : > { %2547 = vmatprep.subr.mxu1 %v2372_v26  ;;  %2618 = vmatprep.subr.mxu0 %v2374_v27  ;;  %v2507_v26 = vld [vmem:[#allocation10 + $0x1f00] sm:$0xff]  ;;  %v2509_v27 = vld [vmem:[#allocation10 + $0x1f10] sm:$0xff] }
 0x3e6   : > { %2548 = vmatpush1.msra.mxu1 %v2371_v28  ;;  %2619 = vmatpush1.msra.mxu0 %v2373_v29  ;;  %v2500_v28 = vld [vmem:[#allocation10 + $0x1ec8] sm:$0xff]  ;;  %v2502_v29 = vld [vmem:[#allocation10 + $0x1ed8] sm:$0xff] }
 0x3e7   : > { %2549 = vmatprep.subr.mxu1 %v2364_v30  ;;  %2620 = vmatprep.subr.mxu0 %v2366_v31  ;;  %v2499_v30 = vld [vmem:[#allocation10 + $0x1ec0] sm:$0xff]  ;;  %v2501_v31 = vld [vmem:[#allocation10 + $0x1ed0] sm:$0xff] }
 0x3e8   : > { %2550 = vmatpush1.msra.mxu1 %v2363_v32  ;;  %2621 = vmatpush1.msra.mxu0 %v2365_v33  ;;  %v2492_v32 = vld [vmem:[#allocation10 + $0x1e88] sm:$0xff]  ;;  %v2494_v33 = vld [vmem:[#allocation10 + $0x1e98] sm:$0xff] }
 0x3e9   : > { %2551 = vmatprep.subr.mxu1 %v2356_v34  ;;  %2622 = vmatprep.subr.mxu0 %v2358_v35  ;;  %v2491_v34 = vld [vmem:[#allocation10 + $0x1e80] sm:$0xff]  ;;  %v2493_v35 = vld [vmem:[#allocation10 + $0x1e90] sm:$0xff] }
 0x3ea   : > { %2552 = vmatpush1.msra.mxu1 %v2355_v36  ;;  %2623 = vmatpush1.msra.mxu0 %v2357_v37  ;;  %v2484_v36 = vld [vmem:[#allocation10 + $0x1e48] sm:$0xff]  ;;  %v2486_v37 = vld [vmem:[#allocation10 + $0x1e58] sm:$0xff] }
 0x3eb   : > { %2553 = vmatprep.subr.mxu1 %v2348_v38  ;;  %2624 = vmatprep.subr.mxu0 %v2350_v39  ;;  %v2483_v38 = vld [vmem:[#allocation10 + $0x1e40] sm:$0xff]  ;;  %v2485_v39 = vld [vmem:[#allocation10 + $0x1e50] sm:$0xff] }
 0x3ec   : > { %2554 = vmatpush1.msra.mxu1 %v2347_v40  ;;  %2625 = vmatpush1.msra.mxu0 %v2349_v41  ;;  %v2476_v40 = vld [vmem:[#allocation10 + $0x1e08] sm:$0xff]  ;;  %v2478_v41 = vld [vmem:[#allocation10 + $0x1e18] sm:$0xff] }
 0x3ed   : > { %2555 = vmatprep.subr.mxu1 %v2340_v42  ;;  %2626 = vmatprep.subr.mxu0 %v2342_v43  ;;  %v2475_v42 = vld [vmem:[#allocation10 + $0x1e00] sm:$0xff]  ;;  %v2477_v43 = vld [vmem:[#allocation10 + $0x1e10] sm:$0xff] }
 0x3ee   : > { %2556 = vmatpush1.msra.mxu1 %v2339_v44  ;;  %2627 = vmatpush1.msra.mxu0 %v2341_v45  ;;  %v2468_v44 = vld [vmem:[#allocation10 + $0x1dc8] sm:$0xff]  ;;  %v2470_v45 = vld [vmem:[#allocation10 + $0x1dd8] sm:$0xff] }
 0x3ef   : > { %2557 = vmatprep.subr.mxu1 %v2332_v46  ;;  %2628 = vmatprep.subr.mxu0 %v2334_v47  ;;  %v2467_v46 = vld [vmem:[#allocation10 + $0x1dc0] sm:$0xff]  ;;  %v2469_v47 = vld [vmem:[#allocation10 + $0x1dd0] sm:$0xff] }
 0x3f0   : > { %2558 = vmatpush1.msra.mxu1 %v2331_v48  ;;  %2629 = vmatpush1.msra.mxu0 %v2333_v49  ;;  %v2460_v48 = vld [vmem:[#allocation10 + $0x1d88] sm:$0xff]  ;;  %v2462_v49 = vld [vmem:[#allocation10 + $0x1d98] sm:$0xff] }
 0x3f1   : > { %2559 = vmatprep.subr.mxu1 %v2324_v50  ;;  %2630 = vmatprep.subr.mxu0 %v2326_v51  ;;  %v2459_v50 = vld [vmem:[#allocation10 + $0x1d80] sm:$0xff]  ;;  %v2461_v51 = vld [vmem:[#allocation10 + $0x1d90] sm:$0xff] }
 0x3f2   : > { %2560 = vmatpush1.msra.mxu1 %v2323_v52  ;;  %2631 = vmatpush1.msra.mxu0 %v2325_v53  ;;  %v2452_v52 = vld [vmem:[#allocation10 + $0x1d48] sm:$0xff]  ;;  %v2454_v53 = vld [vmem:[#allocation10 + $0x1d58] sm:$0xff] }
 0x3f3   : > { %2561 = vmatprep.subr.mxu1 %v2316_v54  ;;  %2632 = vmatprep.subr.mxu0 %v2318_v57  ;;  %v2451_v54 = vld [vmem:[#allocation10 + $0x1d40] sm:$0xff]  ;;  %v2453_v57 = vld [vmem:[#allocation10 + $0x1d50] sm:$0xff] }
 0x3f4   : > { %2562 = vmatpush1.msra.mxu1 %v2315_v58  ;;  %2633 = vmatpush1.msra.mxu0 %v2317_v59  ;;  %v2444_v58 = vld [vmem:[#allocation10 + $0x1d08] sm:$0xff]  ;;  %v2446_v59 = vld [vmem:[#allocation10 + $0x1d18] sm:$0xff] }
 0x3f5   : > { %2563 = vmatprep.subr.mxu1 %v2308_v60  ;;  %2634 = vmatprep.subr.mxu0 %v2310_v61  ;;  %v2443_v60 = vld [vmem:[#allocation10 + $0x1d00] sm:$0xff]  ;;  %v2445_v61 = vld [vmem:[#allocation10 + $0x1d10] sm:$0xff] }
 0x3f6   : > { %2564 = vmatpush1.msra.mxu1 %v2307_v62  ;;  %2635 = vmatpush1.msra.mxu0 %v2309_v63  ;;  %v2436_v62 = vld [vmem:[#allocation10 + $0x1cc8] sm:$0xff]  ;;  %v2438_v63 = vld [vmem:[#allocation10 + $0x1cd8] sm:$0xff] }
 0x3f7   : > { %2565 = vmatprep.subr.mxu1 %v2300_v0  ;;  %2636 = vmatprep.subr.mxu0 %v2302_v2  ;;  %v2435_v0 = vld [vmem:[#allocation10 + $0x1cc0] sm:$0xff]  ;;  %v2437_v2 = vld [vmem:[#allocation10 + $0x1cd0] sm:$0xff] }
 0x3f8   : > { %2566 = vmatpush1.msra.mxu1 %v2299_v3  ;;  %2637 = vmatpush1.msra.mxu0 %v2301_v4  ;;  %v2428_v3 = vld [vmem:[#allocation10 + $0x1c88] sm:$0xff]  ;;  %v2430_v4 = vld [vmem:[#allocation10 + $0x1c98] sm:$0xff] }
 0x3f9   : > { %2567 = vmatprep.subr.mxu1 %v2292_v6  ;;  %2638 = vmatprep.subr.mxu0 %v2294_v7  ;;  %v2427_v6 = vld [vmem:[#allocation10 + $0x1c80] sm:$0xff]  ;;  %v2429_v7 = vld [vmem:[#allocation10 + $0x1c90] sm:$0xff] }
 0x3fa   : > { %2568 = vmatpush1.msra.mxu1 %v2291_v8  ;;  %2639 = vmatpush1.msra.mxu0 %v2293_v9  ;;  %v2420_v8 = vld [vmem:[#allocation10 + $0x1c48] sm:$0xff]  ;;  %v2422_v9 = vld [vmem:[#allocation10 + $0x1c58] sm:$0xff] }
 0x3fb   : > { %2569 = vmatprep.subr.mxu1 %v2284_v56  ;;  %2640 = vmatprep.subr.mxu0 %v2286_v11  ;;  %v2419_v56 = vld [vmem:[#allocation10 + $0x1c40] sm:$0xff]  ;;  %v2421_v11 = vld [vmem:[#allocation10 + $0x1c50] sm:$0xff] }
 0x3fc   : > { %2570 = vmatpush1.msra.mxu1 %v2283_v13  ;;  %2641 = vmatpush1.msra.mxu0 %v2285_v14  ;;  %v2412_v13 = vld [vmem:[#allocation10 + $0x1c08] sm:$0xff]  ;;  %v2414_v14 = vld [vmem:[#allocation10 + $0x1c18] sm:$0xff] }
 0x3fd   : > { %2571 = vmatprep.subr.mxu1 %v2532_v15  ;;  %2642 = vmatprep.subr.mxu0 %v2534_v1  ;;  %v2411_v15 = vld [vmem:[#allocation10 + $0x1c00] sm:$0xff]  ;;  %v2413_v1 = vld [vmem:[#allocation10 + $0x1c10] sm:$0xff] }
 0x3fe   : > { %2572 = vmatpush2.msra.mxu1 %v2531_v17  ;;  %2643 = vmatpush2.msra.mxu0 %v2533_v18  ;;  %v2408_v17 = vld [vmem:[#allocation10 + $0x1be8] sm:$0xff]  ;;  %v2410_v18 = vld [vmem:[#allocation10 + $0x1bf8] sm:$0xff] }
 0x3ff   : > { %2573 = vmatprep.subr.mxu1 %v2524_v19  ;;  %2644 = vmatprep.subr.mxu0 %v2526_v55  ;;  %v2407_v19 = vld [vmem:[#allocation10 + $0x1be0] sm:$0xff]  ;;  %v2409_v55 = vld [vmem:[#allocation10 + $0x1bf0] sm:$0xff] }
 0x400   : > { %2574 = vmatpush2.msra.mxu1 %v2523_v20  ;;  %2645 = vmatpush2.msra.mxu0 %v2525_v21  ;;  %v2400_v20 = vld [vmem:[#allocation10 + $0x1ba8] sm:$0xff]  ;;  %v2402_v21 = vld [vmem:[#allocation10 + $0x1bb8] sm:$0xff] }
 0x401   : > { %2575 = vmatprep.subr.mxu1 %v2516_v5  ;;  %2646 = vmatprep.subr.mxu0 %v2518_v22  ;;  %v2399_v5 = vld [vmem:[#allocation10 + $0x1ba0] sm:$0xff]  ;;  %v2401_v22 = vld [vmem:[#allocation10 + $0x1bb0] sm:$0xff] }
 0x402   : > { %2576 = vmatpush2.msra.mxu1 %v2515_v23  ;;  %2647 = vmatpush2.msra.mxu0 %v2517_v24  ;;  %v2392_v23 = vld [vmem:[#allocation10 + $0x1b68] sm:$0xff]  ;;  %v2394_v24 = vld [vmem:[#allocation10 + $0x1b78] sm:$0xff] }
 0x403   : > { %2577 = vmatprep.subr.mxu1 %v2508_v25  ;;  %2648 = vmatprep.subr.mxu0 %v2510_v10  ;;  %v2391_v25 = vld [vmem:[#allocation10 + $0x1b60] sm:$0xff]  ;;  %v2393_v10 = vld [vmem:[#allocation10 + $0x1b70] sm:$0xff] }
 0x404   : > { %2578 = vmatpush2.msra.mxu1 %v2507_v26  ;;  %2649 = vmatpush2.msra.mxu0 %v2509_v27  ;;  %v2384_v26 = vld [vmem:[#allocation10 + $0x1b28] sm:$0xff]  ;;  %v2386_v27 = vld [vmem:[#allocation10 + $0x1b38] sm:$0xff] }
 0x405   : > { %2579 = vmatprep.subr.mxu1 %v2500_v28  ;;  %2650 = vmatprep.subr.mxu0 %v2502_v29  ;;  %v2383_v28 = vld [vmem:[#allocation10 + $0x1b20] sm:$0xff]  ;;  %v2385_v29 = vld [vmem:[#allocation10 + $0x1b30] sm:$0xff] }
 0x406   : > { %2580 = vmatpush2.msra.mxu1 %v2499_v30  ;;  %2651 = vmatpush2.msra.mxu0 %v2501_v31  ;;  %v2376_v30 = vld [vmem:[#allocation10 + $0x1ae8] sm:$0xff]  ;;  %v2378_v31 = vld [vmem:[#allocation10 + $0x1af8] sm:$0xff] }
 0x407   : > { %2581 = vmatprep.subr.mxu1 %v2492_v32  ;;  %2652 = vmatprep.subr.mxu0 %v2494_v33  ;;  %v2377_v32 = vld [vmem:[#allocation10 + $0x1af0] sm:$0xff]  ;;  %v2368_v33 = vld [vmem:[#allocation10 + $0x1aa8] sm:$0xff] }
 0x408   : > { %2582 = vmatpush2.msra.mxu1 %v2491_v34  ;;  %2653 = vmatpush2.msra.mxu0 %v2493_v35  ;;  %v2370_v34 = vld [vmem:[#allocation10 + $0x1ab8] sm:$0xff]  ;;  %v2367_v35 = vld [vmem:[#allocation10 + $0x1aa0] sm:$0xff] }
 0x409   : > { %2583 = vmatprep.subr.mxu1 %v2484_v36  ;;  %2654 = vmatprep.subr.mxu0 %v2486_v37  ;;  %v2369_v36 = vld [vmem:[#allocation10 + $0x1ab0] sm:$0xff]  ;;  %v2360_v37 = vld [vmem:[#allocation10 + $0x1a68] sm:$0xff] }
 0x40a   : > { %2584 = vmatpush2.msra.mxu1 %v2483_v38  ;;  %2655 = vmatpush2.msra.mxu0 %v2485_v39  ;;  %v2362_v38 = vld [vmem:[#allocation10 + $0x1a78] sm:$0xff]  ;;  %v2359_v39 = vld [vmem:[#allocation10 + $0x1a60] sm:$0xff] }
 0x40b   : > { %2585 = vmatprep.subr.mxu1 %v2476_v40  ;;  %2656 = vmatprep.subr.mxu0 %v2478_v41  ;;  %v2361_v40 = vld [vmem:[#allocation10 + $0x1a70] sm:$0xff]  ;;  %v2352_v41 = vld [vmem:[#allocation10 + $0x1a28] sm:$0xff] }
 0x40c   : > { %2586 = vmatpush2.msra.mxu1 %v2475_v42  ;;  %2657 = vmatpush2.msra.mxu0 %v2477_v43  ;;  %v2354_v42 = vld [vmem:[#allocation10 + $0x1a38] sm:$0xff]  ;;  %v2351_v43 = vld [vmem:[#allocation10 + $0x1a20] sm:$0xff] }
 0x40d   : > { %2587 = vmatprep.subr.mxu1 %v2468_v44  ;;  %2658 = vmatprep.subr.mxu0 %v2470_v45  ;;  %v2353_v44 = vld [vmem:[#allocation10 + $0x1a30] sm:$0xff]  ;;  %v2344_v45 = vld [vmem:[#allocation10 + $0x19e8] sm:$0xff] }
 0x40e   : > { %2588 = vmatpush2.msra.mxu1 %v2467_v46  ;;  %2659 = vmatpush2.msra.mxu0 %v2469_v47  ;;  %v2346_v46 = vld [vmem:[#allocation10 + $0x19f8] sm:$0xff]  ;;  %v2343_v47 = vld [vmem:[#allocation10 + $0x19e0] sm:$0xff] }
 0x40f   : > { %2589 = vmatprep.subr.mxu1 %v2460_v48  ;;  %2660 = vmatprep.subr.mxu0 %v2462_v49  ;;  %v2345_v48 = vld [vmem:[#allocation10 + $0x19f0] sm:$0xff]  ;;  %v2336_v49 = vld [vmem:[#allocation10 + $0x19a8] sm:$0xff] }
 0x410   : > { %2590 = vmatpush2.msra.mxu1 %v2459_v50  ;;  %2661 = vmatpush2.msra.mxu0 %v2461_v51  ;;  %v2338_v50 = vld [vmem:[#allocation10 + $0x19b8] sm:$0xff]  ;;  %v2335_v51 = vld [vmem:[#allocation10 + $0x19a0] sm:$0xff] }
 0x411   : > { %2591 = vmatprep.subr.mxu1 %v2452_v52  ;;  %2662 = vmatprep.subr.mxu0 %v2454_v53  ;;  %v2337_v52 = vld [vmem:[#allocation10 + $0x19b0] sm:$0xff]  ;;  %v2328_v53 = vld [vmem:[#allocation10 + $0x1968] sm:$0xff] }
 0x412   : > { %2592 = vmatpush2.msra.mxu1 %v2451_v54  ;;  %2663 = vmatpush2.msra.mxu0 %v2453_v57  ;;  %v2330_v54 = vld [vmem:[#allocation10 + $0x1978] sm:$0xff]  ;;  %v2327_v57 = vld [vmem:[#allocation10 + $0x1960] sm:$0xff] }
 0x413   : > { %2593 = vmatprep.subr.mxu1 %v2444_v58  ;;  %2664 = vmatprep.subr.mxu0 %v2446_v59  ;;  %v2329_v58 = vld [vmem:[#allocation10 + $0x1970] sm:$0xff]  ;;  %v2320_v59 = vld [vmem:[#allocation10 + $0x1928] sm:$0xff] }
 0x414   : > { %2594 = vmatpush2.msra.mxu1 %v2443_v60  ;;  %2665 = vmatpush2.msra.mxu0 %v2445_v61  ;;  %v2322_v60 = vld [vmem:[#allocation10 + $0x1938] sm:$0xff]  ;;  %v2319_v61 = vld [vmem:[#allocation10 + $0x1920] sm:$0xff] }
 0x415   : > { %2595 = vmatprep.subr.mxu1 %v2436_v62  ;;  %2666 = vmatprep.subr.mxu0 %v2438_v63  ;;  %v2321_v62 = vld [vmem:[#allocation10 + $0x1930] sm:$0xff]  ;;  %v2312_v63 = vld [vmem:[#allocation10 + $0x18e8] sm:$0xff] }
 0x416   : > { %2596 = vmatpush2.msra.mxu1 %v2435_v0  ;;  %2667 = vmatpush2.msra.mxu0 %v2437_v2  ;;  %v2314_v0 = vld [vmem:[#allocation10 + $0x18f8] sm:$0xff]  ;;  %v2311_v2 = vld [vmem:[#allocation10 + $0x18e0] sm:$0xff] }
 0x417   : > { %2597 = vmatprep.subr.mxu1 %v2428_v3  ;;  %2668 = vmatprep.subr.mxu0 %v2430_v4  ;;  %v2313_v3 = vld [vmem:[#allocation10 + $0x18f0] sm:$0xff]  ;;  %v2304_v4 = vld [vmem:[#allocation10 + $0x18a8] sm:$0xff] }
 0x418   : > { %2598 = vmatpush2.msra.mxu1 %v2427_v6  ;;  %2669 = vmatpush2.msra.mxu0 %v2429_v7  ;;  %v2306_v6 = vld [vmem:[#allocation10 + $0x18b8] sm:$0xff]  ;;  %v2303_v7 = vld [vmem:[#allocation10 + $0x18a0] sm:$0xff] }
 0x419   : > { %2599 = vmatprep.subr.mxu1 %v2420_v8  ;;  %2670 = vmatprep.subr.mxu0 %v2422_v9  ;;  %v2305_v8 = vld [vmem:[#allocation10 + $0x18b0] sm:$0xff]  ;;  %v2296_v9 = vld [vmem:[#allocation10 + $0x1868] sm:$0xff] }
 0x41a   : > { %2600 = vmatpush2.msra.mxu1 %v2419_v56  ;;  %2671 = vmatpush2.msra.mxu0 %v2421_v11  ;;  %v2298_v56 = vld [vmem:[#allocation10 + $0x1878] sm:$0xff]  ;;  %v2295_v11 = vld [vmem:[#allocation10 + $0x1860] sm:$0xff] }
 0x41b   : > { %2601 = vmatprep.subr.mxu1 %v2412_v13  ;;  %2672 = vmatprep.subr.mxu0 %v2414_v14  ;;  %v2297_v13 = vld [vmem:[#allocation10 + $0x1870] sm:$0xff]  ;;  %v2288_v14 = vld [vmem:[#allocation10 + $0x1828] sm:$0xff] }
 0x41c   : > { %2602 = vmatpush2.msra.mxu1 %v2411_v15  ;;  %2673 = vmatpush2.msra.mxu0 %v2413_v1  ;;  %v2290_v15 = vld [vmem:[#allocation10 + $0x1838] sm:$0xff]  ;;  %v2287_v1 = vld [vmem:[#allocation10 + $0x1820] sm:$0xff] }
 0x41d   : > { %2604 = vmatmul.mubr.f32.vlgmr.msra.gmra.mxu1 %v3731_v12  ;;  %2675 = vmatmul.mubr.f32.vlgmr.msra.gmra.mxu0 %v3731_v12 }
 0x41e   : > { %2681 = vmatprep.subr.mxu1 %v2408_v17  ;;  %2752 = vmatprep.subr.mxu0 %v2410_v18  ;;  %v2289_v17 = vld [vmem:[#allocation10 + $0x1830] sm:$0xff]  ;;  %v2536_v18 = vld [vmem:[#allocation10 + $0x1fe8] sm:$0xff] }
 0x41f   : > { %2682 = vmatpush1.msra.mxu1 %v2407_v19  ;;  %2745 = vmatprep.mubr.f32.mxu1 %v3735_v16  ;;  %v2538_v19 = vld [vmem:[#allocation10 + $0x1ff8] sm:$0xff] }
 0x420   : > { %2753 = vmatpush1.msra.mxu0 %v2409_v55  ;;  %2816 = vmatprep.mubr.f32.mxu0 %v3735_v16  ;;  %v2375_v16 = vld [vmem:[#allocation10 + $0x1ae0] sm:$0xff] }
 0x421   : > { %2683 = vmatprep.subr.mxu1 %v2400_v20  ;;  %2754 = vmatprep.subr.mxu0 %v2402_v21  ;;  %v2535_v55 = vld [vmem:[#allocation10 + $0x1fe0] sm:$0xff]  ;;  %v2537_v20 = vld [vmem:[#allocation10 + $0x1ff0] sm:$0xff]  ;;  %v2528_v21 = vld [vmem:[#allocation10 + $0x1fa8] sm:$0xff] }
 0x422   : > { %2684 = vmatpush1.msra.mxu1 %v2399_v5  ;;  %2755 = vmatpush1.msra.mxu0 %v2401_v22  ;;  %v2530_v5 = vld [vmem:[#allocation10 + $0x1fb8] sm:$0xff]  ;;  %v2527_v22 = vld [vmem:[#allocation10 + $0x1fa0] sm:$0xff] }
 0x423   : > { %2685 = vmatprep.subr.mxu1 %v2392_v23  ;;  %2756 = vmatprep.subr.mxu0 %v2394_v24  ;;  %v2529_v23 = vld [vmem:[#allocation10 + $0x1fb0] sm:$0xff]  ;;  %v2520_v24 = vld [vmem:[#allocation10 + $0x1f68] sm:$0xff] }
 0x424   : > { %2686 = vmatpush1.msra.mxu1 %v2391_v25  ;;  %2757 = vmatpush1.msra.mxu0 %v2393_v10  ;;  %v2522_v25 = vld [vmem:[#allocation10 + $0x1f78] sm:$0xff]  ;;  %v2519_v10 = vld [vmem:[#allocation10 + $0x1f60] sm:$0xff] }
 0x425   : > { %2687 = vmatprep.subr.mxu1 %v2384_v26  ;;  %2758 = vmatprep.subr.mxu0 %v2386_v27  ;;  %v2521_v26 = vld [vmem:[#allocation10 + $0x1f70] sm:$0xff]  ;;  %v2512_v27 = vld [vmem:[#allocation10 + $0x1f28] sm:$0xff] }
 0x426   : > { %2688 = vmatpush1.msra.mxu1 %v2383_v28  ;;  %2759 = vmatpush1.msra.mxu0 %v2385_v29  ;;  %v2514_v28 = vld [vmem:[#allocation10 + $0x1f38] sm:$0xff]  ;;  %v2511_v29 = vld [vmem:[#allocation10 + $0x1f20] sm:$0xff] }
 0x427   : > { %2689 = vmatprep.subr.mxu1 %v2376_v30  ;;  %2760 = vmatprep.subr.mxu0 %v2378_v31  ;;  %v2513_v30 = vld [vmem:[#allocation10 + $0x1f30] sm:$0xff]  ;;  %v2504_v31 = vld [vmem:[#allocation10 + $0x1ee8] sm:$0xff] }
 0x428   : > { %2690 = vmatpush1.msra.mxu1 %v2375_v16  ;;  %2761 = vmatpush1.msra.mxu0 %v2377_v32  ;;  %v2506_v16 = vld [vmem:[#allocation10 + $0x1ef8] sm:$0xff]  ;;  %v2503_v32 = vld [vmem:[#allocation10 + $0x1ee0] sm:$0xff] }
 0x429   : > { %2691 = vmatprep.subr.mxu1 %v2368_v33  ;;  %2762 = vmatprep.subr.mxu0 %v2370_v34  ;;  %v2505_v33 = vld [vmem:[#allocation10 + $0x1ef0] sm:$0xff]  ;;  %v2496_v34 = vld [vmem:[#allocation10 + $0x1ea8] sm:$0xff] }
 0x42a   : > { %2692 = vmatpush1.msra.mxu1 %v2367_v35  ;;  %2763 = vmatpush1.msra.mxu0 %v2369_v36  ;;  %v2498_v35 = vld [vmem:[#allocation10 + $0x1eb8] sm:$0xff]  ;;  %v2495_v36 = vld [vmem:[#allocation10 + $0x1ea0] sm:$0xff] }
 0x42b   : > { %2693 = vmatprep.subr.mxu1 %v2360_v37  ;;  %2764 = vmatprep.subr.mxu0 %v2362_v38  ;;  %v2497_v37 = vld [vmem:[#allocation10 + $0x1eb0] sm:$0xff]  ;;  %v2488_v38 = vld [vmem:[#allocation10 + $0x1e68] sm:$0xff] }
 0x42c   : > { %2694 = vmatpush1.msra.mxu1 %v2359_v39  ;;  %2765 = vmatpush1.msra.mxu0 %v2361_v40  ;;  %v2490_v39 = vld [vmem:[#allocation10 + $0x1e78] sm:$0xff]  ;;  %v2487_v40 = vld [vmem:[#allocation10 + $0x1e60] sm:$0xff] }
 0x42d   : > { %2695 = vmatprep.subr.mxu1 %v2352_v41  ;;  %2766 = vmatprep.subr.mxu0 %v2354_v42  ;;  %v2489_v41 = vld [vmem:[#allocation10 + $0x1e70] sm:$0xff]  ;;  %v2480_v42 = vld [vmem:[#allocation10 + $0x1e28] sm:$0xff] }
 0x42e   : > { %2696 = vmatpush1.msra.mxu1 %v2351_v43  ;;  %2767 = vmatpush1.msra.mxu0 %v2353_v44  ;;  %v2482_v43 = vld [vmem:[#allocation10 + $0x1e38] sm:$0xff]  ;;  %v2479_v44 = vld [vmem:[#allocation10 + $0x1e20] sm:$0xff] }
 0x42f   : > { %2697 = vmatprep.subr.mxu1 %v2344_v45  ;;  %2768 = vmatprep.subr.mxu0 %v2346_v46  ;;  %v2481_v45 = vld [vmem:[#allocation10 + $0x1e30] sm:$0xff]  ;;  %v2472_v46 = vld [vmem:[#allocation10 + $0x1de8] sm:$0xff] }
 0x430   : > { %2698 = vmatpush1.msra.mxu1 %v2343_v47  ;;  %2769 = vmatpush1.msra.mxu0 %v2345_v48  ;;  %v2474_v47 = vld [vmem:[#allocation10 + $0x1df8] sm:$0xff]  ;;  %v2471_v48 = vld [vmem:[#allocation10 + $0x1de0] sm:$0xff] }
 0x431   : > { %2699 = vmatprep.subr.mxu1 %v2336_v49  ;;  %2770 = vmatprep.subr.mxu0 %v2338_v50  ;;  %v2473_v49 = vld [vmem:[#allocation10 + $0x1df0] sm:$0xff]  ;;  %v2464_v50 = vld [vmem:[#allocation10 + $0x1da8] sm:$0xff] }
 0x432   : > { %2700 = vmatpush1.msra.mxu1 %v2335_v51  ;;  %2771 = vmatpush1.msra.mxu0 %v2337_v52  ;;  %v2466_v51 = vld [vmem:[#allocation10 + $0x1db8] sm:$0xff]  ;;  %v2463_v52 = vld [vmem:[#allocation10 + $0x1da0] sm:$0xff] }
 0x433   : > { %2701 = vmatprep.subr.mxu1 %v2328_v53  ;;  %2772 = vmatprep.subr.mxu0 %v2330_v54  ;;  %v2465_v53 = vld [vmem:[#allocation10 + $0x1db0] sm:$0xff]  ;;  %v2456_v54 = vld [vmem:[#allocation10 + $0x1d68] sm:$0xff] }
 0x434   : > { %2702 = vmatpush1.msra.mxu1 %v2327_v57  ;;  %2773 = vmatpush1.msra.mxu0 %v2329_v58  ;;  %v2458_v57 = vld [vmem:[#allocation10 + $0x1d78] sm:$0xff]  ;;  %v2455_v58 = vld [vmem:[#allocation10 + $0x1d60] sm:$0xff] }
 0x435   : > { %2703 = vmatprep.subr.mxu1 %v2320_v59  ;;  %2774 = vmatprep.subr.mxu0 %v2322_v60  ;;  %v2457_v59 = vld [vmem:[#allocation10 + $0x1d70] sm:$0xff]  ;;  %v2448_v60 = vld [vmem:[#allocation10 + $0x1d28] sm:$0xff] }
 0x436   : > { %2704 = vmatpush1.msra.mxu1 %v2319_v61  ;;  %2775 = vmatpush1.msra.mxu0 %v2321_v62  ;;  %v2450_v61 = vld [vmem:[#allocation10 + $0x1d38] sm:$0xff]  ;;  %v2447_v62 = vld [vmem:[#allocation10 + $0x1d20] sm:$0xff] }
 0x437   : > { %2705 = vmatprep.subr.mxu1 %v2312_v63  ;;  %2776 = vmatprep.subr.mxu0 %v2314_v0  ;;  %v2449_v63 = vld [vmem:[#allocation10 + $0x1d30] sm:$0xff]  ;;  %v2440_v0 = vld [vmem:[#allocation10 + $0x1ce8] sm:$0xff] }
 0x438   : > { %2706 = vmatpush1.msra.mxu1 %v2311_v2  ;;  %2777 = vmatpush1.msra.mxu0 %v2313_v3  ;;  %v2442_v2 = vld [vmem:[#allocation10 + $0x1cf8] sm:$0xff]  ;;  %v2439_v3 = vld [vmem:[#allocation10 + $0x1ce0] sm:$0xff] }
 0x439   : > { %2707 = vmatprep.subr.mxu1 %v2304_v4  ;;  %2778 = vmatprep.subr.mxu0 %v2306_v6  ;;  %v2441_v4 = vld [vmem:[#allocation10 + $0x1cf0] sm:$0xff]  ;;  %v2432_v6 = vld [vmem:[#allocation10 + $0x1ca8] sm:$0xff] }
 0x43a   : > { %2708 = vmatpush1.msra.mxu1 %v2303_v7  ;;  %2779 = vmatpush1.msra.mxu0 %v2305_v8  ;;  %v2434_v7 = vld [vmem:[#allocation10 + $0x1cb8] sm:$0xff]  ;;  %v2431_v8 = vld [vmem:[#allocation10 + $0x1ca0] sm:$0xff] }
 0x43b   : > { %2709 = vmatprep.subr.mxu1 %v2296_v9  ;;  %2780 = vmatprep.subr.mxu0 %v2298_v56  ;;  %v2433_v9 = vld [vmem:[#allocation10 + $0x1cb0] sm:$0xff]  ;;  %v2424_v56 = vld [vmem:[#allocation10 + $0x1c68] sm:$0xff] }
 0x43c   : > { %2710 = vmatpush1.msra.mxu1 %v2295_v11  ;;  %2781 = vmatpush1.msra.mxu0 %v2297_v13  ;;  %v2426_v11 = vld [vmem:[#allocation10 + $0x1c78] sm:$0xff]  ;;  %v2423_v13 = vld [vmem:[#allocation10 + $0x1c60] sm:$0xff] }
 0x43d   : > { %2711 = vmatprep.subr.mxu1 %v2288_v14  ;;  %2782 = vmatprep.subr.mxu0 %v2290_v15  ;;  %v2425_v14 = vld [vmem:[#allocation10 + $0x1c70] sm:$0xff]  ;;  %v2416_v15 = vld [vmem:[#allocation10 + $0x1c28] sm:$0xff] }
 0x43e   : > { %2712 = vmatpush1.msra.mxu1 %v2287_v1  ;;  %2783 = vmatpush1.msra.mxu0 %v2289_v17  ;;  %v2418_v1 = vld [vmem:[#allocation10 + $0x1c38] sm:$0xff]  ;;  %v2415_v17 = vld [vmem:[#allocation10 + $0x1c20] sm:$0xff] }
 0x43f   : > { %2713 = vmatprep.subr.mxu1 %v2536_v18  ;;  %2784 = vmatprep.subr.mxu0 %v2538_v19  ;;  %v2417_v18 = vld [vmem:[#allocation10 + $0x1c30] sm:$0xff]  ;;  %v1231_v19 = vpop.f32.mrf.mxu1 }
 0x440   : > { %2714 = vmatpush2.msra.mxu1 %v2535_v55  ;;  %2785 = vmatpush2.msra.mxu0 %v2537_v20 }
 0x441   : > { %2715 = vmatprep.subr.mxu1 %v2528_v21  ;;  %2786 = vmatprep.subr.mxu0 %v2530_v5  ;;  %v1233_v55 = vpop.f32.mrf.mxu1  ;;  %v1302_v21 = vpop.f32.mrf.mxu0 }
 0x442   : > { %2716 = vmatpush2.msra.mxu1 %v2527_v22  ;;  %2787 = vmatpush2.msra.mxu0 %v2529_v23 }
 0x443   : > { %2717 = vmatprep.subr.mxu1 %v2520_v24  ;;  %2788 = vmatprep.subr.mxu0 %v2522_v25  ;;  %v1373_v20 = vpop.f32.mrf.mxu1  ;;  %v1304_v23 = vpop.f32.mrf.mxu0 }
 0x444   : > { %2718 = vmatpush2.msra.mxu1 %v2519_v10  ;;  %2789 = vmatpush2.msra.mxu0 %v2521_v26 }
 0x445   : > { %2719 = vmatprep.subr.mxu1 %v2512_v27  ;;  %2790 = vmatprep.subr.mxu0 %v2514_v28  ;;  %v1375_v5 = vpop.f32.mrf.mxu1  ;;  %v1444_v24 = vpop.f32.mrf.mxu0 }
 0x446   : > { %2720 = vmatpush2.msra.mxu1 %v2511_v29  ;;  %2791 = vmatpush2.msra.mxu0 %v2513_v30 }
 0x447   : > { %2721 = vmatprep.subr.mxu1 %v2504_v31  ;;  %2792 = vmatprep.subr.mxu0 %v2506_v16  ;;  %v1515_v22 = vpop.f32.mrf.mxu1  ;;  %v1446_v26 = vpop.f32.mrf.mxu0 }
 0x448   : > { %2722 = vmatpush2.msra.mxu1 %v2503_v32  ;;  %2793 = vmatpush2.msra.mxu0 %v2505_v33 }
 0x449   : > { %2723 = vmatprep.subr.mxu1 %v2496_v34  ;;  %2794 = vmatprep.subr.mxu0 %v2498_v35  ;;  %v1517_v25 = vpop.f32.mrf.mxu1  ;;  %v1586_v27 = vpop.f32.mrf.mxu0 }
 0x44a   : > { %2724 = vmatpush2.msra.mxu1 %v2495_v36  ;;  %2795 = vmatpush2.msra.mxu0 %v2497_v37  ;;  %v1518_v37 = vadd.f32 %v1517_v25, %v1233_v55 }
 0x44b   : > { %2725 = vmatprep.subr.mxu1 %v2488_v38  ;;  %2796 = vmatprep.subr.mxu0 %v2490_v39  ;;  %v1657_v10 = vpop.f32.mrf.mxu1  ;;  %v1588_v30 = vpop.f32.mrf.mxu0 }
 0x44c   : > { %2726 = vmatpush2.msra.mxu1 %v2487_v40  ;;  %2797 = vmatpush2.msra.mxu0 %v2489_v41  ;;  %v1516_v40 = vadd.f32 %v1515_v22, %v1231_v19 }
 0x44d   : > { %2727 = vmatprep.subr.mxu1 %v2480_v42  ;;  %2798 = vmatprep.subr.mxu0 %v2482_v43  ;;  %v1659_v28 = vpop.f32.mrf.mxu1  ;;  %v1728_v31 = vpop.f32.mrf.mxu0 }
 0x44e   : > { %2728 = vmatpush2.msra.mxu1 %v2479_v44  ;;  %2799 = vmatpush2.msra.mxu0 %v2481_v45  ;;  %v1587_v45 = vadd.f32 %v1586_v27, %v1302_v21 }
 0x44f   : > { %2729 = vmatprep.subr.mxu1 %v2472_v46  ;;  %2800 = vmatprep.subr.mxu0 %v2474_v47  ;;  %v1730_v33 = vpop.f32.mrf.mxu0 }
 0x450   : > { %2730 = vmatpush2.msra.mxu1 %v2471_v48  ;;  %2801 = vmatpush2.msra.mxu0 %v2473_v49 }
 0x451   : > { %2731 = vmatprep.subr.mxu1 %v2464_v50  ;;  %2802 = vmatprep.subr.mxu0 %v2466_v51  ;;  %v1589_v50 = vadd.f32 %v1588_v30, %v1304_v23  ;;  %v2895_v30 = vld [vmem:[%s3618_s14] sm:$0xff] }
 0x452   : > { %2732 = vmatpush2.msra.mxu1 %v2463_v52  ;;  %2803 = vmatpush2.msra.mxu0 %v2465_v53  ;;  %2903 = vst [vmem:[%s3777_s11 + $0x40] sm:$0xff] %v2895_v30 }
 0x453   : > { %2733 = vmatprep.subr.mxu1 %v2456_v54  ;;  %2804 = vmatprep.subr.mxu0 %v2458_v57 }
 0x454   : > { %2734 = vmatpush2.msra.mxu1 %v2455_v58  ;;  %2805 = vmatpush2.msra.mxu0 %v2457_v59 }
 0x455   : > { %2735 = vmatprep.subr.mxu1 %v2448_v60  ;;  %2806 = vmatprep.subr.mxu0 %v2450_v61  ;;  %v1658_v61 = vadd.f32 %v1657_v10, %v1373_v20 }
 0x456   : > { %2736 = vmatpush2.msra.mxu1 %v2447_v62  ;;  %2807 = vmatpush2.msra.mxu0 %v2449_v63 }
 0x457   : > { %2737 = vmatprep.subr.mxu1 %v2440_v0  ;;  %2808 = vmatprep.subr.mxu0 %v2442_v2  ;;  %v1729_v0 = vadd.f32 %v1728_v31, %v1444_v24  ;;  %v1660_v2 = vadd.f32 %v1659_v28, %v1375_v5  ;;  %v2896_v31 = vld [vmem:[%s3618_s14 + $0x8] sm:$0xff] }
 0x458   : > { %2738 = vmatpush2.msra.mxu1 %v2439_v3  ;;  %2809 = vmatpush2.msra.mxu0 %v2441_v4  ;;  %v1731_v4 = vadd.f32 %v1730_v33, %v1446_v26  ;;  %v2899_v33 = vld [vmem:[%s3618_s14 + $0x20] sm:$0xff]  ;;  %2904 = vst [vmem:[%s3777_s11 + $0x48] sm:$0xff] %v2896_v31 }
 0x459   : > { %2739 = vmatprep.subr.mxu1 %v2432_v6  ;;  %2810 = vmatprep.subr.mxu0 %v2434_v7  ;;  %v2056_v29 = vpop.f32.mrf.mxu1  ;;  %2907 = vst [vmem:[%s3777_s11 + $0x60] sm:$0xff] %v2899_v33 }
 0x45a   : > { %2740 = vmatpush2.msra.mxu1 %v2431_v8  ;;  %2811 = vmatpush2.msra.mxu0 %v2433_v9  ;;  %v2274_v42 = vadd.f32 %v2056_v29, %v1516_v40 }
 0x45b   : > { %2741 = vmatprep.subr.mxu1 %v2424_v56  ;;  %2812 = vmatprep.subr.mxu0 %v2426_v11  ;;  %v2058_v16 = vpop.f32.mrf.mxu1 }
 0x45c   : > { %2742 = vmatpush2.msra.mxu1 %v2423_v13  ;;  %2813 = vmatpush2.msra.mxu0 %v2425_v14  ;;  %v2275_v41 = vadd.f32 %v2058_v16, %v1518_v37  ;;  %v2897_v16 = vld [vmem:[%s3618_s14 + $0x10] sm:$0xff] }
 0x45d   : > { %2743 = vmatprep.subr.mxu1 %v2416_v15  ;;  %2814 = vmatprep.subr.mxu0 %v2418_v1  ;;  %2905 = vst [vmem:[%s3777_s11 + $0x50] sm:$0xff] %v2897_v16 }
 0x45e   : > { %2744 = vmatpush2.msra.mxu1 %v2415_v17  ;;  %2815 = vmatpush2.msra.mxu0 %v2417_v18 }
 0x45f   : > { %2746 = vmatmul.mubr.f32.vlgmr.msra.gmra.mxu1 %v3731_v12  ;;  %2817 = vmatmul.mubr.f32.vlgmr.msra.gmra.mxu0 %v3731_v12  ;;  %v2127_v12 = vpop.f32.mrf.mxu0 }
 0x460   : > { %v2276_v48 = vadd.f32 %v2127_v12, %v1587_v45  ;;  %v2900_v12 = vld [vmem:[%s3618_s14 + $0x28] sm:$0xff] }
 0x461   : > { %v2129_v36 = vpop.f32.mrf.mxu0  ;;  %2908 = vst [vmem:[%s3777_s11 + $0x68] sm:$0xff] %v2900_v12 }
 0x462   : > { %v2277_v57 = vadd.f32 %v2129_v36, %v1589_v50 }
 0x49b   : > { %v2198_v32 = vpop.f32.mrf.mxu1  ;;  %v2269_v38 = vpop.f32.mrf.mxu0 }
 0x49c   : > { %v2278_v3 = vadd.f32 %v2198_v32, %v1658_v61  ;;  %v2280_v9 = vadd.f32 %v2269_v38, %v1729_v0  ;;  %v2898_v32 = vld [vmem:[%s3618_s14 + $0x18] sm:$0xff] }
 0x49d   : > { %v2200_v34 = vpop.f32.mrf.mxu1  ;;  %v2271_v44 = vpop.f32.mrf.mxu0  ;;  %2906 = vst [vmem:[%s3777_s11 + $0x58] sm:$0xff] %v2898_v32 }
 0x49e   : > { %v2279_v56 = vadd.f32 %v2200_v34, %v1660_v2  ;;  %v2281_v14 = vadd.f32 %v2271_v44, %v1731_v4  ;;  %v2901_v34 = vld [vmem:[%s3618_s14 + $0x30] sm:$0xff] }
 0x49f   : > { %2909 = vst [vmem:[%s3777_s11 + $0x70] sm:$0xff] %v2901_v34 }
 0x4dd   : > { %v2605_v35 = vpop.f32.mrf.mxu1  ;;  %v2676_v47 = vpop.f32.mrf.mxu0 }
 0x4de   : > { %v3747_v46 = vadd.f32 %v2605_v35, %v2274_v42  ;;  %v3753_v52 = vadd.f32 %v2676_v47, %v2276_v48  ;;  %v2902_v35 = vld [vmem:[%s3618_s14 + $0x38] sm:$0xff]  ;;  %s2912_s14 = scalar_lea.sflag [#allocation4], %s3608_s0 }
 0x4df   : > { %v2607_v39 = vpop.f32.mrf.mxu1  ;;  %v2678_v54 = vpop.f32.mrf.mxu0  ;;  %2910 = vst [vmem:[%s3777_s11 + $0x78] sm:$0xff] %v2902_v35 }
 0x4e0   : > { %v3745_v43 = vadd.f32 %v2607_v39, %v2275_v41  ;;  %v2841_v51 = vmul.f32 %v3747_v46, %v3747_v46  ;;  %v2843_v59 = vmul.f32 %v3753_v52, %v3753_v52  ;;  %v3759_v60 = vadd.f32 %v2678_v54, %v2277_v57 }
 0x4e2   : > { %v2842_v49 = vmul.f32 %v3745_v43, %v3745_v43  ;;  %v2831_v53 = vadd.f32 %v3745_v43, %v3747_v46  ;;  %v2844_v6 = vmul.f32 %v3759_v60, %v3759_v60 }
 0x4e4   : > { %v2849_v58 = vadd.f32 %v2842_v49, %v2841_v51  ;;  %v2832_v62 = vadd.f32 %v2831_v53, %v3753_v52 }
 0x4e6   : > { %v2850_v63 = vadd.f32 %v2849_v58, %v2843_v59  ;;  %v2833_v11 = vadd.f32 %v2832_v62, %v3759_v60 }
 0x4e8   : > { %v2851_v15 = vadd.f32 %v2850_v63, %v2844_v6 }
 0x51f   : > { %v2747_v7 = vpop.f32.mrf.mxu1  ;;  %v2818_v8 = vpop.f32.mrf.mxu0 }
 0x520   : > { %v3765_v13 = vadd.f32 %v2747_v7, %v2278_v3  ;;  %v2829_v55 = vadd.f32 %v2818_v8, %v2280_v9 }
 0x521   : > { %v2749_v1 = vpop.f32.mrf.mxu1  ;;  %v2820_v17 = vpop.f32.mrf.mxu0 }
 0x522   : > { %v2834_v18 = vadd.f32 %v2833_v11, %v3765_v13  ;;  %v2845_v19 = vmul.f32 %v3765_v13, %v3765_v13  ;;  %v2828_v20 = vadd.f32 %v2749_v1, %v2279_v56  ;;  %v2830_v23 = vadd.f32 %v2820_v17, %v2281_v14 }
 0x523   : > { %v2847_v24 = vmul.f32 %v2829_v55, %v2829_v55 }
 0x524   : > { %v2852_v21 = vadd.f32 %v2851_v15, %v2845_v19  ;;  %v2835_v5 = vadd.f32 %v2834_v18, %v2828_v20  ;;  %v2846_v22 = vmul.f32 %v2828_v20, %v2828_v20  ;;  %v2848_v27 = vmul.f32 %v2830_v23, %v2830_v23 }
 0x526   : > { %v2836_v25 = vadd.f32 %v2835_v5, %v2829_v55  ;;  %v2853_v10 = vadd.f32 %v2852_v21, %v2846_v22 }
 0x528   : > { %v2837_v26 = vadd.f32 %v2836_v25, %v2830_v23  ;;  %v2854_v28 = vadd.f32 %v2853_v10, %v2847_v24 }
 0x52a   : > { %2838 = vadd.xlane.f32.xlu0 %v2837_v26  ;;  %v2855_v29 = vadd.f32 %v2854_v28, %v2848_v27 }
 0x52c   : > { %2856 = vadd.xlane.f32.xlu1 %v2855_v29 }
 0x5b3   : > { %v2839_v36 = vpop.xlane.xlu0 %2838 }
 0x5b4   : > { %v2840_v37 = vmul.f32 0.0009765625, %v2839_v36 }
 0x5b5   : > { %v2857_v38 = vpop.xlane.xlu1 %2856 }
 0x5b6   : > { %v2858_v39 = vmul.f32 0.0009765625, %v2857_v38  ;;  %v2859_v40 = vmul.f32 %v2840_v37, %v2840_v37  ;;  %v2861_v44 = vsub.f32 %v3747_v46, %v2840_v37  ;;  %v2862_v45 = vsub.f32 %v3745_v43, %v2840_v37 }
 0x5b7   : > { %v2863_v47 = vsub.f32 %v3753_v52, %v2840_v37  ;;  %v2864_v48 = vsub.f32 %v3759_v60, %v2840_v37  ;;  %v2865_v50 = vsub.f32 %v3765_v13, %v2840_v37  ;;  %v2866_v51 = vsub.f32 %v2828_v20, %v2840_v37 }
 0x5b8   : > { %v2860_v41 = vsub.f32 %v2858_v39, %v2859_v40  ;;  %v2867_v53 = vsub.f32 %v2829_v55, %v2840_v37  ;;  %v2868_v54 = vsub.f32 %v2830_v23, %v2840_v37 }
 0x5ba   : > { %v2869_v42 = vadd.f32 1e-05, %v2860_v41 }
 0x5bc   : > { %3178 = vrsqrt.f32 %v2869_v42 }
 0x5c9   : > { %v3179_v49 = vpop.eup %3178 }
 0x5ca   : > { %v2871_v57 = vmul.f32 %v3179_v49, %v2861_v44  ;;  %v2872_v58 = vmul.f32 %v3179_v49, %v2862_v45  ;;  %v2873_v59 = vmul.f32 %v3179_v49, %v2863_v47  ;;  %v2874_v61 = vmul.f32 %v3179_v49, %v2864_v48 }
 0x5cb   : > { %v2875_v46 = vmul.f32 %v3179_v49, %v2865_v50  ;;  %v2876_v43 = vmul.f32 %v3179_v49, %v2866_v51  ;;  %v2877_v52 = vmul.f32 %v3179_v49, %v2867_v53  ;;  %v2878_v60 = vmul.f32 %v3179_v49, %v2868_v54 }
 0x5cc   : > { %v2879_v62 = vmax.f32 %v2871_v57, 0.0  ;;  %v2880_v63 = vmax.f32 %v2872_v58, 0.0  ;;  %v2881_v0 = vmax.f32 %v2873_v59, 0.0  ;;  %v2882_v2 = vmax.f32 %v2874_v61, 0.0 }
 0x5cd   : > { %v2883_v3 = vmax.f32 %v2875_v46, 0.0  ;;  %v2884_v4 = vmax.f32 %v2876_v43, 0.0  ;;  %v2885_v6 = vmax.f32 %v2877_v52, 0.0  ;;  %v2886_v7 = vmax.f32 %v2878_v60, 0.0 }
 0x5ce   : > { %2887 = vst [vmem:[%s3777_s11] sm:$0xff] %v2879_v62  ;;  %2888 = vst [vmem:[%s3777_s11 + $0x8] sm:$0xff] %v2880_v63 }
 0x5cf   : > { %2889 = vst [vmem:[%s3777_s11 + $0x10] sm:$0xff] %v2881_v0  ;;  %2890 = vst [vmem:[%s3777_s11 + $0x18] sm:$0xff] %v2882_v2 }
 0x5d0   : > { %2891 = vst [vmem:[%s3777_s11 + $0x20] sm:$0xff] %v2883_v3  ;;  %2892 = vst [vmem:[%s3777_s11 + $0x28] sm:$0xff] %v2884_v4 }
 0x5d1   : > { %2893 = vst [vmem:[%s3777_s11 + $0x30] sm:$0xff] %v2885_v6  ;;  %2894 = vst [vmem:[%s3777_s11 + $0x38] sm:$0xff] %v2886_v7 }
 0x5d2   : > { %3327 = shalt.err (!%p3324_p10)
}
 0x5d3   : > { %s3328_s9 = scalar_lea.hbm %s3799_s13, 2048  ;;  %s3332_s12 = scalar_lea.hbm %s3857_s5, 4096 }
 0x5d4   : > { %p3329_p13 = scmp.ne.s32.totalorder %s3799_s13, %s3328_s9  ;;  %p3333_p2 = scmp.lt.s32.totalorder %s3799_s13, %s3857_s5 }
 0x5d5   : > { %p3334_p4 = scmp.lt.s32.totalorder %s3332_s12, %s3328_s9 }
 0x5d6   : > { %p3330_p1 = pnand %p3329_p13, %p3878_p0 }
 0x5d7   : > { %p3335_p6 = por %p3334_p4, %p3333_p2 }
 0x5d8   : > { %p3331_p11 = pneg %p3330_p1 }
 0x5da   : > { %p3336_p12 = pnand %p3335_p6, %p3331_p11 }
 0x5dc   : > { %3339 = shalt.err (!%p3336_p12)
}
 0x5dd   : > { %s3412_s11 = smov 1024   ;;  %s3413_s15 = smov 64  }
 0x5de   : > { %3096 = dma.vmem_to_hbm [thread:$0]  (%p3878_p0), %s3801_s23, 2048, %s3799_s13, %s2912_s14, %s3412_s11, %s3412_s11, %s3413_s15  }
 0x5df PF: > { %s2940_s22 = sand.u32 1, %s3378_s18   ;;  %p3879_p5 = scmp.ne.s32.totalorder %s3864_s25, 0 }
 0x5e0   : > { %p3880_p3 = scmp.ge.s32.totalorder %s3390_s21, 2  ;;  %s2941_s26 = scalar_lea.sflag [#allocation4], %s2940_s22 }
 0x5e2   : > { %p3116_p7 = pnand %p3880_p3, %p3879_p5 }
 0x5e4   : > { %p3117_p9 = pneg %p3116_p7 }
 0x5e6   : > { %3373 = dma.done.wait (%p3117_p9), %s2941_s26, 2048  }
 0x5e7   : > { %3375 = vsyncadd (%p3117_p9), %s2941_s26, 4294965248  ;;  %p22_p8 = scmp.ge.s32.totalorder %s3524_s6, 4   ;;  %s3881_s18 = smov %s3382_s19 }
 0x5e8   : > { %s3882_s19 = smov %s3386_s20  ;;  %s3883_s20 = smov %s3534_s10 }
 0x5e9   : > { %s3884_s21 = smov %s3524_s6  ;;  %24 = sbr.rel (!%p22_p8) target bundleno = 10 (0xa), region = 114 }
 0x5ee   :  { %2946 = vsyncpa [#allocation3], 1 }
 0x5ef   :  { %2948 = vsyncpa [#allocation3 + $0x1], 1 }
 0x5f0   :  { %2949 = vsyncpa [#allocation6], 1 }
 0x5f1   :  { %2951 = vsyncpa [#allocation6 + $0x1], 1 }
 0x5f2   :  { %2952 = vsyncpa [#allocation9], 1 }
 0x5f3   :  { %2953 = vsyncpa [#allocation4], 1 }
 0x5f4   :  { %2955 = vsyncpa [#allocation4 + $0x1], 1 }

</bundles_post_ra>
